<compile_context>
chip_gen: v7x
topology: tpu7x:2x2x1
jax: 0.10.0
libtpu: 0.0.40
codegen_flags: <defaults>
</compile_context>

<pallas_src>
import jax
import jax.numpy as jnp
from jax.experimental import pallas as pl
from jax.experimental.pallas import tpu as pltpu


_LANE = 128          # channels padded to a multiple of the lane width
_SUBLANE_PAD = 16    # bf16 sublane tile: left pad of the conv2 scratch so the
                     # single m1 store is a fully aligned (unmasked) store


# ----------------------------------------------------------------------------
# Pallas kernel: the whole Bottleneck forward for one batch element.
# ----------------------------------------------------------------------------
def _bottleneck_kernel(x_ref, w1_ref, b1_ref, w2_ref, b2_ref, w3_ref, b3_ref,
                       out_ref, mid_ref):
    # x_ref  : (1, H, W, Cp)    bf16 input, channels padded to 128-multiple
    # w1_ref : (Cp, Pm)         bf16 1x1 conv1 weights (BN1 scale folded)
    # b1_ref : (1, Pm)          f32  BN1 shift
    # w2_ref : (3, 3, Pm, Pm)   bf16 3x3 conv2 weights, HWIO (BN2 scale folded)
    # b2_ref : (1, Pm)          f32  BN2 shift
    # w3_ref : (Pm, Cp)         bf16 1x1 conv3 weights (BN3 scale folded)
    # b3_ref : (1, Cp)          f32  BN3 shift
    # out_ref: (1, H, W, Cp)    bf16
    # mid_ref: VMEM (H+2, W+2*_SUBLANE_PAD, Pm) bf16 scratch for conv2 taps
    _, H, W, Cp = x_ref.shape
    Pm = w1_ref.shape[1]
    PW = _SUBLANE_PAD

    # Aligned, lane-dense load; reused as the identity residual at the end.
    x = x_ref[0].reshape(H * W, Cp)

    # ---- conv1 (1x1) + BN1 + ReLU : one MXU matmul, K = Cp ------------------
    a1 = jnp.dot(x, w1_ref[...], preferred_element_type=jnp.float32)
    m1 = jnp.maximum(a1 + b1_ref[...], 0.0).astype(jnp.bfloat16)

    # ---- conv2 (3x3, stride 1, SAME) + BN2 + ReLU ---------------------------
    # Stage m1 once into the scratch at an aligned (row 1, col 16) offset.
    # The 1-px halo ring is never written (it may hold stale VMEM) and is
    # zeroed after load via jnp.where masks, so there are no masked stores and
    # no border-zeroing stores at all.
    mid_ref[1:1 + H, PW:PW + W, :] = m1.reshape(H, W, Pm)

    yv = jax.lax.broadcasted_iota(jnp.int32, (H, W, Pm), 0)
    xv = jax.lax.broadcasted_iota(jnp.int32, (H, W, Pm), 1)
    y_ok = {0: yv >= 1, 1: None, 2: yv < H - 1}   # source row y+ky-1 in range
    x_ok = {0: xv >= 1, 1: None, 2: xv < W - 1}   # source col x+kx-1 in range

    # 9 accumulating K=Pm matmuls into one f32 accumulator (no im2col patch).
    a2 = jnp.zeros((H * W, Pm), jnp.float32)
    for ky in range(3):
        for kx in range(3):
            s = mid_ref[ky:ky + H, PW + kx - 1:PW + kx - 1 + W, :]
            mask = y_ok[ky]
            if x_ok[kx] is not None:
                mask = x_ok[kx] if mask is None else (mask & x_ok[kx])
            if mask is not None:
                s = jnp.where(mask, s, jnp.zeros_like(s))
            a2 = a2 + jnp.dot(s.reshape(H * W, Pm), w2_ref[ky, kx],
                              preferred_element_type=jnp.float32)
    m2 = jnp.maximum(a2 + b2_ref[...], 0.0).astype(jnp.bfloat16)

    # ---- conv3 (1x1) + BN3 + identity residual + ReLU -----------------------
    a3 = jnp.dot(m2, w3_ref[...], preferred_element_type=jnp.float32)
    out = jnp.maximum(a3 + b3_ref[...] + x.astype(jnp.float32), 0.0)
    out_ref[...] = out.reshape(1, H, W, Cp).astype(out_ref.dtype)


def _round_up(x, m):
    return (x + m - 1) // m * m


# ----------------------------------------------------------------------------
# Wrapper: NCHW in, BN folding, channel padding, pallas_call plumbing.
# ----------------------------------------------------------------------------
@jax.jit
def bottleneck_forward(x_nchw, params):
    (w1, g1, be1, m1, v1,
     w2, g2, be2, m2, v2,
     w3, g3, be3, m3, v3) = params
    eps = 1e-5

    Pl_ = w1.shape[0]          # planes
    Cin = w1.shape[1]          # inplanes
    Cout = w3.shape[0]         # planes * expansion
    assert Cin == Cout, "identity residual (downsample=None) needs Cin == Cout"

    # Fold BN (inference mode) into conv-weight scale + additive shift.
    s1 = g1 / jnp.sqrt(v1 + eps); b1 = be1 - m1 * s1
    s2 = g2 / jnp.sqrt(v2 + eps); b2 = be2 - m2 * s2
    s3 = g3 / jnp.sqrt(v3 + eps); b3 = be3 - m3 * s3

    Cp = _round_up(max(Cin, Cout), _LANE)    # padded in/out channels
    Pm = _round_up(Pl_, _LANE)               # padded mid channels

    # conv1: OIHW (Pl, Cin, 1, 1) -> (Cin, Pl), fold scale, pad, bf16.
    w1_m = jnp.transpose(w1[:, :, 0, 0], (1, 0)) * s1[None, :]
    w1_p = jnp.zeros((Cp, Pm), jnp.float32).at[:Cin, :Pl_].set(w1_m)
    w1_p = w1_p.astype(jnp.bfloat16)
    b1_p = jnp.zeros((1, Pm), jnp.float32).at[0, :Pl_].set(b1)

    # conv2: OIHW (Pl, Pl, 3, 3) -> HWIO (3, 3, Pm, Pm), fold scale, pad, bf16.
    w2_hwio = jnp.transpose(w2, (2, 3, 1, 0)) * s2[None, None, None, :]
    w2_p = jnp.zeros((3, 3, Pm, Pm), jnp.float32).at[:, :, :Pl_, :Pl_].set(w2_hwio)
    w2_p = w2_p.astype(jnp.bfloat16)
    b2_p = jnp.zeros((1, Pm), jnp.float32).at[0, :Pl_].set(b2)

    # conv3: OIHW (Cout, Pl, 1, 1) -> (Pl, Cout), fold scale, pad, bf16.
    w3_m = jnp.transpose(w3[:, :, 0, 0], (1, 0)) * s3[None, :]
    w3_p = jnp.zeros((Pm, Cp), jnp.float32).at[:Pl_, :Cout].set(w3_m)
    w3_p = w3_p.astype(jnp.bfloat16)
    b3_p = jnp.zeros((1, Cp), jnp.float32).at[0, :Cout].set(b3)

    # Cast to bf16 FIRST, then NCHW -> NHWC and channel pad (halves wrapper
    # traffic).  No spatial padding is needed: conv2's halo is handled inside
    # the kernel.
    x_nhwc = jnp.transpose(x_nchw.astype(jnp.bfloat16), (0, 2, 3, 1))
    N, H, W, _ = x_nhwc.shape
    x_p = jnp.pad(x_nhwc, ((0, 0), (0, 0), (0, 0), (0, Cp - Cin)))

    out_p = pl.pallas_call(
        _bottleneck_kernel,
        out_shape=jax.ShapeDtypeStruct((N, H, W, Cp), jnp.bfloat16),
        grid_spec=pltpu.PrefetchScalarGridSpec(
            num_scalar_prefetch=0,
            grid=(N,),
            in_specs=[
                pl.BlockSpec((1, H, W, Cp), lambda n: (n, 0, 0, 0)),
                pl.BlockSpec((Cp, Pm), lambda n: (0, 0)),
                pl.BlockSpec((1, Pm), lambda n: (0, 0)),
                pl.BlockSpec((3, 3, Pm, Pm), lambda n: (0, 0, 0, 0)),
                pl.BlockSpec((1, Pm), lambda n: (0, 0)),
                pl.BlockSpec((Pm, Cp), lambda n: (0, 0)),
                pl.BlockSpec((1, Cp), lambda n: (0, 0)),
            ],
            out_specs=pl.BlockSpec((1, H, W, Cp), lambda n: (n, 0, 0, 0)),
            scratch_shapes=[
                pltpu.VMEM((H + 2, W + 2 * _SUBLANE_PAD, Pm), jnp.bfloat16)],
        ),
        compiler_params=pltpu.CompilerParams(
            dimension_semantics=("parallel",),
            vmem_limit_bytes=48 * 1024 * 1024),
    )(x_p, w1_p, b1_p, w2_p, b2_p, w3_p, b3_p)

    # Strip channel padding, back to NCHW (bf16) to match the PyTorch layout.
    # When chaining blocks, prefer to keep the padded NHWC bf16 format instead.
    return jnp.transpose(out_p[..., :Cout], (0, 3, 1, 2))


# ----------------------------------------------------------------------------
# Pure-JAX reference (inference-mode BN), for correctness check.
# ----------------------------------------------------------------------------
def bottleneck_reference(x, params):
    (w1, g1, be1, m1, v1,
     w2, g2, be2, m2, v2,
     w3, g3, be3, m3, v3) = params
    eps = 1e-5

    def conv(x, w, pad):
        return jax.lax.conv_general_dilated(
            x, w, window_strides=(1, 1), padding=pad,
            dimension_numbers=("NCHW", "OIHW", "NCHW"))

    def bn(x, g, b, m, v):
        return ((x - m[None, :, None, None])
                / jnp.sqrt(v[None, :, None, None] + eps)
                * g[None, :, None, None] + b[None, :, None, None])

    out = jax.nn.relu(bn(conv(x, w1, "VALID"), g1, be1, m1, v1))
    out = jax.nn.relu(bn(conv(out, w2, "SAME"), g2, be2, m2, v2))
    out = bn(conv(out, w3, "VALID"), g3, be3, m3, v3)
    return jax.nn.relu(out + x)


if __name__ == "__main__":
    # Shapes consistent with Bottleneck(inplanes=planes*4, planes, stride=1,
    # downsample=None): batch=2, planes=8 -> inplanes=Cout=32, spatial=16.
    N, planes, H, W = 2, 8, 16, 16
    expansion = 4
    inplanes = planes * expansion

    key = jax.random.PRNGKey(0)
    ks = jax.random.split(key, 12)

    x = jax.random.normal(ks[0], (N, inplanes, H, W), jnp.float32)

    w1 = jax.random.normal(ks[1], (planes, inplanes, 1, 1), jnp.float32) * 0.1
    w2 = jax.random.normal(ks[2], (planes, planes, 3, 3), jnp.float32) * 0.1
    w3 = jax.random.normal(ks[3], (inplanes, planes, 1, 1), jnp.float32) * 0.1

    def bn_params(k, c):
        k1, k2, k3, k4 = jax.random.split(k, 4)
        g = 1.0 + 0.1 * jax.random.normal(k1, (c,), jnp.float32)
        b = 0.1 * jax.random.normal(k2, (c,), jnp.float32)
        m = 0.05 * jax.random.normal(k3, (c,), jnp.float32)
        v = 1.0 + 0.2 * jnp.abs(jax.random.normal(k4, (c,), jnp.float32))
        return g, b, m, v

    g1, be1, m1, v1 = bn_params(ks[4], planes)
    g2, be2, m2, v2 = bn_params(ks[5], planes)
    g3, be3, m3, v3 = bn_params(ks[6], inplanes)

    params = (w1, g1, be1, m1, v1,
              w2, g2, be2, m2, v2,
              w3, g3, be3, m3, v3)

    out = jax.block_until_ready(bottleneck_forward(x, params))
    ref = bottleneck_reference(x, params)

    assert out.shape == (N, inplanes, H, W)
    out_f32 = out.astype(jnp.float32)
    max_err = jnp.max(jnp.abs(out_f32 - ref))
    # bf16 activations / weights / output with f32 accumulation.
    assert jnp.allclose(out_f32, ref, atol=4e-2, rtol=4e-2), (
        f"max abs err = {max_err}")

    print("KERNEL_OK")
</pallas_src>

<mosaic_0001>
module attributes {stable_mosaic.version = 11 : i64} {
  func.func @_bottleneck_kernel(%arg0: i32, %arg1: memref<1x16x16x128xbf16, #tpu.memory_space<vmem>>, %arg2: memref<128x128xbf16, #tpu.memory_space<vmem>>, %arg3: memref<1x128xf32, #tpu.memory_space<vmem>>, %arg4: memref<3x3x128x128xbf16, #tpu.memory_space<vmem>>, %arg5: memref<1x128xf32, #tpu.memory_space<vmem>>, %arg6: memref<128x128xbf16, #tpu.memory_space<vmem>>, %arg7: memref<1x128xf32, #tpu.memory_space<vmem>>, %arg8: memref<1x16x16x128xbf16, #tpu.memory_space<vmem>>, %arg9: memref<18x48x128xbf16, #tpu.memory_space<vmem>>) attributes {dimension_semantics = [#tpu.dimension_semantics<parallel>], iteration_bounds = array<i64: 2>, scalar_prefetch = 0 : i64, scratch_operands = 1 : i64, tpu.core_type = #tpu.core_type<tc>, window_params = [{transform_indices = @transform_0, window_bounds = array<i64: 1, 16, 16, 128>}, {pipeline_mode = #tpu.pipeline_mode<synchronous>, transform_indices = @transform_1, window_bounds = array<i64: 128, 128>}, {pipeline_mode = #tpu.pipeline_mode<synchronous>, transform_indices = @transform_2, window_bounds = array<i64: 1, 128>}, {pipeline_mode = #tpu.pipeline_mode<synchronous>, transform_indices = @transform_3, window_bounds = array<i64: 3, 3, 128, 128>}, {pipeline_mode = #tpu.pipeline_mode<synchronous>, transform_indices = @transform_4, window_bounds = array<i64: 1, 128>}, {pipeline_mode = #tpu.pipeline_mode<synchronous>, transform_indices = @transform_5, window_bounds = array<i64: 128, 128>}, {pipeline_mode = #tpu.pipeline_mode<synchronous>, transform_indices = @transform_6, window_bounds = array<i64: 1, 128>}, {transform_indices = @transform_7, window_bounds = array<i64: 1, 16, 16, 128>}]} {
    %c0 = arith.constant 0 : index
    %c0_0 = arith.constant 0 : index
    %c0_1 = arith.constant 0 : index
    %c0_2 = arith.constant 0 : index
    %0 = vector.load %arg1[%c0, %c0_0, %c0_1, %c0_2] : memref<1x16x16x128xbf16, #tpu.memory_space<vmem>>, vector<1x16x16x128xbf16>
    %1 = vector.shape_cast %0 : vector<1x16x16x128xbf16> to vector<16x16x128xbf16>
    %2 = vector.shape_cast %1 : vector<16x16x128xbf16> to vector<256x128xbf16>
    %c0_3 = arith.constant 0 : index
    %c0_4 = arith.constant 0 : index
    %3 = vector.load %arg2[%c0_3, %c0_4] : memref<128x128xbf16, #tpu.memory_space<vmem>>, vector<128x128xbf16>
    %cst = arith.constant dense<0.000000e+00> : vector<256x128xf32>
    %4 = tpu.matmul %2, %3, %cst {dimension_numbers = #tpu.dot_dimension_numbers<[1], [0], [0], [1], [0, 0, 1, 1], [], []>} : vector<256x128xbf16>, vector<128x128xbf16>, vector<256x128xf32> -> vector<256x128xf32>
    %c0_5 = arith.constant 0 : index
    %c0_6 = arith.constant 0 : index
    %5 = vector.load %arg3[%c0_5, %c0_6] : memref<1x128xf32, #tpu.memory_space<vmem>>, vector<1x128xf32>
    %6 = vector.broadcast %5 : vector<1x128xf32> to vector<256x128xf32>
    %7 = arith.addf %4, %6 : vector<256x128xf32>
    %cst_7 = arith.constant 0.000000e+00 : f32
    %8 = vector.broadcast %cst_7 : f32 to vector<256x128xf32>
    %9 = arith.maximumf %7, %8 : vector<256x128xf32>
    %10 = arith.truncf %9 : vector<256x128xf32> to vector<256x128xbf16>
    %11 = vector.shape_cast %10 : vector<256x128xbf16> to vector<16x16x128xbf16>
    %c1 = arith.constant 1 : index
    %c16 = arith.constant 16 : index
    %c0_8 = arith.constant 0 : index
    %12 = vector.load %arg9[%c1, %c16, %c0_8] : memref<18x48x128xbf16, #tpu.memory_space<vmem>>, vector<16x16x128xbf16>
    tpu.vector_store %arg9[%c1, %c16, %c0_8], %11 {strides = array<i32>} : memref<18x48x128xbf16, #tpu.memory_space<vmem>>, vector<16x16x128xbf16>,
    %13 = tpu.iota {dimensions = array<i32: 0>} : vector<16x16x128xi32>
    %14 = tpu.iota {dimensions = array<i32: 1>} : vector<16x16x128xi32>
    %c1_i32 = arith.constant 1 : i32
    %15 = vector.broadcast %c1_i32 : i32 to vector<16x16x128xi32>
    %16 = arith.cmpi sge, %13, %15 : vector<16x16x128xi32>
    %c15_i32 = arith.constant 15 : i32
    %17 = vector.broadcast %c15_i32 : i32 to vector<16x16x128xi32>
    %18 = arith.cmpi slt, %13, %17 : vector<16x16x128xi32>
    %c1_i32_9 = arith.constant 1 : i32
    %19 = vector.broadcast %c1_i32_9 : i32 to vector<16x16x128xi32>
    %20 = arith.cmpi sge, %14, %19 : vector<16x16x128xi32>
    %c15_i32_10 = arith.constant 15 : i32
    %21 = vector.broadcast %c15_i32_10 : i32 to vector<16x16x128xi32>
    %22 = arith.cmpi slt, %14, %21 : vector<16x16x128xi32>
    %cst_11 = arith.constant 0.000000e+00 : f32
    %23 = vector.broadcast %cst_11 : f32 to vector<256x128xf32>
    %c0_12 = arith.constant 0 : index
    %c15 = arith.constant 15 : index
    %c0_13 = arith.constant 0 : index
    %24 = vector.load %arg9[%c0_12, %c15, %c0_13] : memref<18x48x128xbf16, #tpu.memory_space<vmem>>, vector<16x16x128xbf16>
    %25 = arith.andi %16, %20 : vector<16x16x128xi1>
    %cst_14 = arith.constant 0.000000e+00 : bf16
    %26 = vector.broadcast %cst_14 : bf16 to vector<16x16x128xbf16>
    %27 = arith.select %25, %24, %26 : vector<16x16x128xi1>, vector<16x16x128xbf16>
    %28 = vector.shape_cast %27 : vector<16x16x128xbf16> to vector<256x128xbf16>
    %c0_15 = arith.constant 0 : index
    %c0_16 = arith.constant 0 : index
    %c0_17 = arith.constant 0 : index
    %c0_18 = arith.constant 0 : index
    %29 = vector.load %arg4[%c0_15, %c0_16, %c0_17, %c0_18] : memref<3x3x128x128xbf16, #tpu.memory_space<vmem>>, vector<1x1x128x128xbf16>
    %30 = vector.shape_cast %29 : vector<1x1x128x128xbf16> to vector<128x128xbf16>
    %cst_19 = arith.constant dense<0.000000e+00> : vector<256x128xf32>
    %31 = tpu.matmul %28, %30, %cst_19 {dimension_numbers = #tpu.dot_dimension_numbers<[1], [0], [0], [1], [0, 0, 1, 1], [], []>} : vector<256x128xbf16>, vector<128x128xbf16>, vector<256x128xf32> -> vector<256x128xf32>
    %32 = arith.addf %23, %31 : vector<256x128xf32>
    %c0_20 = arith.constant 0 : index
    %c16_21 = arith.constant 16 : index
    %c0_22 = arith.constant 0 : index
    %33 = vector.load %arg9[%c0_20, %c16_21, %c0_22] : memref<18x48x128xbf16, #tpu.memory_space<vmem>>, vector<16x16x128xbf16>
    %cst_23 = arith.constant 0.000000e+00 : bf16
    %34 = vector.broadcast %cst_23 : bf16 to vector<16x16x128xbf16>
    %35 = arith.select %16, %33, %34 : vector<16x16x128xi1>, vector<16x16x128xbf16>
    %36 = vector.shape_cast %35 : vector<16x16x128xbf16> to vector<256x128xbf16>
    %c0_24 = arith.constant 0 : index
    %c1_25 = arith.constant 1 : index
    %c0_26 = arith.constant 0 : index
    %c0_27 = arith.constant 0 : index
    %37 = vector.load %arg4[%c0_24, %c1_25, %c0_26, %c0_27] : memref<3x3x128x128xbf16, #tpu.memory_space<vmem>>, vector<1x1x128x128xbf16>
    %38 = vector.shape_cast %37 : vector<1x1x128x128xbf16> to vector<128x128xbf16>
    %cst_28 = arith.constant dense<0.000000e+00> : vector<256x128xf32>
    %39 = tpu.matmul %36, %38, %cst_28 {dimension_numbers = #tpu.dot_dimension_numbers<[1], [0], [0], [1], [0, 0, 1, 1], [], []>} : vector<256x128xbf16>, vector<128x128xbf16>, vector<256x128xf32> -> vector<256x128xf32>
    %40 = arith.addf %32, %39 : vector<256x128xf32>
    %c0_29 = arith.constant 0 : index
    %c17 = arith.constant 17 : index
    %c0_30 = arith.constant 0 : index
    %41 = vector.load %arg9[%c0_29, %c17, %c0_30] : memref<18x48x128xbf16, #tpu.memory_space<vmem>>, vector<16x16x128xbf16>
    %42 = arith.andi %16, %22 : vector<16x16x128xi1>
    %cst_31 = arith.constant 0.000000e+00 : bf16
    %43 = vector.broadcast %cst_31 : bf16 to vector<16x16x128xbf16>
    %44 = arith.select %42, %41, %43 : vector<16x16x128xi1>, vector<16x16x128xbf16>
    %45 = vector.shape_cast %44 : vector<16x16x128xbf16> to vector<256x128xbf16>
    %c0_32 = arith.constant 0 : index
    %c2 = arith.constant 2 : index
    %c0_33 = arith.constant 0 : index
    %c0_34 = arith.constant 0 : index
    %46 = vector.load %arg4[%c0_32, %c2, %c0_33, %c0_34] : memref<3x3x128x128xbf16, #tpu.memory_space<vmem>>, vector<1x1x128x128xbf16>
    %47 = vector.shape_cast %46 : vector<1x1x128x128xbf16> to vector<128x128xbf16>
    %cst_35 = arith.constant dense<0.000000e+00> : vector<256x128xf32>
    %48 = tpu.matmul %45, %47, %cst_35 {dimension_numbers = #tpu.dot_dimension_numbers<[1], [0], [0], [1], [0, 0, 1, 1], [], []>} : vector<256x128xbf16>, vector<128x128xbf16>, vector<256x128xf32> -> vector<256x128xf32>
    %49 = arith.addf %40, %48 : vector<256x128xf32>
    %c1_36 = arith.constant 1 : index
    %c15_37 = arith.constant 15 : index
    %c0_38 = arith.constant 0 : index
    %50 = vector.load %arg9[%c1_36, %c15_37, %c0_38] : memref<18x48x128xbf16, #tpu.memory_space<vmem>>, vector<16x16x128xbf16>
    %cst_39 = arith.constant 0.000000e+00 : bf16
    %51 = vector.broadcast %cst_39 : bf16 to vector<16x16x128xbf16>
    %52 = arith.select %20, %50, %51 : vector<16x16x128xi1>, vector<16x16x128xbf16>
    %53 = vector.shape_cast %52 : vector<16x16x128xbf16> to vector<256x128xbf16>
    %c1_40 = arith.constant 1 : index
    %c0_41 = arith.constant 0 : index
    %c0_42 = arith.constant 0 : index
    %c0_43 = arith.constant 0 : index
    %54 = vector.load %arg4[%c1_40, %c0_41, %c0_42, %c0_43] : memref<3x3x128x128xbf16, #tpu.memory_space<vmem>>, vector<1x1x128x128xbf16>
    %55 = vector.shape_cast %54 : vector<1x1x128x128xbf16> to vector<128x128xbf16>
    %cst_44 = arith.constant dense<0.000000e+00> : vector<256x128xf32>
    %56 = tpu.matmul %53, %55, %cst_44 {dimension_numbers = #tpu.dot_dimension_numbers<[1], [0], [0], [1], [0, 0, 1, 1], [], []>} : vector<256x128xbf16>, vector<128x128xbf16>, vector<256x128xf32> -> vector<256x128xf32>
    %57 = arith.addf %49, %56 : vector<256x128xf32>
    %c1_45 = arith.constant 1 : index
    %c16_46 = arith.constant 16 : index
    %c0_47 = arith.constant 0 : index
    %58 = vector.load %arg9[%c1_45, %c16_46, %c0_47] : memref<18x48x128xbf16, #tpu.memory_space<vmem>>, vector<16x16x128xbf16>
    %59 = vector.shape_cast %58 : vector<16x16x128xbf16> to vector<256x128xbf16>
    %c1_48 = arith.constant 1 : index
    %c1_49 = arith.constant 1 : index
    %c0_50 = arith.constant 0 : index
    %c0_51 = arith.constant 0 : index
    %60 = vector.load %arg4[%c1_48, %c1_49, %c0_50, %c0_51] : memref<3x3x128x128xbf16, #tpu.memory_space<vmem>>, vector<1x1x128x128xbf16>
    %61 = vector.shape_cast %60 : vector<1x1x128x128xbf16> to vector<128x128xbf16>
    %cst_52 = arith.constant dense<0.000000e+00> : vector<256x128xf32>
    %62 = tpu.matmul %59, %61, %cst_52 {dimension_numbers = #tpu.dot_dimension_numbers<[1], [0], [0], [1], [0, 0, 1, 1], [], []>} : vector<256x128xbf16>, vector<128x128xbf16>, vector<256x128xf32> -> vector<256x128xf32>
    %63 = arith.addf %57, %62 : vector<256x128xf32>
    %c1_53 = arith.constant 1 : index
    %c17_54 = arith.constant 17 : index
    %c0_55 = arith.constant 0 : index
    %64 = vector.load %arg9[%c1_53, %c17_54, %c0_55] : memref<18x48x128xbf16, #tpu.memory_space<vmem>>, vector<16x16x128xbf16>
    %cst_56 = arith.constant 0.000000e+00 : bf16
    %65 = vector.broadcast %cst_56 : bf16 to vector<16x16x128xbf16>
    %66 = arith.select %22, %64, %65 : vector<16x16x128xi1>, vector<16x16x128xbf16>
    %67 = vector.shape_cast %66 : vector<16x16x128xbf16> to vector<256x128xbf16>
    %c1_57 = arith.constant 1 : index
    %c2_58 = arith.constant 2 : index
    %c0_59 = arith.constant 0 : index
    %c0_60 = arith.constant 0 : index
    %68 = vector.load %arg4[%c1_57, %c2_58, %c0_59, %c0_60] : memref<3x3x128x128xbf16, #tpu.memory_space<vmem>>, vector<1x1x128x128xbf16>
    %69 = vector.shape_cast %68 : vector<1x1x128x128xbf16> to vector<128x128xbf16>
    %cst_61 = arith.constant dense<0.000000e+00> : vector<256x128xf32>
    %70 = tpu.matmul %67, %69, %cst_61 {dimension_numbers = #tpu.dot_dimension_numbers<[1], [0], [0], [1], [0, 0, 1, 1], [], []>} : vector<256x128xbf16>, vector<128x128xbf16>, vector<256x128xf32> -> vector<256x128xf32>
    %71 = arith.addf %63, %70 : vector<256x128xf32>
    %c2_62 = arith.constant 2 : index
    %c15_63 = arith.constant 15 : index
    %c0_64 = arith.constant 0 : index
    %72 = vector.load %arg9[%c2_62, %c15_63, %c0_64] : memref<18x48x128xbf16, #tpu.memory_space<vmem>>, vector<16x16x128xbf16>
    %73 = arith.andi %18, %20 : vector<16x16x128xi1>
    %cst_65 = arith.constant 0.000000e+00 : bf16
    %74 = vector.broadcast %cst_65 : bf16 to vector<16x16x128xbf16>
    %75 = arith.select %73, %72, %74 : vector<16x16x128xi1>, vector<16x16x128xbf16>
    %76 = vector.shape_cast %75 : vector<16x16x128xbf16> to vector<256x128xbf16>
    %c2_66 = arith.constant 2 : index
    %c0_67 = arith.constant 0 : index
    %c0_68 = arith.constant 0 : index
    %c0_69 = arith.constant 0 : index
    %77 = vector.load %arg4[%c2_66, %c0_67, %c0_68, %c0_69] : memref<3x3x128x128xbf16, #tpu.memory_space<vmem>>, vector<1x1x128x128xbf16>
    %78 = vector.shape_cast %77 : vector<1x1x128x128xbf16> to vector<128x128xbf16>
    %cst_70 = arith.constant dense<0.000000e+00> : vector<256x128xf32>
    %79 = tpu.matmul %76, %78, %cst_70 {dimension_numbers = #tpu.dot_dimension_numbers<[1], [0], [0], [1], [0, 0, 1, 1], [], []>} : vector<256x128xbf16>, vector<128x128xbf16>, vector<256x128xf32> -> vector<256x128xf32>
    %80 = arith.addf %71, %79 : vector<256x128xf32>
    %c2_71 = arith.constant 2 : index
    %c16_72 = arith.constant 16 : index
    %c0_73 = arith.constant 0 : index
    %81 = vector.load %arg9[%c2_71, %c16_72, %c0_73] : memref<18x48x128xbf16, #tpu.memory_space<vmem>>, vector<16x16x128xbf16>
    %cst_74 = arith.constant 0.000000e+00 : bf16
    %82 = vector.broadcast %cst_74 : bf16 to vector<16x16x128xbf16>
    %83 = arith.select %18, %81, %82 : vector<16x16x128xi1>, vector<16x16x128xbf16>
    %84 = vector.shape_cast %83 : vector<16x16x128xbf16> to vector<256x128xbf16>
    %c2_75 = arith.constant 2 : index
    %c1_76 = arith.constant 1 : index
    %c0_77 = arith.constant 0 : index
    %c0_78 = arith.constant 0 : index
    %85 = vector.load %arg4[%c2_75, %c1_76, %c0_77, %c0_78] : memref<3x3x128x128xbf16, #tpu.memory_space<vmem>>, vector<1x1x128x128xbf16>
    %86 = vector.shape_cast %85 : vector<1x1x128x128xbf16> to vector<128x128xbf16>
    %cst_79 = arith.constant dense<0.000000e+00> : vector<256x128xf32>
    %87 = tpu.matmul %84, %86, %cst_79 {dimension_numbers = #tpu.dot_dimension_numbers<[1], [0], [0], [1], [0, 0, 1, 1], [], []>} : vector<256x128xbf16>, vector<128x128xbf16>, vector<256x128xf32> -> vector<256x128xf32>
    %88 = arith.addf %80, %87 : vector<256x128xf32>
    %c2_80 = arith.constant 2 : index
    %c17_81 = arith.constant 17 : index
    %c0_82 = arith.constant 0 : index
    %89 = vector.load %arg9[%c2_80, %c17_81, %c0_82] : memref<18x48x128xbf16, #tpu.memory_space<vmem>>, vector<16x16x128xbf16>
    %90 = arith.andi %18, %22 : vector<16x16x128xi1>
    %cst_83 = arith.constant 0.000000e+00 : bf16
    %91 = vector.broadcast %cst_83 : bf16 to vector<16x16x128xbf16>
    %92 = arith.select %90, %89, %91 : vector<16x16x128xi1>, vector<16x16x128xbf16>
    %93 = vector.shape_cast %92 : vector<16x16x128xbf16> to vector<256x128xbf16>
    %c2_84 = arith.constant 2 : index
    %c2_85 = arith.constant 2 : index
    %c0_86 = arith.constant 0 : index
    %c0_87 = arith.constant 0 : index
    %94 = vector.load %arg4[%c2_84, %c2_85, %c0_86, %c0_87] : memref<3x3x128x128xbf16, #tpu.memory_space<vmem>>, vector<1x1x128x128xbf16>
    %95 = vector.shape_cast %94 : vector<1x1x128x128xbf16> to vector<128x128xbf16>
    %cst_88 = arith.constant dense<0.000000e+00> : vector<256x128xf32>
    %96 = tpu.matmul %93, %95, %cst_88 {dimension_numbers = #tpu.dot_dimension_numbers<[1], [0], [0], [1], [0, 0, 1, 1], [], []>} : vector<256x128xbf16>, vector<128x128xbf16>, vector<256x128xf32> -> vector<256x128xf32>
    %97 = arith.addf %88, %96 : vector<256x128xf32>
    %c0_89 = arith.constant 0 : index
    %c0_90 = arith.constant 0 : index
    %98 = vector.load %arg5[%c0_89, %c0_90] : memref<1x128xf32, #tpu.memory_space<vmem>>, vector<1x128xf32>
    %99 = vector.broadcast %98 : vector<1x128xf32> to vector<256x128xf32>
    %100 = arith.addf %97, %99 : vector<256x128xf32>
    %cst_91 = arith.constant 0.000000e+00 : f32
    %101 = vector.broadcast %cst_91 : f32 to vector<256x128xf32>
    %102 = arith.maximumf %100, %101 : vector<256x128xf32>
    %103 = arith.truncf %102 : vector<256x128xf32> to vector<256x128xbf16>
    %c0_92 = arith.constant 0 : index
    %c0_93 = arith.constant 0 : index
    %104 = vector.load %arg6[%c0_92, %c0_93] : memref<128x128xbf16, #tpu.memory_space<vmem>>, vector<128x128xbf16>
    %cst_94 = arith.constant dense<0.000000e+00> : vector<256x128xf32>
    %105 = tpu.matmul %103, %104, %cst_94 {dimension_numbers = #tpu.dot_dimension_numbers<[1], [0], [0], [1], [0, 0, 1, 1], [], []>} : vector<256x128xbf16>, vector<128x128xbf16>, vector<256x128xf32> -> vector<256x128xf32>
    %c0_95 = arith.constant 0 : index
    %c0_96 = arith.constant 0 : index
    %106 = vector.load %arg7[%c0_95, %c0_96] : memref<1x128xf32, #tpu.memory_space<vmem>>, vector<1x128xf32>
    %107 = vector.broadcast %106 : vector<1x128xf32> to vector<256x128xf32>
    %108 = arith.addf %105, %107 : vector<256x128xf32>
    %109 = arith.extf %2 : vector<256x128xbf16> to vector<256x128xf32>
    %110 = arith.addf %108, %109 : vector<256x128xf32>
    %cst_97 = arith.constant 0.000000e+00 : f32
    %111 = vector.broadcast %cst_97 : f32 to vector<256x128xf32>
    %112 = arith.maximumf %110, %111 : vector<256x128xf32>
    %113 = vector.shape_cast %112 : vector<256x128xf32> to vector<1x16x16x128xf32>
    %114 = arith.truncf %113 : vector<1x16x16x128xf32> to vector<1x16x16x128xbf16>
    %c0_98 = arith.constant 0 : index
    %c0_99 = arith.constant 0 : index
    %c0_100 = arith.constant 0 : index
    %c0_101 = arith.constant 0 : index
    %115 = vector.load %arg8[%c0_98, %c0_99, %c0_100, %c0_101] : memref<1x16x16x128xbf16, #tpu.memory_space<vmem>>, vector<1x16x16x128xbf16>
    tpu.vector_store %arg8[%c0_98, %c0_99, %c0_100, %c0_101], %114 {strides = array<i32>} : memref<1x16x16x128xbf16, #tpu.memory_space<vmem>>, vector<1x16x16x128xbf16>,
    return
  }
  func.func @transform_0(%arg0: i32) -> (i32, i32, i32, i32) {
    %c0_i32 = arith.constant 0 : i32
    %c0_i32_0 = arith.constant 0 : i32
    %c0_i32_1 = arith.constant 0 : i32
    %c0_i32_2 = arith.constant 0 : i32
    return %arg0, %c0_i32, %c0_i32_0, %c0_i32_1 : i32, i32, i32, i32
  }
  func.func @transform_1(%arg0: i32) -> (i32, i32) {
    %c0_i32 = arith.constant 0 : i32
    %c0_i32_0 = arith.constant 0 : i32
    %c0_i32_1 = arith.constant 0 : i32
    return %c0_i32, %c0_i32_0 : i32, i32
  }
  func.func @transform_2(%arg0: i32) -> (i32, i32) {
    %c0_i32 = arith.constant 0 : i32
    %c0_i32_0 = arith.constant 0 : i32
    %c0_i32_1 = arith.constant 0 : i32
    return %c0_i32, %c0_i32_0 : i32, i32
  }
  func.func @transform_3(%arg0: i32) -> (i32, i32, i32, i32) {
    %c0_i32 = arith.constant 0 : i32
    %c0_i32_0 = arith.constant 0 : i32
    %c0_i32_1 = arith.constant 0 : i32
    %c0_i32_2 = arith.constant 0 : i32
    %c0_i32_3 = arith.constant 0 : i32
    return %c0_i32, %c0_i32_0, %c0_i32_1, %c0_i32_2 : i32, i32, i32, i32
  }
  func.func @transform_4(%arg0: i32) -> (i32, i32) {
    %c0_i32 = arith.constant 0 : i32
    %c0_i32_0 = arith.constant 0 : i32
    %c0_i32_1 = arith.constant 0 : i32
    return %c0_i32, %c0_i32_0 : i32, i32
  }
  func.func @transform_5(%arg0: i32) -> (i32, i32) {
    %c0_i32 = arith.constant 0 : i32
    %c0_i32_0 = arith.constant 0 : i32
    %c0_i32_1 = arith.constant 0 : i32
    return %c0_i32, %c0_i32_0 : i32, i32
  }
  func.func @transform_6(%arg0: i32) -> (i32, i32) {
    %c0_i32 = arith.constant 0 : i32
    %c0_i32_0 = arith.constant 0 : i32
    %c0_i32_1 = arith.constant 0 : i32
    return %c0_i32, %c0_i32_0 : i32, i32
  }
  func.func @transform_7(%arg0: i32) -> (i32, i32, i32, i32) {
    %c0_i32 = arith.constant 0 : i32
    %c0_i32_0 = arith.constant 0 : i32
    %c0_i32_1 = arith.constant 0 : i32
    %c0_i32_2 = arith.constant 0 : i32
    return %arg0, %c0_i32, %c0_i32_0, %c0_i32_1 : i32, i32, i32, i32
  }
}

</mosaic_0001>

<bundles_post_ra>
// kernel: bottleneck_forward.1
= control target key start
LH: loop header
LB: loop body
LE: loop exit
PB: predicated region body
PF: predicated region fallthrough
CT: control target
= control target key end

     0   :  { %s7057_s24 = smov 0   ;;  %s8418_s0 = inlined_call_operand.vmem [shape: bf16[2,16,16,128], index: 0, kind: input, shape index: {}]   ;;  %s8419_s1 = inlined_call_operand.vmem [shape: bf16[128,128], index: 1, kind: input, shape index: {}]   ;;  %s8420_s2 = inlined_call_operand.vmem [shape: f32[1,128], index: 2, kind: input, shape index: {}]   ;;  %s8421_s3 = inlined_call_operand.vmem [shape: bf16[3,3,128,128], index: 3, kind: input, shape index: {}]   ;;  %s8422_s4 = inlined_call_operand.vmem [shape: f32[1,128], index: 4, kind: input, shape index: {}]   ;;  %s8423_s5 = inlined_call_operand.vmem [shape: bf16[128,128], index: 5, kind: input, shape index: {}]   ;;  %s8424_s6 = inlined_call_operand.vmem [shape: f32[1,128], index: 6, kind: input, shape index: {}]   ;;  %s8425_s7 = inlined_call_operand.vmem [shape: bf16[2,16,16,128], index: 7, kind: output, shape index: {}]  }
   0x1 LB: > { %s5372_s25 = sadd.s32 4294967295, %s7012_s24   ;;  %p5376_p0 = scmp.ge.s32.totalorder %s7012_s24, 1  ;;  %s7012_s24 = sphi %s7057_s24, %s17_s24  }
   0x2   : > { %p237_p1 = scmp.lt.s32.totalorder %s7012_s24, 3 }
   0x4   : > { %p238_p2 = pnand %p5376_p0, %p237_p1 }
   0x5   : > { %v6860_v0 = vld [vmem:[%s8419_s1] sm:$0xff] (!%p238_p2)   ;;  %p269_p3 = scmp.lt.s32.totalorder (!%p238_p2), %s5372_s25, 1  ;;  %v6861_v1 = vld [vmem:[%s8419_s1 + $0x8] sm:$0xff] (!%p238_p2)   ;;  %v6862_v2 = vld [vmem:[%s8419_s1 + $0x10] sm:$0xff] (!%p238_p2)   ;;  %v707_v30 = vlaneseq (!%p238_p2)  ;;  %v8426_v31 = vmov (!%p238_p2), 0   ;;  %vm7015_vm0 = vmmov (!%p238_p2), 1  }
   0x6   : > { %241 = sbr.rel (%p238_p2) target bundleno = 1092 (0x444), region = 48  ;;  %6049 = vmatprep.subr.bf16.mxu0 (!%p238_p2), %v6860_v0  ;;  %v6863_v3 = vld [vmem:[%s8419_s1 + $0x18] sm:$0xff] (!%p238_p2)   ;;  %v6864_v5 = vld [vmem:[%s8419_s1 + $0x20] sm:$0xff] (!%p238_p2)   ;;  %v6865_v6 = vld [vmem:[%s8419_s1 + $0x28] sm:$0xff] (!%p238_p2)   ;;  %vm7016_vm6 = vmmov (!%p238_p2), 0  }
   0x7   : > { %6050 = vmatpush3.bf16.msra.mxu0 (!%p238_p2), %v6860_v0  ;;  %v6866_v7 = vld [vmem:[%s8419_s1 + $0x30] sm:$0xff] (!%p238_p2)   ;;  %v6867_v8 = vld [vmem:[%s8419_s1 + $0x38] sm:$0xff] (!%p238_p2)   ;;  %v6884_v11 = vld [vmem:[%s8421_s3 + $0x40] sm:$0xff] (!%p238_p2)   ;;  %v7137_v33 = vshrl.u32 (!%p238_p2), %v707_v30, 7  ;;  %vm814_vm10 = vsmask.f32 (!%p238_p2), 256 }
   0x8   : > { %6051 = vmatprep.subr.bf16.mxu0 (!%p238_p2), %v6861_v1  ;;  %v6885_v12 = vld [vmem:[%s8421_s3 + $0x48] sm:$0xff] (!%p238_p2)   ;;  %v6886_v15 = vld [vmem:[%s8421_s3 + $0x50] sm:$0xff] (!%p238_p2)   ;;  %v6887_v16 = vld [vmem:[%s8421_s3 + $0x58] sm:$0xff] (!%p238_p2)  }
   0x9   : > { %v6888_v28 = vld [vmem:[%s8421_s3 + $0x60] sm:$0xff] (!%p238_p2)   ;;  %v6889_v29 = vld [vmem:[%s8421_s3 + $0x68] sm:$0xff] (!%p238_p2)   ;;  %v6890_v32 = vld [vmem:[%s8421_s3 + $0x70] sm:$0xff] (!%p238_p2)   ;;  %v709_v34 = vadd.s32 (!%p238_p2), 8, %v7137_v33  ;;  %vm710_vm4 = vcmp.ge.s32.totalorder (!%p238_p2), %v7137_v33, 1 }
   0xa   : > { %v6891_v35 = vld [vmem:[%s8421_s3 + $0x78] sm:$0xff] (!%p238_p2)   ;;  %vm753_vm1 = vmpackc.low (!%p238_p2), %vm7015_vm0, %vm7015_vm0  ;;  %v7153_v39 = vld [vmem:[%s8421_s3 + $0xc0] sm:$0xff] (!%p238_p2)  }
   0xb   : > { %6052 = vmatpush3.bf16.msra.mxu0 (!%p238_p2), %v6861_v1  ;;  %vm713_vm2 = vcmp.lt.s32.totalorder (!%p238_p2), %v709_v34, 15  ;;  %v7144_v36 = vsel (!%p238_p2), %vm753_vm1, 65537, %v8426_v31  ;;  %6577 = vmatprep.subr.bf16.mxu1 (!%p238_p2), %v7153_v39  ;;  %v6893_v40 = vld [vmem:[%s8421_s3 + $0xc8] sm:$0xff] (!%p238_p2)   ;;  %v6894_v41 = vld [vmem:[%s8421_s3 + $0xd0] sm:$0xff] (!%p238_p2)   ;;  %v6895_v42 = vld [vmem:[%s8421_s3 + $0xd8] sm:$0xff] (!%p238_p2)  }
   0xc   : > { %6053 = vmatprep.subr.bf16.mxu0 (!%p238_p2), %v6862_v2  ;;  %vm1529_vm3 = vmpackc.low (!%p238_p2), %vm713_vm2, %vm713_vm2  ;;  %6585 = vmatpush3.bf16.msra.mxu1 (!%p238_p2), %v7153_v39  ;;  %v6896_v43 = vld [vmem:[%s8421_s3 + $0xe0] sm:$0xff] (!%p238_p2)   ;;  %v6897_v44 = vld [vmem:[%s8421_s3 + $0xe8] sm:$0xff] (!%p238_p2)   ;;  %vm1590_vm1 = vsmask.f32 (!%p238_p2), 7424 }
   0xd   : > { %s8433_s25 = smov (!%p269_p3, %s5372_s25), 1  ;;  %v1533_v37 = vsel %vm1529_vm3, 65537, %v8426_v31  ;;  %6578 = vmatprep.subr.bf16.mxu1 %v6893_v40  ;;  %v6898_v45 = vld [vmem:[%s8421_s3] sm:$0xff]   ;;  %v6899_v46 = vld [vmem:[%s8421_s3 + $0xf0] sm:$0xff]   ;;  %v6901_v47 = vld [vmem:[%s8421_s3 + $0xf8] sm:$0xff]  }
   0xe   : > { %s5656_s9 = sshll.u32 %s8433_s25, 7  ;;  %v7148_v38 = vcombine.low %v7144_v36, %v1533_v37  ;;  %v7184_v48 = vld [vmem:[%s8421_s3 + $0x100] sm:$0xff]   ;;  %v6900_v1 = vld [vmem:[%s8421_s3 + $0x8] sm:$0xff]   ;;  %vm752_vm5 = vmpackc.low %vm710_vm4, %vm710_vm4 }
   0xf   : > { %s7082_s12 = scalar_lea.vmem %s8418_s0, %s5656_s9  ;;  %6054 = vmatpush3.bf16.msra.mxu0 %v6862_v2  ;;  %v7190_v49 = vld [vmem:[%s8420_s2] ss:$0 sm:$0xff]  ;;  %vm750_vm7 = vmpackc.low %vm7016_vm6, %vm7016_vm6  ;;  %v6908_v37 = vld [vmem:[%s8421_s3 + $0x28] sm:$0xff]   ;;  %s8356_s17 = scalar_lea.vmem %s8425_s7, %s5656_s9 }
  0x10   : > { %v282_v4 = vld [vmem:[%s7082_s12] sm:$0xff]   ;;  %6055 = vmatprep.subr.bf16.mxu0 %v6863_v3  ;;  %v284_v9 = vld [vmem:[%s7082_s12 + $0x8] sm:$0xff]   ;;  %v286_v10 = vld [vmem:[%s7082_s12 + $0x10] sm:$0xff]   ;;  %6586 = vmatpush3.bf16.msra.mxu1 %v6893_v40 }
  0x11   : > { %6065 = vmatprep.mubr.bf16.mxu0 %v282_v4  ;;  %v288_v13 = vld [vmem:[%s7082_s12 + $0x18] sm:$0xff]   ;;  %v290_v14 = vld [vmem:[%s7082_s12 + $0x20] sm:$0xff]   ;;  %v292_v17 = vld [vmem:[%s7082_s12 + $0x28] sm:$0xff]   ;;  %6579 = vmatprep.subr.bf16.mxu1 %v6894_v41 }
  0x12   : > { %v294_v18 = vld [vmem:[%s7082_s12 + $0x30] sm:$0xff]   ;;  %v296_v19 = vld [vmem:[%s7082_s12 + $0x38] sm:$0xff]   ;;  %v298_v20 = vld [vmem:[%s7082_s12 + $0x40] sm:$0xff]  }
  0x13   : > { %6056 = vmatpush3.bf16.msra.mxu0 %v6863_v3  ;;  %v300_v21 = vld [vmem:[%s7082_s12 + $0x48] sm:$0xff]   ;;  %v302_v22 = vld [vmem:[%s7082_s12 + $0x50] sm:$0xff]   ;;  %v304_v23 = vld [vmem:[%s7082_s12 + $0x58] sm:$0xff]  }
  0x14   : > { %6057 = vmatprep.subr.bf16.mxu0 %v6864_v5  ;;  %v306_v24 = vld [vmem:[%s7082_s12 + $0x60] sm:$0xff]   ;;  %v308_v25 = vld [vmem:[%s7082_s12 + $0x68] sm:$0xff]   ;;  %v310_v26 = vld [vmem:[%s7082_s12 + $0x70] sm:$0xff]   ;;  %6587 = vmatpush3.bf16.msra.mxu1 %v6894_v41 }
  0x15   : > { %v312_v27 = vld [vmem:[%s7082_s12 + $0x78] sm:$0xff]   ;;  %6580 = vmatprep.subr.bf16.mxu1 %v6895_v42 }
  0x17   : > { %6058 = vmatpush3.bf16.msra.mxu0 %v6864_v5 }
  0x18   : > { %6059 = vmatprep.subr.bf16.mxu0 %v6865_v6  ;;  %6588 = vmatpush3.bf16.msra.mxu1 %v6895_v42  ;;  %v754_v42 = vsel %vm750_vm7, 65537, %v8426_v31 }
  0x19   : > { %6581 = vmatprep.subr.bf16.mxu1 %v6896_v43 }
  0x1b   : > { %6060 = vmatpush3.bf16.msra.mxu0 %v6865_v6 }
  0x1c   : > { %6061 = vmatprep.subr.bf16.mxu0 %v6866_v7  ;;  %6589 = vmatpush3.bf16.msra.mxu1 %v6896_v43 }
  0x1d   : > { %6582 = vmatprep.subr.bf16.mxu1 %v6897_v44 }
  0x1f   : > { %6062 = vmatpush3.bf16.msra.mxu0 %v6866_v7 }
  0x20   : > { %6063 = vmatprep.subr.bf16.mxu0 %v6867_v8  ;;  %6590 = vmatpush3.bf16.msra.mxu1 %v6897_v44 }
  0x21   : > { %6583 = vmatprep.subr.bf16.mxu1 %v6899_v46 }
  0x23   : > { %6064 = vmatpush3.bf16.msra.mxu0 %v6867_v8 }
  0x24   : > { %6097 = vmatprep.subr.bf16.mxu0 %v6884_v11  ;;  %6591 = vmatpush3.bf16.msra.mxu1 %v6899_v46 }
  0x25   : > { %6584 = vmatprep.subr.bf16.mxu1 %v6901_v47 }
  0x26   : > { %6066 = vmatmul.mubr.bf16.vlgmr.msra.gmra.mrb[0].mxu0 %v284_v9  ;;  %v6902_v9 = vld [vmem:[%s8421_s3 + $0x10] sm:$0xff]  }
  0x27   : > { %6069 = vmatprep.mubr.bf16.mxu0 %v286_v10  ;;  %6098 = vmatpush3.bf16.msra.mxu0 %v6884_v11 }
  0x28   : > { %6099 = vmatprep.subr.bf16.mxu0 %v6885_v12  ;;  %6592 = vmatpush3.bf16.msra.mxu1 %v6901_v47 }
  0x29   : > { %6289 = vmatprep.subr.bf16.mxu1 %v7184_v48 }
  0x2b   : > { %6100 = vmatpush3.bf16.msra.mxu0 %v6885_v12 }
  0x2c   : > { %6101 = vmatprep.subr.bf16.mxu0 %v6886_v15 }
  0x2e   : > { %6070 = vmatmul.mubr.bf16.gmra.mrb[4].mxu0 %v288_v13 }
  0x2f   : > { %6073 = vmatprep.mubr.bf16.mxu0 %v290_v14  ;;  %6102 = vmatpush3.bf16.msra.mxu0 %v6886_v15 }
  0x30   : > { %6103 = vmatprep.subr.bf16.mxu0 %v6887_v16 }
  0x33   : > { %6104 = vmatpush3.bf16.msra.mxu0 %v6887_v16 }
  0x34   : > { %6105 = vmatprep.subr.bf16.mxu0 %v6888_v28 }
  0x36   : > { %6074 = vmatmul.mubr.bf16.gmra.mrb[8].mxu0 %v292_v17  ;;  %v756_v17 = vsel %vm752_vm5, 65537, %v8426_v31 }
  0x37   : > { %6077 = vmatprep.mubr.bf16.mxu0 %v294_v18  ;;  %6106 = vmatpush3.bf16.msra.mxu0 %v6888_v28  ;;  %v6904_v18 = vld [vmem:[%s8421_s3 + $0x18] sm:$0xff]  }
  0x38   : > { %6107 = vmatprep.subr.bf16.mxu0 %v6889_v29 }
  0x3b   : > { %6108 = vmatpush3.bf16.msra.mxu0 %v6889_v29 }
  0x3c   : > { %6109 = vmatprep.subr.bf16.mxu0 %v6890_v32 }
  0x3e   : > { %6078 = vmatmul.mubr.bf16.gmra.mrb[12].mxu0 %v296_v19 }
  0x3f   : > { %6081 = vmatprep.mubr.bf16.mxu0 %v298_v20  ;;  %6110 = vmatpush3.bf16.msra.mxu0 %v6890_v32 }
  0x40   : > { %6111 = vmatprep.subr.bf16.mxu0 %v6891_v35 }
  0x43   : > { %6112 = vmatpush3.bf16.msra.mxu0 %v6891_v35 }
  0x44   : > { %6145 = vmatprep.subr.bf16.mxu0 %v6898_v45 }
  0x46   : > { %6082 = vmatmul.mubr.bf16.gmra.mrb[16].mxu0 %v300_v21 }
  0x47   : > { %6085 = vmatprep.mubr.bf16.mxu0 %v302_v22 }
  0x4e   : > { %6086 = vmatmul.mubr.bf16.gmra.mrb[20].mxu0 %v304_v23  ;;  %v5407_v23 = vcombine.low %v756_v17, %v7144_v36  ;;  %v2079_v17 = vld [vmem:[#allocation2 + $0x120] sm:$0x80] }
  0x4f   : > { %6089 = vmatprep.mubr.bf16.mxu0 %v306_v24 }
  0x50   : > { %v772_v33 = vshll.u32 %v5407_v23, 16 }
  0x56   : > { %6090 = vmatmul.mubr.bf16.gmra.mrb[24].mxu0 %v308_v25 }
  0x57   : > { %6093 = vmatprep.mubr.bf16.mxu0 %v310_v26 }
  0x5e   : > { %6094 = vmatmul.mubr.bf16.gmra.mrb[28].mxu0 %v312_v27  ;;  %v6906_v27 = vld [vmem:[%s8421_s3 + $0x20] sm:$0xff]  }
  0x5f   : > { %6113 = vmatprep.mubr.bf16.mxu0 %v8426_v31 }
  0xf9   : > { %v6067_v50 = vpop.f32.mrb[0].mxu0 }
  0xfa   : > { %v524_v51 = vadd.f32 %v6067_v50, %v7190_v49  ;;  %v515_v52 = vpop.f32.mrb[1].mxu0 }
  0xfb   : > { %v516_v53 = vadd.f32 %v7190_v49, %v515_v52  ;;  %v6068_v54 = vpop.f32.mrb[2].mxu0  ;;  %v7256_v52 = vcombine.low %v754_v42, %v754_v42 }
  0xfc   : > { %v527_v55 = vadd.f32 %v6068_v54, %v7190_v49  ;;  %v518_v56 = vpop.f32.mrb[3].mxu0  ;;  %v644_v58 = vmax.f32 %v524_v51, 0.0  ;;  %v6910_v51 = vld [vmem:[%s8421_s3 + $0x30] sm:$0xff]  }
  0xfd   : > { %v519_v57 = vadd.f32 %v7190_v49, %v518_v56  ;;  %v642_v60 = vmax.f32 %v516_v53, 0.0  ;;  %v775_v56 = vshrl.u32 %v5407_v23, 16 }
  0xfe   : > { %v645_v59 = vmax.f32 %v527_v55, 0.0  ;;  %v718_v55 = vld [vmem:[#allocation2 + $0x30] sm:$0x80] }
  0xff   : > { %v643_v61 = vmax.f32 %v519_v57, 0.0 }
 0x100   : > { %v7196_v62 = vpack.c.bf16 %v645_v59, %v644_v58  ;;  %v2075_v59 = vld [vmem:[#allocation2 + $0xf0] sm:$0x80] }
 0x101   : > { %v7198_v63 = vpack.c.bf16 %v643_v61, %v642_v60  ;;  %v6071_v0 = vpop.f32.mrb[4].mxu0  ;;  %v2073_v61 = vld [vmem:[#allocation2 + $0xd8] sm:$0x80] }
 0x102   : > { %692 = vst [vmem:[#allocation2 + $0x38] sm:$0xff] %v7196_v62  ;;  %v540_v2 = vadd.f32 %v6071_v0, %v7190_v49  ;;  %v531_v3 = vpop.f32.mrb[5].mxu0 }
 0x103   : > { %691 = vst [vmem:[#allocation2 + $0x20] sm:$0xff] %v7198_v63  ;;  %v532_v4 = vadd.f32 %v7190_v49, %v531_v3  ;;  %v6072_v5 = vpop.f32.mrb[6].mxu0  ;;  %6114 = vmatmul.mubr.bf16.vlgmr.msra.gmra.mrb[32].mxu0 %v7198_v63  ;;  %v8427_v3 = vshll.u32 %v7256_v52, 16 }
 0x104   : > { %v543_v6 = vadd.f32 %v6072_v5, %v7190_v49  ;;  %v534_v7 = vpop.f32.mrb[7].mxu0  ;;  %6117 = vmatprep.mubr.bf16.mxu0 %v7196_v62  ;;  %6146 = vmatpush3.bf16.msra.mxu0 %v6898_v45  ;;  %v648_v10 = vmax.f32 %v540_v2, 0.0  ;;  %v7248_v45 = vrot.slane %v772_v33, 1  ;;  %v6912_v2 = vld [vmem:[%s8421_s3 + $0x38] sm:$0xff]  }
 0x105   : > { %v535_v8 = vadd.f32 %v7190_v49, %v534_v7  ;;  %6147 = vmatprep.subr.bf16.mxu0 %v6900_v1  ;;  %v646_v12 = vmax.f32 %v532_v4, 0.0  ;;  %v716_v4 = vld [vmem:[#allocation2 + $0x18] sm:$0x80]  ;;  %v7290_v23 = vrot.slane %v8427_v3, 1 }
 0x106   : > { %v649_v11 = vmax.f32 %v543_v6, 0.0  ;;  %vm780_vm8 = vcmp.ne.s16.totalorder %v7248_v45, 0 }
 0x107   : > { %v647_v13 = vmax.f32 %v535_v8, 0.0  ;;  %v786_v5 = vsel %vm780_vm8, %v718_v55, 0  ;;  %v2123_v8 = vsel %vm780_vm8, %v2075_v59, 0  ;;  %vm778_vm12 = vcmp.ne.s16.totalorder %v7290_v23, 0 }
 0x108   : > { %v7215_v14 = vpack.c.bf16 %v649_v11, %v648_v10  ;;  %6148 = vmatpush3.bf16.msra.mxu0 %v6900_v1 }
 0x109   : > { %v7217_v15 = vpack.c.bf16 %v647_v13, %v646_v12  ;;  %v6075_v16 = vpop.f32.mrb[8].mxu0  ;;  %6149 = vmatprep.subr.bf16.mxu0 %v6902_v9  ;;  %v2121_v12 = vsel %vm780_vm8, %v2073_v61, 0 }
 0x10a   : > { %694 = vst [vmem:[#allocation2 + $0x68] sm:$0xff] %v7215_v14  ;;  %v556_v19 = vadd.f32 %v6075_v16, %v7190_v49  ;;  %v547_v20 = vpop.f32.mrb[9].mxu0 }
 0x10b   : > { %693 = vst [vmem:[#allocation2 + $0x50] sm:$0xff] %v7217_v15  ;;  %v548_v21 = vadd.f32 %v7190_v49, %v547_v20  ;;  %v6076_v22 = vpop.f32.mrb[10].mxu0  ;;  %6118 = vmatmul.mubr.bf16.gmra.mrb[36].mxu0 %v7217_v15 }
 0x10c   : > { %v559_v24 = vadd.f32 %v6076_v22, %v7190_v49  ;;  %v550_v25 = vpop.f32.mrb[11].mxu0  ;;  %6121 = vmatprep.mubr.bf16.mxu0 %v7215_v14  ;;  %6150 = vmatpush3.bf16.msra.mxu0 %v6902_v9  ;;  %v652_v28 = vmax.f32 %v556_v19, 0.0  ;;  %v7274_v9 = vor.u32 %v775_v56, %v7248_v45  ;;  %v840_v19 = vshrl.u32 %v786_v5, 16  ;;  %v2077_v22 = vld [vmem:[#allocation2 + $0x108] sm:$0x80] }
 0x10d   : > { %v551_v26 = vadd.f32 %v7190_v49, %v550_v25  ;;  %6151 = vmatprep.subr.bf16.mxu0 %v6904_v18  ;;  %v650_v30 = vmax.f32 %v548_v21, 0.0  ;;  %v2246_v21 = vshrl.u32 %v2123_v8, 16  ;;  %v7296_v25 = vld [vmem:[%s8421_s3 + $0x80] sm:$0xff]  }
 0x10e   : > { %v653_v29 = vmax.f32 %v559_v24, 0.0  ;;  %v8428_v24 = vshrl.u32 %v7256_v52, 16  ;;  %vm781_vm9 = vcmp.ne.s16.totalorder %v7274_v9, 0 }
 0x10f   : > { %v651_v32 = vmax.f32 %v551_v26, 0.0 }
 0x110   : > { %v7235_v34 = vpack.c.bf16 %v653_v29, %v652_v28  ;;  %6152 = vmatpush3.bf16.msra.mxu0 %v6904_v18  ;;  %v7285_v18 = vsel %vm780_vm8, %v716_v4, 0  ;;  %v2234_v28 = vshrl.u32 %v2121_v12, 16 }
 0x111   : > { %v7237_v35 = vpack.c.bf16 %v651_v32, %v650_v30  ;;  %v6079_v36 = vpop.f32.mrb[12].mxu0  ;;  %6153 = vmatprep.subr.bf16.mxu0 %v6906_v27  ;;  %v2127_v32 = vsel %vm780_vm8, %v2079_v17, 0  ;;  %v7337_v17 = vld [vmem:[#allocation2 + $0x8] sm:$0xff] }
 0x112   : > { %696 = vst [vmem:[#allocation2 + $0x98] sm:$0xff] %v7235_v34  ;;  %v572_v40 = vadd.f32 %v6079_v36, %v7190_v49  ;;  %v563_v41 = vpop.f32.mrb[13].mxu0  ;;  %v2125_v36 = vsel %vm780_vm8, %v2077_v22, 0  ;;  %v2270_v55 = vshrl.u32 %v2127_v32, 16  ;;  %v714_v22 = vld [vmem:[#allocation2] sm:$0x80] }
 0x113   : > { %695 = vst [vmem:[#allocation2 + $0x80] sm:$0xff] %v7237_v35  ;;  %v564_v43 = vadd.f32 %v7190_v49, %v563_v41  ;;  %v6080_v44 = vpop.f32.mrb[14].mxu0  ;;  %6122 = vmatmul.mubr.bf16.gmra.mrb[40].mxu0 %v7237_v35  ;;  %v2258_v61 = vshrl.u32 %v2125_v36, 16 }
 0x114   : > { %v575_v46 = vadd.f32 %v6080_v44, %v7190_v49  ;;  %v566_v47 = vpop.f32.mrb[15].mxu0  ;;  %6125 = vmatprep.mubr.bf16.mxu0 %v7235_v34  ;;  %6154 = vmatpush3.bf16.msra.mxu0 %v6906_v27  ;;  %v656_v53 = vmax.f32 %v572_v40, 0.0  ;;  %v7306_v40 = vrot.slane %v840_v19, 7  ;;  %v2081_v44 = vld [vmem:[#allocation2 + $0x138] sm:$0x80] }
 0x115   : > { %v567_v50 = vadd.f32 %v7190_v49, %v566_v47  ;;  %6155 = vmatprep.subr.bf16.mxu0 %v6908_v37  ;;  %v654_v57 = vmax.f32 %v564_v43, 0.0  ;;  %v2248_v43 = vrot.slane %v2246_v21, 7  ;;  %v7313_v47 = vor.u32 %v8428_v24, %v7290_v23  ;;  %v6949_v23 = vld [vmem:[%s8421_s3 + $0x208] sm:$0xff]  }
 0x116   : > { %v657_v54 = vmax.f32 %v575_v46, 0.0  ;;  %v2083_v46 = vld [vmem:[#allocation2 + $0x150] sm:$0x80]  ;;  %v2129_v5 = vsel %vm780_vm8, %v2081_v44, 0  ;;  %v2260_v36 = vrot.slane %v2258_v61, 7 }
 0x117   : > { %v655_v58 = vmax.f32 %v567_v50, 0.0  ;;  %vm779_vm11 = vcmp.ne.s16.totalorder %v7313_v47, 0 }
 0x118   : > { %v7259_v60 = vpack.c.bf16 %v657_v54, %v656_v53  ;;  %6156 = vmatpush3.bf16.msra.mxu0 %v6908_v37  ;;  %v828_v37 = vshrl.u32 %v7285_v18, 16  ;;  %v2236_v54 = vrot.slane %v2234_v28, 7  ;;  %v7346_v28 = vrot.slane %v2270_v55, 7  ;;  %v6905_v55 = vld [vmem:[%s8421_s3 + $0x108] sm:$0xff]  }
 0x119   : > { %v7261_v0 = vpack.c.bf16 %v655_v58, %v654_v57  ;;  %v6083_v1 = vpop.f32.mrb[16].mxu0  ;;  %6157 = vmatprep.subr.bf16.mxu0 %v6910_v51  ;;  %v7354_v44 = vsel %vm779_vm11, %v7337_v17, 0  ;;  %v6913_v18 = vld [vmem:[%s8421_s3 + $0x128] sm:$0xff]  }
 0x11a   : > { %698 = vst [vmem:[#allocation2 + $0xc8] sm:$0xff] %v7259_v60  ;;  %v588_v6 = vadd.f32 %v6083_v1, %v7190_v49  ;;  %v579_v7 = vpop.f32.mrb[17].mxu0 }
 0x11b   : > { %697 = vst [vmem:[#allocation2 + $0xb0] sm:$0xff] %v7261_v0  ;;  %v580_v10 = vadd.f32 %v7190_v49, %v579_v7  ;;  %v6084_v11 = vpop.f32.mrb[18].mxu0  ;;  %6126 = vmatmul.mubr.bf16.gmra.mrb[44].mxu0 %v7261_v0 }
 0x11c   : > { %v591_v13 = vadd.f32 %v6084_v11, %v7190_v49  ;;  %v582_v16 = vpop.f32.mrb[19].mxu0  ;;  %6129 = vmatprep.mubr.bf16.mxu0 %v7259_v60  ;;  %6158 = vmatpush3.bf16.msra.mxu0 %v6910_v51  ;;  %v660_v26 = vmax.f32 %v588_v6, 0.0  ;;  %v7333_v6 = vsel %vm780_vm8, %v2083_v46, 0 }
 0x11d   : > { %v583_v20 = vadd.f32 %v7190_v49, %v582_v16  ;;  %6159 = vmatprep.subr.bf16.mxu0 %v6912_v2  ;;  %v658_v29 = vmax.f32 %v580_v10, 0.0 }
 0x11e   : > { %v661_v27 = vmax.f32 %v591_v13, 0.0 }
 0x11f   : > { %v659_v30 = vmax.f32 %v583_v20, 0.0 }
 0x120   : > { %v7301_v33 = vpack.c.bf16 %v661_v27, %v660_v26  ;;  %6160 = vmatpush3.bf16.msra.mxu0 %v6912_v2 }
 0x121   : > { %v7308_v41 = vpack.c.bf16 %v659_v30, %v658_v29  ;;  %v6087_v42 = vpop.f32.mrb[20].mxu0  ;;  %6193 = vmatprep.subr.bf16.mxu0 %v7296_v25  ;;  %v2282_v29 = vshrl.u32 %v2129_v5, 16 }
 0x122   : > { %700 = vst [vmem:[#allocation2 + $0xf8] sm:$0xff] %v7301_v33  ;;  %v604_v50 = vadd.f32 %v6087_v42, %v7190_v49  ;;  %v595_v51 = vpop.f32.mrb[21].mxu0  ;;  %v803_v53 = vsel %vm781_vm9, %v7301_v33, 0  ;;  %v2294_v42 = vshrl.u32 %v7333_v6, 16 }
 0x123   : > { %699 = vst [vmem:[#allocation2 + $0xe0] sm:$0xff] %v7308_v41  ;;  %v596_v56 = vadd.f32 %v7190_v49, %v595_v51  ;;  %v6088_v57 = vpop.f32.mrb[22].mxu0  ;;  %v801_v58 = vsel %vm781_vm9, %v7308_v41, 0  ;;  %6130 = vmatmul.mubr.bf16.gmra.mrb[48].mxu0 %v7308_v41  ;;  %v940_v59 = vshrl.u32 %v803_v53, 16  ;;  %v943_v10 = vshll.u32 %v803_v53, 16 }
 0x124   : > { %v607_v1 = vadd.f32 %v6088_v57, %v7190_v49  ;;  %v598_v2 = vpop.f32.mrb[23].mxu0  ;;  %v928_v4 = vshrl.u32 %v801_v58, 16  ;;  %6133 = vmatprep.mubr.bf16.mxu0 %v7301_v33  ;;  %v664_v11 = vmax.f32 %v604_v50, 0.0  ;;  %v931_v16 = vshll.u32 %v801_v58, 16 }
 0x125   : > { %v599_v7 = vadd.f32 %v7190_v49, %v598_v2  ;;  %v942_v8 = vrot.slane %v940_v59, 7  ;;  %v662_v19 = vmax.f32 %v596_v56, 0.0  ;;  %v782_v56 = vsel %vm778_vm12, %v714_v22, 0 }
 0x126   : > { %v665_v12 = vmax.f32 %v607_v1, 0.0  ;;  %v930_v13 = vrot.slane %v928_v4, 7  ;;  %v7378_v5 = vrot.slane %v2282_v29, 7  ;;  %v2085_v29 = vld [vmem:[#allocation2 + $0x168] sm:$0x80] }
 0x127   : > { %v663_v20 = vmax.f32 %v599_v7, 0.0  ;;  %v7339_v21 = vor.u32 %v943_v10, %v942_v8  ;;  %v820_v7 = vshrl.u32 %v7354_v44, 16  ;;  %v2087_v8 = vld [vmem:[#allocation2 + $0x180] sm:$0x80] }
 0x128   : > { %v7342_v26 = vpack.c.bf16 %v665_v12, %v664_v11  ;;  %v7344_v27 = vor.u32 %v931_v16, %v930_v13  ;;  %v816_v13 = vshrl.u32 %v782_v56, 16  ;;  %v7400_v56 = vsel %vm781_vm9, %v7196_v62, 0 }
 0x129   : > { %v7348_v30 = vpack.c.bf16 %v663_v20, %v662_v19  ;;  %v6091_v32 = vpop.f32.mrb[24].mxu0  ;;  %v2256_v61 = vsel %vm814_vm10, %v2248_v43, %v7339_v21  ;;  %v6907_v43 = vld [vmem:[%s8421_s3 + $0x110] sm:$0xff]  }
 0x12a   : > { %702 = vst [vmem:[#allocation2 + $0x128] sm:$0xff] %v7342_v26  ;;  %v620_v46 = vadd.f32 %v6091_v32, %v7190_v49  ;;  %v611_v50 = vpop.f32.mrb[25].mxu0  ;;  %v2244_v51 = vsel %vm814_vm10, %v2236_v54, %v7344_v27  ;;  %v807_v53 = vsel %vm781_vm9, %v7342_v26, 0 }
 0x12b   : > { %701 = vst [vmem:[#allocation2 + $0x110] sm:$0xff] %v7348_v30  ;;  %v612_v57 = vadd.f32 %v7190_v49, %v611_v50  ;;  %v6092_v58 = vpop.f32.mrb[26].mxu0  ;;  %v805_v54 = vsel %vm781_vm9, %v7348_v30, 0  ;;  %6134 = vmatmul.mubr.bf16.gmra.mrb[52].mxu0 %v7348_v30  ;;  %6273 = vmatprep.mubr.bf16.mxu1 %v2244_v51  ;;  %v964_v59 = vshrl.u32 %v807_v53, 16  ;;  %v967_v12 = vshll.u32 %v807_v53, 16 }
 0x12c   : > { %v623_v1 = vadd.f32 %v6092_v58, %v7190_v49  ;;  %v614_v2 = vpop.f32.mrb[27].mxu0  ;;  %v952_v4 = vshrl.u32 %v805_v54, 16  ;;  %6137 = vmatprep.mubr.bf16.mxu0 %v7342_v26  ;;  %6274 = vmatmul.mubr.bf16.vlgmr.msra.gmra.mrb[0].mxu1 %v2256_v61  ;;  %v668_v16 = vmax.f32 %v620_v46, 0.0  ;;  %v955_v22 = vshll.u32 %v805_v54, 16 }
 0x12d   : > { %v615_v10 = vadd.f32 %v7190_v49, %v614_v2  ;;  %v966_v11 = vrot.slane %v964_v59, 7  ;;  %6290 = vmatpush3.bf16.msra.mxu1 %v7184_v48  ;;  %v666_v32 = vmax.f32 %v612_v57, 0.0  ;;  %v7390_v53 = vsel %vm780_vm8, %v2087_v8, 0 }
 0x12e   : > { %v669_v19 = vmax.f32 %v623_v1, 0.0  ;;  %v954_v20 = vrot.slane %v952_v4, 7  ;;  %6291 = vmatprep.subr.bf16.mxu1 %v6905_v55  ;;  %v822_v59 = vrot.slane %v820_v7, 7  ;;  %v823_v46 = vshll.u32 %v7354_v44, 16  ;;  %v6909_v7 = vld [vmem:[%s8421_s3 + $0x118] sm:$0xff]  }
 0x12f   : > { %v667_v50 = vmax.f32 %v615_v10, 0.0  ;;  %v7386_v51 = vor.u32 %v967_v12, %v966_v11  ;;  %v818_v61 = vrot.slane %v816_v13, 7  ;;  %v7406_v1 = vsel %vm780_vm8, %v2085_v29, 0 }
 0x130   : > { %v7392_v48 = vpack.c.bf16 %v669_v19, %v668_v16  ;;  %v7394_v58 = vor.u32 %v955_v22, %v954_v20  ;;  %v7411_v2 = vsel %vm781_vm9, %v7198_v63, 0  ;;  %v844_v13 = vshrl.u32 %v7400_v56, 16 }
 0x131   : > { %v7402_v57 = vpack.c.bf16 %v667_v50, %v666_v32  ;;  %v6095_v54 = vpop.f32.mrb[28].mxu0  ;;  %6292 = vmatpush3.bf16.msra.mxu1 %v6905_v55  ;;  %v2280_v12 = vsel %vm814_vm10, %v7346_v28, %v7386_v51  ;;  %v825_v22 = vor.u32 %v823_v46, %v822_v59  ;;  %v832_v29 = vshrl.u32 %v7411_v2, 16 }
 0x132   : > { %704 = vst [vmem:[#allocation2 + $0x158] sm:$0xff] %v7392_v48  ;;  %v636_v44 = vadd.f32 %v6095_v54, %v7190_v49  ;;  %v627_v62 = vpop.f32.mrb[29].mxu0  ;;  %v2268_v4 = vsel %vm814_vm10, %v2260_v36, %v7394_v58  ;;  %6293 = vmatprep.subr.bf16.mxu1 %v6907_v43  ;;  %v811_v55 = vsel %vm781_vm9, %v7392_v48, 0  ;;  %v2318_v6 = vshrl.u32 %v7390_v53, 16 }
 0x133   : > { %703 = vst [vmem:[#allocation2 + $0x140] sm:$0xff] %v7402_v57  ;;  %v628_v8 = vadd.f32 %v7190_v49, %v627_v62  ;;  %v6096_v10 = vpop.f32.mrb[30].mxu0  ;;  %v809_v11 = vsel %vm781_vm9, %v7402_v57, 0  ;;  %6138 = vmatmul.mubr.bf16.gmra.mrb[56].mxu0 %v7402_v57  ;;  %6277 = vmatprep.mubr.bf16.mxu1 %v2268_v4  ;;  %v988_v36 = vshrl.u32 %v811_v55, 16  ;;  %v991_v54 = vshll.u32 %v811_v55, 16 }
 0x134   : > { %v639_v16 = vadd.f32 %v6096_v10, %v7190_v49  ;;  %v630_v19 = vpop.f32.mrb[31].mxu0  ;;  %v976_v20 = vshrl.u32 %v809_v11, 16  ;;  %6141 = vmatprep.mubr.bf16.mxu0 %v7392_v48  ;;  %6278 = vmatmul.mubr.bf16.gmra.mrb[4].mxu1 %v2280_v12  ;;  %v722_v62 = vld [vmem:[#allocation2 + $0x60] sm:$0x80]  ;;  %v672_v4 = vmax.f32 %v636_v44, 0.0  ;;  %v979_v3 = vshll.u32 %v809_v11, 16 }
 0x135   : > { %v631_v32 = vadd.f32 %v7190_v49, %v630_v19  ;;  %v990_v50 = vrot.slane %v988_v36, 7  ;;  %6294 = vmatpush3.bf16.msra.mxu1 %v6907_v43  ;;  %v6911_v10 = vld [vmem:[%s8421_s3 + $0x120] sm:$0xff]   ;;  %v670_v24 = vmax.f32 %v628_v8, 0.0  ;;  %v2296_v49 = vrot.slane %v2294_v42, 7  ;;  %v720_v42 = vld [vmem:[#allocation2 + $0x48] sm:$0x80] }
 0x136   : > { %v673_v28 = vmax.f32 %v639_v16, 0.0  ;;  %v978_v31 = vrot.slane %v976_v20, 7  ;;  %6295 = vmatprep.subr.bf16.mxu1 %v6909_v7  ;;  %v830_v44 = vrot.slane %v828_v37, 7  ;;  %v7452_v55 = vsel %vm780_vm8, %v722_v62, 0 }
 0x137   : > { %v671_v12 = vmax.f32 %v631_v32, 0.0  ;;  %v7440_v59 = vor.u32 %v991_v54, %v990_v50  ;;  %v826_v8 = vsel %vm814_vm10, %v818_v61, %v825_v22  ;;  %v2306_v36 = vshrl.u32 %v7406_v1, 16 }
 0x138   : > { %v7444_v46 = vpack.c.bf16 %v673_v28, %v672_v4  ;;  %v7446_v43 = vor.u32 %v979_v3, %v978_v31  ;;  %v834_v16 = vrot.slane %v832_v29, 7  ;;  %v846_v31 = vrot.slane %v844_v13, 7 }
 0x139   : > { %v7454_v11 = vpack.c.bf16 %v671_v12, %v670_v24  ;;  %6296 = vmatpush3.bf16.msra.mxu1 %v6909_v7  ;;  %v789_v37 = vsel %vm781_vm9, %v7217_v15, 0  ;;  %v835_v1 = vshll.u32 %v7411_v2, 16  ;;  %v791_v7 = vsel %vm781_vm9, %v7215_v14, 0  ;;  %v6914_v14 = vld [vmem:[%s8421_s3 + $0x130] sm:$0xff]  }
 0x13a   : > { %706 = vst [vmem:[#allocation2 + $0x188] sm:$0xff] %v7444_v46  ;;  %v2292_v3 = vsel %vm814_vm10, %v7378_v5, %v7446_v43  ;;  %6297 = vmatprep.subr.bf16.mxu1 %v6911_v10  ;;  %v2136_v24 = vsel %vm781_vm9, %v7444_v46, 0  ;;  %v2304_v5 = vsel %vm814_vm10, %v2296_v49, %v7440_v59  ;;  %v788_v13 = vsel %vm780_vm8, %v720_v42, 0  ;;  %v6915_v42 = vld [vmem:[%s8421_s3 + $0x138] sm:$0xff]  }
 0x13b   : > { %705 = vst [vmem:[#allocation2 + $0x170] sm:$0xff] %v7454_v11  ;;  %v813_v53 = vsel %vm781_vm9, %v7454_v11, 0  ;;  %6142 = vmatmul.mubr.bf16.gmra.mrb[60].mxu0 %v7454_v11  ;;  %6281 = vmatprep.mubr.bf16.mxu1 %v2292_v3  ;;  %v2322_v61 = vshrl.u32 %v2136_v24, 16  ;;  %v847_v19 = vshll.u32 %v7400_v56, 16  ;;  %v2308_v20 = vrot.slane %v2306_v36, 7  ;;  %v6921_v3 = vld [vmem:[%s8421_s3 + $0x88] sm:$0xff]  }
 0x13c   : > { %v1000_v15 = vshrl.u32 %v813_v53, 16  ;;  %6282 = vmatmul.mubr.bf16.gmra.mrb[8].mxu1 %v2304_v5  ;;  %6161 = vmatprep.mubr.bf16.mxu0 %v826_v8  ;;  %v2325_v29 = vshll.u32 %v2136_v24, 16  ;;  %v7486_v32 = vor.u32 %v835_v1, %v834_v16  ;;  %v856_v50 = vshrl.u32 %v789_v37, 16 }
 0x13d   : > { %6298 = vmatpush3.bf16.msra.mxu1 %v6911_v10  ;;  %v2324_v22 = vrot.slane %v2322_v61, 7  ;;  %v1003_v54 = vshll.u32 %v813_v53, 16  ;;  %v849_v62 = vor.u32 %v847_v19, %v846_v31  ;;  %v868_v4 = vshrl.u32 %v791_v7, 16  ;;  %v724_v53 = vld [vmem:[#allocation2 + $0x78] sm:$0x80] }
 0x13e   : > { %v1002_v2 = vrot.slane %v1000_v15, 7  ;;  %6299 = vmatprep.subr.bf16.mxu1 %v6913_v18  ;;  %v2320_v28 = vrot.slane %v2318_v6, 7  ;;  %v864_v56 = vshrl.u32 %v7452_v55, 16  ;;  %v858_v10 = vrot.slane %v856_v50, 7  ;;  %v726_v61 = vld [vmem:[#allocation2 + $0x90] sm:$0x80] }
 0x13f   : > { %v2327_v12 = vor.u32 %v2325_v29, %v2324_v22  ;;  %v838_v8 = vsel %vm814_vm10, %v830_v44, %v7486_v32  ;;  %v852_v16 = vshrl.u32 %v788_v13, 16  ;;  %v870_v6 = vrot.slane %v868_v4, 7  ;;  %v6917_v50 = vld [vmem:[%s8421_s3 + $0x148] sm:$0xff]  }
 0x140   : > { %v7491_v49 = vor.u32 %v1003_v54, %v1002_v2  ;;  %v793_v31 = vsel %vm781_vm9, %v7237_v35, 0  ;;  %v850_v55 = vsel %vm814_vm10, %v7306_v40, %v849_v62  ;;  %v795_v24 = vsel %vm781_vm9, %v7235_v34, 0  ;;  %v7533_v62 = vld [vmem:[#allocation2 + $0x38] sm:$0xff] }
 0x141   : > { %6300 = vmatpush3.bf16.msra.mxu1 %v6913_v18  ;;  %v2328_v44 = vsel %vm814_vm10, %v2320_v28, %v2327_v12  ;;  %v859_v18 = vshll.u32 %v789_v37, 16  ;;  %v871_v5 = vshll.u32 %v791_v7, 16  ;;  %v880_v1 = vshrl.u32 %v793_v31, 16  ;;  %v6916_v37 = vld [vmem:[%s8421_s3 + $0x140] sm:$0xff]   ;;  %v6924_v28 = vld [vmem:[%s8421_s3 + $0x98] sm:$0xff]  }
 0x142   : > { %v2316_v36 = vsel %vm814_vm10, %v2308_v20, %v7491_v49  ;;  %6301 = vmatprep.subr.bf16.mxu1 %v6914_v14  ;;  %v854_v15 = vrot.slane %v852_v16, 7  ;;  %v892_v34 = vshrl.u32 %v795_v24, 16  ;;  %v866_v19 = vrot.slane %v864_v56, 7 }
 0x143   : > { %6162 = vmatmul.mubr.bf16.vlgmr.msra.gmra.mrb[32].mxu0 %v838_v8  ;;  %6285 = vmatprep.mubr.bf16.mxu1 %v2316_v36  ;;  %v861_v40 = vor.u32 %v859_v18, %v858_v10  ;;  %v873_v13 = vor.u32 %v871_v5, %v870_v6  ;;  %v792_v7 = vsel %vm780_vm8, %v724_v53, 0  ;;  %v794_v20 = vsel %vm780_vm8, %v726_v61, 0  ;;  %v7542_v10 = vld [vmem:[#allocation2 + $0x50] sm:$0xff]  ;;  %v728_v8 = vld [vmem:[#allocation2 + $0xa8] sm:$0x80] }
 0x144   : > { %6165 = vmatprep.mubr.bf16.mxu0 %v850_v55  ;;  %6286 = vmatmul.mubr.bf16.gmra.mrb[12].mxu1 %v2328_v44  ;;  %v882_v22 = vrot.slane %v880_v1, 7  ;;  %v894_v2 = vrot.slane %v892_v34, 7  ;;  %v797_v54 = vsel %vm781_vm9, %v7261_v0, 0  ;;  %v888_v4 = vshrl.u32 %v794_v20, 16  ;;  %v6920_v1 = vld [vmem:[%s8421_s3 + $0x158] sm:$0xff]  }
 0x145   : > { %6302 = vmatpush3.bf16.msra.mxu1 %v6914_v14  ;;  %6305 = vmatprep.mubr.bf16.mxu1 %v7198_v63  ;;  %v6922_v63 = vld [vmem:[%s8421_s3 + $0x90] sm:$0xff]   ;;  %v862_v29 = vsel %vm814_vm10, %v854_v15, %v861_v40  ;;  %v874_v14 = vsel %vm814_vm10, %v866_v19, %v873_v13  ;;  %v883_v12 = vshll.u32 %v793_v31, 16  ;;  %v799_v56 = vsel %vm781_vm9, %v7259_v60, 0  ;;  %v7563_v13 = vld [vmem:[#allocation2 + $0x68] sm:$0xff] }
 0x146   : > { %6303 = vmatprep.subr.bf16.mxu1 %v6915_v42  ;;  %6194 = vmatpush3.bf16.msra.mxu0 %v7296_v25  ;;  %v876_v25 = vshrl.u32 %v792_v7, 16  ;;  %v895_v36 = vshll.u32 %v795_v24, 16  ;;  %v904_v6 = vshrl.u32 %v797_v54, 16  ;;  %v6918_v60 = vld [vmem:[%s8421_s3 + $0x150] sm:$0xff]   ;;  %v916_v44 = vshrl.u32 %v799_v56, 16  ;;  %v6925_v24 = vld [vmem:[%s8421_s3 + $0xa0] sm:$0xff]  }
 0x147   : > { %6195 = vmatprep.subr.bf16.mxu0 %v6921_v3  ;;  %v7545_v16 = vor.u32 %v883_v12, %v882_v22  ;;  %v796_v18 = vsel %vm780_vm8, %v728_v8, 0  ;;  %v6927_v19 = vld [vmem:[%s8421_s3 + $0xa8] sm:$0xff]   ;;  %v907_v7 = vshll.u32 %v797_v54, 16  ;;  %v919_v20 = vshll.u32 %v799_v56, 16  ;;  %v734_v22 = vld [vmem:[#allocation2 + $0xf0] sm:$0x80] }
 0x148   : > { %v878_v55 = vrot.slane %v876_v25, 7  ;;  %v897_v31 = vor.u32 %v895_v36, %v894_v2  ;;  %v906_v5 = vrot.slane %v904_v6, 7  ;;  %v900_v40 = vshrl.u32 %v796_v18, 16  ;;  %v6926_v56 = vld [vmem:[%s8421_s3 + $0x168] sm:$0xff]   ;;  %v7588_v36 = vld [vmem:[#allocation2 + $0x98] sm:$0xff] }
 0x149   : > { %6304 = vmatpush3.bf16.msra.mxu1 %v6915_v42  ;;  %v730_v42 = vld [vmem:[#allocation2 + $0xc0] sm:$0x80]  ;;  %v918_v15 = vrot.slane %v916_v44, 7  ;;  %v6930_v6 = vld [vmem:[%s8421_s3 + $0xb8] sm:$0xff]   ;;  %v6929_v44 = vld [vmem:[%s8421_s3 + $0x170] sm:$0xff]  }
 0x14a   : > { %6337 = vmatprep.subr.bf16.mxu1 %v6916_v37  ;;  %6196 = vmatpush3.bf16.msra.mxu0 %v6921_v3  ;;  %v890_v3 = vrot.slane %v888_v4, 7  ;;  %v798_v53 = vsel %vm780_vm8, %v730_v42, 0  ;;  %v886_v61 = vsel %vm814_vm10, %v878_v55, %v7545_v16  ;;  %v902_v25 = vrot.slane %v900_v40, 7  ;;  %v736_v55 = vld [vmem:[#allocation2 + $0x108] sm:$0x80]  ;;  %v6931_v40 = vld [vmem:[%s8421_s3 + $0x178] sm:$0xff]  }
 0x14b   : > { %6166 = vmatmul.mubr.bf16.gmra.mrb[36].mxu0 %v862_v29  ;;  %6197 = vmatprep.subr.bf16.mxu0 %v6922_v63  ;;  %v912_v34 = vshrl.u32 %v798_v53, 16  ;;  %v7570_v29 = vor.u32 %v907_v7, %v906_v5  ;;  %v921_v2 = vor.u32 %v919_v20, %v918_v15  ;;  %v802_v4 = vsel %vm780_vm8, %v734_v22, 0  ;;  %v7613_v15 = vld [vmem:[#allocation2 + $0xc8] sm:$0xff]  ;;  %v740_v7 = vld [vmem:[#allocation2 + $0x138] sm:$0x80] }
 0x14c   : > { %6169 = vmatprep.mubr.bf16.mxu0 %v874_v14  ;;  %6306 = vmatmul.mubr.bf16.vlgmr.msra.gmra.mrb[16].mxu1 %v7533_v62  ;;  %v936_v42 = vshrl.u32 %v802_v4, 16  ;;  %v804_v18 = vsel %vm780_vm8, %v736_v55, 0 }
 0x14d   : > { %6338 = vmatpush3.bf16.msra.mxu1 %v6916_v37  ;;  %6309 = vmatprep.mubr.bf16.mxu1 %v7542_v10  ;;  %v898_v37 = vsel %vm814_vm10, %v890_v3, %v897_v31  ;;  %v914_v54 = vrot.slane %v912_v34, 7  ;;  %v8430_v34 = vshll.u32 %v7256_v52, 16 }
 0x14e   : > { %6339 = vmatprep.subr.bf16.mxu1 %v6917_v50  ;;  %6198 = vmatpush3.bf16.msra.mxu0 %v6922_v63  ;;  %v732_v63 = vld [vmem:[#allocation2 + $0xd8] sm:$0x80]  ;;  %v938_v3 = vrot.slane %v936_v42, 7 }
 0x14f   : > { %6199 = vmatprep.subr.bf16.mxu0 %v6924_v28  ;;  %v800_v14 = vsel %vm780_vm8, %v732_v63, 0  ;;  %v922_v8 = vsel %vm814_vm10, %v914_v54, %v921_v2  ;;  %v742_v63 = vld [vmem:[#allocation2 + $0x150] sm:$0x80] }
 0x150   : > { %v924_v12 = vshrl.u32 %v800_v14, 16 }
 0x151   : > { %6340 = vmatpush3.bf16.msra.mxu1 %v6917_v50  ;;  %v6923_v50 = vld [vmem:[%s8421_s3 + $0x160] sm:$0xff]  }
 0x152   : > { %6341 = vmatprep.subr.bf16.mxu1 %v6918_v60  ;;  %6200 = vmatpush3.bf16.msra.mxu0 %v6924_v28  ;;  %v910_v28 = vsel %vm814_vm10, %v902_v25, %v7570_v29  ;;  %v926_v31 = vrot.slane %v924_v12, 7  ;;  %v1551_v25 = vshll.u32 %v7148_v38, 16 }
 0x153   : > { %6170 = vmatmul.mubr.bf16.gmra.mrb[40].mxu0 %v886_v61  ;;  %6201 = vmatprep.subr.bf16.mxu0 %v6925_v24  ;;  %v948_v61 = vshrl.u32 %v804_v18, 16 }
 0x154   : > { %6173 = vmatprep.mubr.bf16.mxu0 %v898_v37  ;;  %6310 = vmatmul.mubr.bf16.gmra.mrb[20].mxu1 %v7563_v13  ;;  %v934_v5 = vsel %vm814_vm10, %v926_v31, %v7344_v27  ;;  %v1548_v27 = vshrl.u32 %v7148_v38, 16  ;;  %v1491_v38 = vld [vmem:[#allocation2 + $0x10] sm:$0x1]  ;;  %v1493_v31 = vld [vmem:[#allocation2 + $0x28] sm:$0x1] }
 0x155   : > { %6313 = vmatprep.mubr.bf16.mxu1 %v7237_v35  ;;  %6342 = vmatpush3.bf16.msra.mxu1 %v6918_v60  ;;  %v6928_v35 = vld [vmem:[%s8421_s3 + $0xb0] sm:$0xff]   ;;  %v738_v60 = vld [vmem:[#allocation2 + $0x120] sm:$0x80] }
 0x156   : > { %6343 = vmatprep.subr.bf16.mxu1 %v6920_v1  ;;  %6202 = vmatpush3.bf16.msra.mxu0 %v6925_v24  ;;  %v8429_v24 = vshrl.u32 %v7256_v52, 16  ;;  %v7627_v52 = vld [vmem:[%s8421_s3 + $0x180] sm:$0xff]   ;;  %v7632_v22 = vrot.slane %v1548_v27, 7 }
 0x157   : > { %6203 = vmatprep.subr.bf16.mxu0 %v6927_v19 }
 0x158   : > { %v7602_v53 = vrot.slane %v8429_v24, 7  ;;  %v7647_v4 = vor.u32 %v1551_v25, %v7632_v22  ;;  %vm1557_vm0 = vcmp.ne.s16.totalorder %v7632_v22, 0  ;;  %v1499_v25 = vld [vmem:[#allocation2 + $0x70] sm:$0x1] }
 0x159   : > { %6344 = vmatpush3.bf16.msra.mxu1 %v6920_v1  ;;  %v946_v1 = vsel %vm814_vm10, %v938_v3, %v7339_v21  ;;  %v950_v21 = vrot.slane %v948_v61, 7  ;;  %v1495_v3 = vld [vmem:[#allocation2 + $0x40] sm:$0x1]  ;;  %v2862_v61 = vld [vmem:[#allocation2 + $0x28] sm:$0x1] }
 0x15a   : > { %6345 = vmatprep.subr.bf16.mxu1 %v6923_v50  ;;  %6204 = vmatpush3.bf16.msra.mxu0 %v6927_v19  ;;  %v7618_v19 = vor.u32 %v7602_v53, %v8430_v34  ;;  %vm1555_vm14 = vcmp.ne.s16.totalorder %v7602_v53, 0  ;;  %vm1556_vm15 = vcmp.ne.s16.totalorder %v7647_v4, 0  ;;  %v2910_v34 = vsel %vm1557_vm0, %v2862_v61, 0  ;;  %v2870_v61 = vld [vmem:[#allocation2 + $0x88] sm:$0x1] }
 0x15b   : > { %6174 = vmatmul.mubr.bf16.gmra.mrb[44].mxu0 %v910_v28  ;;  %6205 = vmatprep.subr.bf16.mxu0 %v6928_v35  ;;  %v1559_v12 = vsel %vm1555_vm14, %v1491_v38, 0  ;;  %v1562_v18 = vsel %vm1556_vm15, %v7533_v62, 0 }
 0x15c   : > { %6177 = vmatprep.mubr.bf16.mxu0 %v922_v8  ;;  %6314 = vmatmul.mubr.bf16.gmra.mrb[24].mxu1 %v7588_v36  ;;  %vm1554_vm13 = vcmp.ne.s16.totalorder %v7618_v19, 0  ;;  %v1492_v8 = vld [vmem:[#allocation2 + $0x20] sm:$0xff]  ;;  %v1599_v55 = vshll.u32 %v1559_v12, 16 }
 0x15d   : > { %6317 = vmatprep.mubr.bf16.mxu1 %v7261_v0  ;;  %6346 = vmatpush3.bf16.msra.mxu1 %v6923_v50  ;;  %v806_v0 = vsel %vm780_vm8, %v738_v60, 0  ;;  %v958_v50 = vsel %vm814_vm10, %v950_v21, %v7394_v58  ;;  %v1558_v54 = vsel %vm1554_vm13, %v7337_v17, 0  ;;  %v744_v58 = vld [vmem:[#allocation2 + $0x168] sm:$0x80] }
 0x15e   : > { %6347 = vmatprep.subr.bf16.mxu1 %v6926_v56  ;;  %6206 = vmatpush3.bf16.msra.mxu0 %v6928_v35  ;;  %v960_v37 = vshrl.u32 %v806_v0, 16  ;;  %v1594_v17 = vshll.u32 %v1558_v54, 16  ;;  %v1592_v42 = vshrl.u32 %v1558_v54, 16  ;;  %v1601_v24 = vrot.slane %v1599_v55, 1 }
 0x15f   : > { %6207 = vmatprep.subr.bf16.mxu0 %v6930_v6  ;;  %v1616_v54 = vshrl.u32 %v1562_v18, 16 }
 0x160   : > { %v962_v20 = vrot.slane %v960_v37, 7 }
 0x161   : > { %6348 = vmatpush3.bf16.msra.mxu1 %v6926_v56 }
 0x162   : > { %6349 = vmatprep.subr.bf16.mxu1 %v6929_v44  ;;  %6208 = vmatpush3.bf16.msra.mxu0 %v6930_v6  ;;  %v970_v14 = vsel %vm814_vm10, %v962_v20, %v7386_v51  ;;  %v812_v51 = vsel %vm780_vm8, %v744_v58, 0  ;;  %v1596_v6 = vrot.slane %v1594_v17, 1  ;;  %v1497_v20 = vld [vmem:[#allocation2 + $0x58] sm:$0x1]  ;;  %v1567_v17 = vsel %vm1557_vm0, %v1499_v25, 0 }
 0x163   : > { %6178 = vmatmul.mubr.bf16.gmra.mrb[48].mxu0 %v934_v5  ;;  %6241 = vmatprep.subr.bf16.mxu0 %v7153_v39  ;;  %v808_v39 = vsel %vm780_vm8, %v740_v7, 0  ;;  %v996_v60 = vshrl.u32 %v812_v51, 16  ;;  %v1565_v58 = vsel %vm1557_vm0, %v1497_v20, 0  ;;  %v2918_v25 = vsel %vm1557_vm0, %v2870_v61, 0 }
 0x164   : > { %6181 = vmatprep.mubr.bf16.mxu0 %v946_v1  ;;  %6318 = vmatmul.mubr.bf16.gmra.mrb[28].mxu1 %v7613_v15  ;;  %v972_v2 = vshrl.u32 %v808_v39, 16  ;;  %v1618_v1 = vshll.u32 %v1562_v18, 16  ;;  %v1564_v39 = vsel %vm1556_vm15, %v7542_v10, 0  ;;  %v1501_v18 = vld [vmem:[#allocation2 + $0x88] sm:$0x1] }
 0x165   : > { %6321 = vmatprep.mubr.bf16.mxu1 %v7308_v41  ;;  %6350 = vmatpush3.bf16.msra.mxu1 %v6929_v44  ;;  %v810_v41 = vsel %vm780_vm8, %v742_v63, 0  ;;  %v1560_v44 = vsel %vm1556_vm15, %v1492_v8, 0  ;;  %v998_v0 = vrot.slane %v996_v60, 7  ;;  %v2864_v63 = vld [vmem:[#allocation2 + $0x40] sm:$0x1] }
 0x166   : > { %6351 = vmatprep.subr.bf16.mxu1 %v6931_v40  ;;  %v984_v35 = vshrl.u32 %v810_v41, 16  ;;  %v974_v28 = vrot.slane %v972_v2, 7  ;;  %v1606_v5 = vshll.u32 %v1560_v44, 16  ;;  %v1620_v21 = vrot.slane %v1618_v1, 1  ;;  %v7693_v8 = vld [vmem:[#allocation2 + $0x80] sm:$0xff] }
 0x167   : > { %v1604_v41 = vshrl.u32 %v1560_v44, 16 }
 0x168   : > { %v986_v56 = vrot.slane %v984_v35, 7  ;;  %v1608_v27 = vrot.slane %v1606_v5, 1  ;;  %v2866_v35 = vld [vmem:[#allocation2 + $0x58] sm:$0x1]  ;;  %v1570_v5 = vsel %vm1556_vm15, %v7588_v36, 0 }
 0x169   : > { %6352 = vmatpush3.bf16.msra.mxu1 %v6931_v40  ;;  %v1563_v40 = vsel %vm1557_vm0, %v1495_v3, 0 }
 0x16a   : > { %6385 = vmatprep.subr.bf16.mxu1 %v7627_v52  ;;  %v1623_v7 = vshll.u32 %v1563_v40, 16  ;;  %v1609_v38 = vor.u32 %v1608_v27, %v1604_v41 }
 0x16b   : > { %6182 = vmatmul.mubr.bf16.gmra.mrb[52].mxu0 %v958_v50  ;;  %v2949_v50 = vshll.u32 %v2910_v34, 16  ;;  %v6980_v34 = vld [vmem:[%s8421_s3 + $0xc0] sm:$0xff]  }
 0x16c   : > { %6185 = vmatprep.mubr.bf16.mxu0 %v970_v14  ;;  %6322 = vmatmul.mubr.bf16.gmra.mrb[0].mxu1 %v7301_v33  ;;  %v982_v33 = vsel %vm814_vm10, %v974_v28, %v7446_v43  ;;  %v1597_v43 = vor.u32 %v1596_v6, %v1592_v42  ;;  %v2912_v14 = vsel %vm1557_vm0, %v2864_v63, 0  ;;  %v1621_v28 = vor.u32 %v1620_v21, %v1616_v54  ;;  %v6981_v63 = vld [vmem:[%s8421_s3 + $0xc8] sm:$0xff]  }
 0x16d   : > { %6325 = vmatprep.mubr.bf16.mxu1 %v7348_v30  ;;  %v994_v30 = vsel %vm814_vm10, %v986_v56, %v7440_v59  ;;  %v1561_v59 = vsel %vm1557_vm0, %v1493_v31, 0  ;;  %v1625_v12 = vrot.slane %v1623_v7, 1  ;;  %v2951_v51 = vrot.slane %v2949_v50, 1  ;;  %v7721_v50 = vld [vmem:[#allocation2 + $0xb0] sm:$0xff] }
 0x16e   : > { %v1611_v37 = vshll.u32 %v1561_v59, 16  ;;  %v1635_v42 = vshll.u32 %v1565_v58, 16  ;;  %v1647_v6 = vshll.u32 %v1567_v17, 16  ;;  %v2961_v55 = vshll.u32 %v2912_v14, 16  ;;  %v1503_v59 = vld [vmem:[#allocation2 + $0xa0] sm:$0x1] }
 0x16f   : > { %v1626_v31 = vsel %vm1590_vm1, %v1621_v28, %v1625_v12  ;;  %v1571_v20 = vsel %vm1557_vm0, %v1503_v59, 0  ;;  %v2997_v58 = vshll.u32 %v2918_v25, 16  ;;  %v6982_v17 = vld [vmem:[%s8421_s3 + $0xd0] sm:$0xff]  }
 0x170   : > { %v1613_v2 = vrot.slane %v1611_v37, 1  ;;  %v1637_v40 = vrot.slane %v1635_v42, 1  ;;  %v2963_v37 = vrot.slane %v2961_v55, 1  ;;  %v1507_v42 = vld [vmem:[#allocation2 + $0xd0] sm:$0x1] }
 0x171   : > { %v1575_v59 = vsel %vm1557_vm0, %v1507_v42, 0  ;;  %v2876_v25 = vld [vmem:[#allocation2 + $0xd0] sm:$0x1] }
 0x172   : > { %v2924_v42 = vsel %vm1557_vm0, %v2876_v25, 0 }
 0x173   : > { %6186 = vmatmul.mubr.bf16.gmra.mrb[56].mxu0 %v982_v33  ;;  %v1614_v33 = vsel %vm1590_vm1, %v1609_v38, %v1613_v2 }
 0x174   : > { %6189 = vmatprep.mubr.bf16.mxu0 %v994_v30  ;;  %6326 = vmatmul.mubr.bf16.gmra.mrb[4].mxu1 %v7342_v26  ;;  %v1602_v26 = vsel %vm1590_vm1, %v1597_v43, %v1601_v24  ;;  %v2868_v30 = vld [vmem:[#allocation2 + $0x70] sm:$0x1]  ;;  %v1568_v43 = vsel %vm1556_vm15, %v7693_v8, 0  ;;  %v2952_v24 = vsel %vm1590_vm1, %v1609_v38, %v2951_v51  ;;  %v1671_v38 = vshll.u32 %v1571_v20, 16 }
 0x175   : > { %6329 = vmatprep.mubr.bf16.mxu1 %v7402_v57  ;;  %v1006_v57 = vsel %vm814_vm10, %v998_v0, %v7491_v49  ;;  %v1566_v49 = vsel %vm1556_vm15, %v7563_v13, 0  ;;  %v1628_v0 = vshrl.u32 %v1564_v39, 16  ;;  %v1654_v27 = vshll.u32 %v1568_v43, 16 }
 0x176   : > { %v1642_v56 = vshll.u32 %v1566_v49, 16  ;;  %v1640_v1 = vshrl.u32 %v1566_v49, 16  ;;  %v2916_v7 = vsel %vm1557_vm0, %v2868_v30, 0  ;;  %v1652_v55 = vshrl.u32 %v1568_v43, 16  ;;  %v2874_v30 = vld [vmem:[#allocation2 + $0xb8] sm:$0x1] }
 0x177   : > { %v2985_v2 = vshll.u32 %v2916_v7, 16  ;;  %v1656_v14 = vrot.slane %v1654_v27, 1 }
 0x178   : > { %v1644_v44 = vrot.slane %v1642_v56, 1  ;;  %v2964_v56 = vsel %vm1590_vm1, %v1621_v28, %v2963_v37  ;;  %v7763_v37 = vld [vmem:[#allocation2 + $0xe0] sm:$0xff] }
 0x17a   : > { %v7715_v21 = vor.u32 %v1644_v44, %v1640_v1  ;;  %v2987_v44 = vrot.slane %v2985_v2, 1  ;;  %v6983_v1 = vld [vmem:[%s8421_s3 + $0xd8] sm:$0xff]  }
 0x17b   : > { %6190 = vmatmul.mubr.bf16.gmra.mrb[60].mxu0 %v1006_v57  ;;  %v1569_v57 = vsel %vm1557_vm0, %v1501_v18, 0  ;;  %v1657_v18 = vor.u32 %v1656_v14, %v1652_v55  ;;  %v1511_v14 = vld [vmem:[#allocation2 + $0x100] sm:$0x1] }
 0x17c   : > { %6330 = vmatmul.mubr.bf16.gmra.mrb[8].mxu1 %v7392_v48  ;;  %6209 = vmatprep.mubr.bf16.mxu0 %v1602_v26  ;;  %v1630_v48 = vshll.u32 %v1564_v39, 16  ;;  %v1649_v26 = vrot.slane %v1647_v6, 1  ;;  %v1666_v39 = vshll.u32 %v1570_v5, 16  ;;  %v1659_v49 = vshll.u32 %v1569_v57, 16  ;;  %v7765_v57 = vld [vmem:[#allocation2 + $0xf8] sm:$0xff] }
 0x17d   : > { %6333 = vmatprep.mubr.bf16.mxu1 %v7454_v11  ;;  %v2914_v11 = vsel %vm1557_vm0, %v2866_v35, 0  ;;  %v6933_v35 = vld [vmem:[%s8421_s3 + $0x188] sm:$0xff]  }
 0x17e   : > { %v1632_v60 = vrot.slane %v1630_v48, 1  ;;  %v2973_v3 = vshll.u32 %v2914_v11, 16  ;;  %v2872_v48 = vld [vmem:[#allocation2 + $0xa0] sm:$0x1]  ;;  %v1650_v12 = vsel %vm1590_vm1, %v7715_v21, %v1649_v26  ;;  %v1668_v51 = vrot.slane %v1666_v39, 1  ;;  %v6935_v39 = vld [vmem:[%s8421_s3 + $0x198] sm:$0xff]  }
 0x17f   : > { %v7736_v11 = vsel %vm1556_vm15, %v7721_v50, 0  ;;  %v1661_v28 = vrot.slane %v1659_v49, 1  ;;  %v2999_v26 = vrot.slane %v2997_v58, 1  ;;  %v2988_v49 = vsel %vm1590_vm1, %v7715_v21, %v2987_v44 }
 0x180   : > { %v2975_v41 = vrot.slane %v2973_v3, 1  ;;  %v2920_v3 = vsel %vm1557_vm0, %v2872_v48, 0  ;;  %v1678_v43 = vshll.u32 %v7736_v11, 16  ;;  %v1676_v58 = vshrl.u32 %v7736_v11, 16  ;;  %v1509_v48 = vld [vmem:[#allocation2 + $0xe8] sm:$0x1] }
 0x181   : > { %v1662_v27 = vsel %vm1590_vm1, %v1657_v18, %v1661_v28  ;;  %v7788_v21 = vsel %vm1556_vm15, %v7765_v57, 0  ;;  %v1577_v28 = vsel %vm1557_vm0, %v1509_v48, 0 }
 0x182   : > { %v1680_v7 = vrot.slane %v1678_v43, 1 }
 0x183   : > { %6210 = vmatmul.mubr.bf16.vlgmr.msra.gmra.mrb[32].mxu0 %v1614_v33  ;;  %v1505_v33 = vld [vmem:[#allocation2 + $0xb8] sm:$0x1] }
 0x184   : > { %6213 = vmatprep.mubr.bf16.mxu0 %v1626_v31  ;;  %6334 = vmatmul.mubr.bf16.gmra.mrb[12].mxu1 %v7444_v46  ;;  %v1633_v46 = vor.u32 %v1632_v60, %v1628_v0  ;;  %v7742_v60 = vsel %vm1556_vm15, %v7613_v15, 0  ;;  %v1664_v31 = vshrl.u32 %v1570_v5, 16  ;;  %v6934_v0 = vld [vmem:[%s8421_s3 + $0x190] sm:$0xff]   ;;  %v1573_v5 = vsel %vm1557_vm0, %v1505_v33, 0 }
 0x185   : > { %6353 = vmatprep.mubr.bf16.mxu1 %v2952_v24  ;;  %6242 = vmatpush3.bf16.msra.mxu0 %v6980_v34  ;;  %v1673_v24 = vrot.slane %v1671_v38, 1  ;;  %v1690_v61 = vshll.u32 %v7742_v60, 16  ;;  %v1695_v34 = vshll.u32 %v1575_v59, 16  ;;  %v3000_v38 = vsel %vm1590_vm1, %v1657_v18, %v2999_v26  ;;  %v7811_v59 = vld [vmem:[#allocation2 + $0x128] sm:$0xff]  ;;  %v2880_v26 = vld [vmem:[#allocation2 + $0x100] sm:$0x1] }
 0x186   : > { %6243 = vmatprep.subr.bf16.mxu0 %v6981_v63  ;;  %v1638_v54 = vsel %vm1590_vm1, %v1633_v46, %v1637_v40  ;;  %v2976_v6 = vsel %vm1590_vm1, %v1633_v46, %v2975_v41  ;;  %v2922_v40 = vsel %vm1557_vm0, %v2874_v30, 0  ;;  %v3009_v46 = vshll.u32 %v2920_v3, 16  ;;  %v6936_v30 = vld [vmem:[%s8421_s3 + $0x1a0] sm:$0xff]   ;;  %v6985_v3 = vld [vmem:[%s8421_s3 + $0xe8] sm:$0xff]  }
 0x187   : > { %v3021_v20 = vshll.u32 %v2922_v40, 16  ;;  %v1692_v2 = vrot.slane %v1690_v61, 1  ;;  %v1579_v33 = vsel %vm1557_vm0, %v1511_v14, 0  ;;  %v1707_v40 = vshll.u32 %v1577_v28, 16 }
 0x188   : > { %v1719_v43 = vshll.u32 %v1579_v33, 16  ;;  %v1712_v14 = vshrl.u32 %v7788_v21, 16  ;;  %v7849_v33 = vld [vmem:[#allocation2 + $0x140] sm:$0xff] }
 0x189   : > { %6244 = vmatpush3.bf16.msra.mxu0 %v6981_v63  ;;  %v1683_v63 = vshll.u32 %v1573_v5, 16  ;;  %v3023_v18 = vrot.slane %v3021_v20, 1  ;;  %v1515_v20 = vld [vmem:[#allocation2 + $0x130] sm:$0x1] }
 0x18a   : > { %6245 = vmatprep.subr.bf16.mxu0 %v6982_v17 }
 0x18b   : > { %6214 = vmatmul.mubr.bf16.gmra.mrb[36].mxu0 %v1638_v54  ;;  %v7778_v54 = vsel %vm1556_vm15, %v7763_v37, 0  ;;  %v1685_v55 = vrot.slane %v1683_v63, 1 }
 0x18c   : > { %6217 = vmatprep.mubr.bf16.mxu0 %v1650_v12  ;;  %6354 = vmatmul.mubr.bf16.vlgmr.msra.gmra.mrb[16].mxu1 %v2964_v56  ;;  %v1688_v12 = vshrl.u32 %v7742_v60, 16  ;;  %v1697_v56 = vrot.slane %v1695_v34, 1  ;;  %v1702_v11 = vshll.u32 %v7778_v54, 16  ;;  %v6937_v34 = vld [vmem:[%s8421_s3 + $0x1a8] sm:$0xff]  }
 0x18d   : > { %6386 = vmatpush3.bf16.msra.mxu1 %v7627_v52  ;;  %6357 = vmatprep.mubr.bf16.mxu1 %v2976_v6  ;;  %v7753_v52 = vor.u32 %v1668_v51, %v1664_v31  ;;  %v3011_v51 = vrot.slane %v3009_v46, 1  ;;  %v1681_v6 = vor.u32 %v1680_v7, %v1676_v58  ;;  %v1714_v31 = vshll.u32 %v7788_v21, 16 }
 0x18e   : > { %6387 = vmatprep.subr.bf16.mxu1 %v6933_v35  ;;  %6246 = vmatpush3.bf16.msra.mxu0 %v6982_v17  ;;  %v2878_v17 = vld [vmem:[#allocation2 + $0xe8] sm:$0x1]  ;;  %v7799_v60 = vor.u32 %v1692_v2, %v1688_v12  ;;  %v1704_v61 = vrot.slane %v1702_v11, 1  ;;  %v2882_v2 = vld [vmem:[#allocation2 + $0x118] sm:$0x1]  ;;  %v2928_v58 = vsel %vm1557_vm0, %v2880_v26, 0 }
 0x18f   : > { %6247 = vmatprep.subr.bf16.mxu0 %v6983_v1  ;;  %v1674_v41 = vsel %vm1590_vm1, %v7753_v52, %v1673_v24  ;;  %v2926_v44 = vsel %vm1557_vm0, %v2878_v17, 0  ;;  %v7809_v24 = vld [vmem:[#allocation2 + $0x110] sm:$0xff]  ;;  %v1686_v5 = vsel %vm1590_vm1, %v1681_v6, %v1685_v55  ;;  %v1716_v7 = vrot.slane %v1714_v31, 1  ;;  %v6987_v55 = vld [vmem:[%s8421_s3 + $0xf8] sm:$0xff]  }
 0x190   : > { %v1698_v46 = vsel %vm1590_vm1, %v7799_v60, %v1697_v56  ;;  %v1580_v63 = vsel %vm1556_vm15, %v7809_v24, 0  ;;  %v3024_v25 = vsel %vm1590_vm1, %v1681_v6, %v3023_v18  ;;  %v1709_v17 = vrot.slane %v1707_v40, 1  ;;  %v6938_v56 = vld [vmem:[%s8421_s3 + $0x1b0] sm:$0xff]   ;;  %v7851_v31 = vld [vmem:[#allocation2 + $0x158] sm:$0xff] }
 0x191   : > { %6388 = vmatpush3.bf16.msra.mxu1 %v6933_v35  ;;  %v6984_v35 = vld [vmem:[%s8421_s3 + $0xe0] sm:$0xff]   ;;  %v1726_v12 = vshll.u32 %v1580_v63, 16  ;;  %v2930_v6 = vsel %vm1557_vm0, %v2882_v2, 0  ;;  %v3057_v28 = vshll.u32 %v2928_v58, 16  ;;  %v1584_v26 = vsel %vm1556_vm15, %v7849_v33, 0 }
 0x192   : > { %6389 = vmatprep.subr.bf16.mxu1 %v6934_v0  ;;  %6248 = vmatpush3.bf16.msra.mxu0 %v6983_v1  ;;  %v3045_v1 = vshll.u32 %v2926_v44, 16 }
 0x193   : > { %6218 = vmatmul.mubr.bf16.gmra.mrb[40].mxu0 %v1662_v27  ;;  %6249 = vmatprep.subr.bf16.mxu0 %v6984_v35  ;;  %v3012_v27 = vsel %vm1590_vm1, %v7753_v52, %v3011_v51  ;;  %v1582_v52 = vsel %vm1556_vm15, %v7811_v59, 0  ;;  %v7840_v51 = vor.u32 %v1716_v7, %v1712_v14  ;;  %v1519_v7 = vld [vmem:[#allocation2 + $0x160] sm:$0x1]  ;;  %v1750_v14 = vshll.u32 %v1584_v26, 16 }
 0x194   : > { %6221 = vmatprep.mubr.bf16.mxu0 %v1674_v41  ;;  %6358 = vmatmul.mubr.bf16.gmra.mrb[20].mxu1 %v2988_v49  ;;  %v1700_v41 = vshrl.u32 %v7778_v54, 16  ;;  %v1513_v49 = vld [vmem:[#allocation2 + $0x118] sm:$0x1]  ;;  %v1583_v54 = vsel %vm1557_vm0, %v1515_v20, 0  ;;  %v3047_v11 = vrot.slane %v3045_v1, 1  ;;  %v1586_v20 = vsel %vm1556_vm15, %v7851_v31, 0 }
 0x195   : > { %6361 = vmatprep.mubr.bf16.mxu1 %v3000_v38  ;;  %6390 = vmatpush3.bf16.msra.mxu1 %v6934_v0  ;;  %v3033_v0 = vshll.u32 %v2924_v42, 16  ;;  %v1581_v21 = vsel %vm1557_vm0, %v1513_v49, 0  ;;  %v1738_v42 = vshll.u32 %v1582_v52, 16  ;;  %v1587_v58 = vsel %vm1557_vm0, %v1519_v7, 0  ;;  %v3408_v7 = vld [vmem:[#allocation2 + $0x30] sm:$0x80] }
 0x196   : > { %6391 = vmatprep.subr.bf16.mxu1 %v6935_v39  ;;  %6250 = vmatpush3.bf16.msra.mxu0 %v6984_v35  ;;  %v1721_v35 = vrot.slane %v1719_v43, 1  ;;  %v1705_v48 = vor.u32 %v1704_v61, %v1700_v41  ;;  %v1731_v18 = vshll.u32 %v1581_v21, 16  ;;  %v3069_v43 = vshll.u32 %v2930_v6, 16  ;;  %v2057_v21 = vld [vmem:[#allocation2 + $0x18] sm:$0x80] }
 0x197   : > { %6251 = vmatprep.subr.bf16.mxu0 %v6985_v3  ;;  %v3035_v38 = vrot.slane %v3033_v0, 1  ;;  %v2884_v0 = vld [vmem:[#allocation2 + $0x130] sm:$0x1]  ;;  %v1740_v1 = vrot.slane %v1738_v42, 1  ;;  %v2059_v42 = vld [vmem:[#allocation2 + $0x30] sm:$0x80] }
 0x198   : > { %v1710_v44 = vsel %vm1590_vm1, %v1705_v48, %v1709_v17  ;;  %v1722_v61 = vsel %vm1590_vm1, %v7840_v51, %v1721_v35  ;;  %v1733_v49 = vrot.slane %v1731_v18, 1  ;;  %v2886_v35 = vld [vmem:[#allocation2 + $0x148] sm:$0x1]  ;;  %v3071_v17 = vrot.slane %v3069_v43, 1 }
 0x199   : > { %6392 = vmatpush3.bf16.msra.mxu1 %v6935_v39  ;;  %v6986_v39 = vld [vmem:[%s8421_s3 + $0xf0] sm:$0xff]   ;;  %v3036_v40 = vsel %vm1590_vm1, %v7799_v60, %v3035_v38  ;;  %v2932_v60 = vsel %vm1557_vm0, %v2884_v0, 0 }
 0x19a   : > { %6393 = vmatprep.subr.bf16.mxu1 %v6936_v30  ;;  %6252 = vmatpush3.bf16.msra.mxu0 %v6985_v3  ;;  %v1728_v3 = vrot.slane %v1726_v12, 1  ;;  %v7879_v12 = vld [vmem:[#allocation2 + $0x170] sm:$0xff] }
 0x19b   : > { %6222 = vmatmul.mubr.bf16.gmra.mrb[44].mxu0 %v1686_v5  ;;  %6253 = vmatprep.subr.bf16.mxu0 %v6986_v39  ;;  %v6939_v5 = vld [vmem:[%s8421_s3 + $0x1b8] sm:$0xff]   ;;  %v1588_v43 = vsel %vm1556_vm15, %v7879_v12, 0 }
 0x19c   : > { %6225 = vmatprep.mubr.bf16.mxu0 %v1698_v46  ;;  %6362 = vmatmul.mubr.bf16.gmra.mrb[24].mxu1 %v3012_v27  ;;  %v1724_v46 = vshrl.u32 %v1580_v63, 16  ;;  %v1517_v27 = vld [vmem:[#allocation2 + $0x148] sm:$0x1]  ;;  %v7873_v63 = vld [vmem:[%s8421_s3 + $0x1c0] sm:$0xff]  }
 0x19d   : > { %6365 = vmatprep.mubr.bf16.mxu1 %v3024_v25  ;;  %6394 = vmatpush3.bf16.msra.mxu1 %v6936_v30  ;;  %v1743_v30 = vshll.u32 %v1583_v54, 16  ;;  %v3059_v25 = vrot.slane %v3057_v28, 1  ;;  %v3081_v54 = vshll.u32 %v2932_v60, 16  ;;  %v2061_v28 = vld [vmem:[#allocation2 + $0x48] sm:$0x80] }
 0x19e   : > { %6395 = vmatprep.subr.bf16.mxu1 %v6937_v34  ;;  %6254 = vmatpush3.bf16.msra.mxu0 %v6986_v39  ;;  %v1736_v39 = vshrl.u32 %v1582_v52, 16  ;;  %v1729_v41 = vor.u32 %v1728_v3, %v1724_v46  ;;  %v1585_v52 = vsel %vm1557_vm0, %v1517_v27, 0  ;;  %v2105_v46 = vsel %vm780_vm8, %v2057_v21, 0 }
 0x19f   : > { %6255 = vmatprep.subr.bf16.mxu0 %v6987_v55  ;;  %v1745_v2 = vrot.slane %v1743_v30, 1  ;;  %v1767_v30 = vshll.u32 %v1587_v58, 16  ;;  %v3060_v3 = vsel %vm1590_vm1, %v7840_v51, %v3059_v25  ;;  %v2107_v51 = vsel %vm780_vm8, %v2059_v42, 0 }
 0x1a0   : > { %v1741_v38 = vor.u32 %v1740_v1, %v1736_v39  ;;  %v1734_v6 = vsel %vm1590_vm1, %v1729_v41, %v1733_v49  ;;  %v3072_v0 = vsel %vm1590_vm1, %v1729_v41, %v3071_v17  ;;  %v2888_v1 = vld [vmem:[#allocation2 + $0x160] sm:$0x1]  ;;  %v2109_v27 = vsel %vm780_vm8, %v2061_v28, 0 }
 0x1a1   : > { %6396 = vmatpush3.bf16.msra.mxu1 %v6937_v34  ;;  %v3048_v34 = vsel %vm1590_vm1, %v1705_v48, %v3047_v11  ;;  %v1762_v48 = vshll.u32 %v1586_v20, 16  ;;  %v1755_v11 = vshll.u32 %v1585_v52, 16  ;;  %v3083_v60 = vrot.slane %v3081_v54, 1 }
 0x1a2   : > { %6397 = vmatprep.subr.bf16.mxu1 %v6938_v56  ;;  %6256 = vmatpush3.bf16.msra.mxu0 %v6987_v55  ;;  %v1752_v55 = vrot.slane %v1750_v14, 1  ;;  %v1774_v41 = vshll.u32 %v1588_v43, 16  ;;  %v2936_v14 = vsel %vm1557_vm0, %v2888_v1, 0  ;;  %v2138_v52 = vshrl.u32 %v2105_v46, 16 }
 0x1a3   : > { %6226 = vmatmul.mubr.bf16.gmra.mrb[48].mxu0 %v1710_v44  ;;  %v1746_v44 = vsel %vm1590_vm1, %v1741_v38, %v1745_v2  ;;  %v1764_v18 = vrot.slane %v1762_v48, 1  ;;  %v1757_v25 = vrot.slane %v1755_v11, 1  ;;  %v1769_v2 = vrot.slane %v1767_v30, 1  ;;  %v7911_v11 = vld [vmem:[#allocation2 + $0x38] sm:$0xff]  ;;  %v2063_v30 = vld [vmem:[#allocation2 + $0x60] sm:$0x80] }
 0x1a4   : > { %6229 = vmatprep.mubr.bf16.mxu0 %v1722_v61  ;;  %6366 = vmatmul.mubr.bf16.gmra.mrb[28].mxu1 %v3036_v40  ;;  %v1521_v40 = vld [vmem:[#allocation2 + $0x178] sm:$0x1]  ;;  %v2150_v48 = vshrl.u32 %v2107_v51, 16  ;;  %v2162_v17 = vshrl.u32 %v2109_v27, 16  ;;  %v7908_v54 = vsel %vm780_vm8, %v3408_v7, 0  ;;  %v1776_v42 = vrot.slane %v1774_v41, 1 }
 0x1a5   : > { %6369 = vmatprep.mubr.bf16.mxu1 %v3048_v34  ;;  %6398 = vmatpush3.bf16.msra.mxu1 %v6938_v56  ;;  %v2934_v56 = vsel %vm1557_vm0, %v2886_v35, 0  ;;  %v1760_v34 = vshrl.u32 %v1586_v20, 16  ;;  %v1589_v20 = vsel %vm1557_vm0, %v1521_v40, 0  ;;  %v2108_v28 = vsel %vm781_vm9, %v7533_v62, 0  ;;  %v2892_v62 = vld [vmem:[#allocation2 + $0x190] sm:$0x1] }
 0x1a6   : > { %6399 = vmatprep.subr.bf16.mxu1 %v6939_v5  ;;  %v3093_v61 = vshll.u32 %v2934_v56, 16  ;;  %v7904_v56 = vld [vmem:[#allocation2 + $0x188] sm:$0xff]  ;;  %v2111_v1 = vsel %vm780_vm8, %v2063_v30, 0  ;;  %v2140_v7 = vrot.slane %v2138_v52, 7 }
 0x1a7   : > { %v1765_v49 = vor.u32 %v1764_v18, %v1760_v34  ;;  %v3084_v18 = vsel %vm1590_vm1, %v1741_v38, %v3083_v60  ;;  %v2939_v40 = vsel %vm1556_vm15, %v7904_v56, 0  ;;  %v2065_v38 = vld [vmem:[#allocation2 + $0x78] sm:$0x80]  ;;  %v2154_v34 = vshrl.u32 %v2108_v28, 16  ;;  %v7943_v30 = vld [vmem:[#allocation2 + $0x68] sm:$0xff] }
 0x1a8   : > { %v3095_v35 = vrot.slane %v3093_v61, 1  ;;  %v3124_v60 = vshll.u32 %v2939_v40, 16 }
 0x1a9   : > { %6400 = vmatpush3.bf16.msra.mxu1 %v6939_v5  ;;  %v1748_v5 = vshrl.u32 %v1584_v26, 16  ;;  %v2890_v26 = vld [vmem:[#allocation2 + $0x178] sm:$0x1] }
 0x1aa   : > { %6433 = vmatprep.subr.bf16.mxu1 %v7873_v63  ;;  %v2938_v58 = vsel %vm1557_vm0, %v2890_v26, 0  ;;  %v2940_v26 = vsel %vm1557_vm0, %v2892_v62, 0 }
 0x1ab   : > { %6230 = vmatmul.mubr.bf16.gmra.mrb[52].mxu0 %v1734_v6  ;;  %v1753_v39 = vor.u32 %v1752_v55, %v1748_v5  ;;  %v1779_v6 = vshll.u32 %v1589_v20, 16  ;;  %v3105_v55 = vshll.u32 %v2936_v14, 16  ;;  %v1772_v5 = vshrl.u32 %v1588_v43, 16  ;;  %v3410_v43 = vld [vmem:[#allocation2 + $0x48] sm:$0x80] }
 0x1ac   : > { %6233 = vmatprep.mubr.bf16.mxu0 %v1746_v44  ;;  %6370 = vmatmul.mubr.bf16.gmra.mrb[0].mxu1 %v3060_v3  ;;  %v2110_v44 = vsel %vm781_vm9, %v7542_v10, 0  ;;  %v1770_v3 = vsel %vm1590_vm1, %v1765_v49, %v1769_v2  ;;  %v3117_v61 = vshll.u32 %v2938_v58, 16  ;;  %v3441_v10 = vsel %vm781_vm9, %v7911_v11, 0 }
 0x1ad   : > { %6373 = vmatprep.mubr.bf16.mxu1 %v3072_v0  ;;  %v1758_v21 = vsel %vm1590_vm1, %v1753_v39, %v1757_v25  ;;  %v3096_v0 = vsel %vm1590_vm1, %v1753_v39, %v3095_v35  ;;  %v2166_v46 = vshrl.u32 %v2110_v44, 16  ;;  %v1777_v51 = vor.u32 %v1776_v42, %v1772_v5 }
 0x1ae   : > { %v1781_v27 = vrot.slane %v1779_v6, 1  ;;  %v3107_v39 = vrot.slane %v3105_v55, 1  ;;  %v2152_v25 = vrot.slane %v2150_v48, 7  ;;  %v3119_v41 = vrot.slane %v3117_v61, 1 }
 0x1af   : > { %v3473_v2 = vshrl.u32 %v7908_v54, 16  ;;  %v3477_v20 = vshrl.u32 %v3441_v10, 16  ;;  %v2164_v14 = vrot.slane %v2162_v17, 7  ;;  %v2174_v35 = vshrl.u32 %v2111_v1, 16  ;;  %v3412_v54 = vld [vmem:[#allocation2 + $0x60] sm:$0x80] }
 0x1b0   : > { %v2113_v58 = vsel %vm780_vm8, %v2065_v38, 0  ;;  %v3442_v52 = vsel %vm780_vm8, %v3410_v43, 0  ;;  %v2156_v42 = vrot.slane %v2154_v34, 7  ;;  %v2168_v48 = vrot.slane %v2166_v46, 7 }
 0x1b1   : > { %v2112_v6 = vsel %vm781_vm9, %v7563_v13, 0  ;;  %v1782_v55 = vsel %vm1590_vm1, %v1777_v51, %v1781_v27  ;;  %v2148_v17 = vsel %vm814_vm10, %v2140_v7, %v7486_v32  ;;  %v2157_v5 = vshll.u32 %v2108_v28, 16 }
 0x1b2   : > { %v3120_v61 = vsel %vm1590_vm1, %v1777_v51, %v3119_v41  ;;  %v3479_v62 = vrot.slane %v3477_v20, 7  ;;  %v2169_v1 = vshll.u32 %v2110_v44, 16  ;;  %v3122_v38 = vshrl.u32 %v2939_v40, 16 }
 0x1b3   : > { %6234 = vmatmul.mubr.bf16.gmra.mrb[56].mxu0 %v1758_v21  ;;  %v7935_v21 = vld [vmem:[#allocation2 + $0x50] sm:$0xff]  ;;  %v3444_v32 = vsel %vm780_vm8, %v3412_v54, 0  ;;  %v2159_v28 = vor.u32 %v2157_v5, %v2156_v42  ;;  %v2178_v34 = vshrl.u32 %v2112_v6, 16  ;;  %v3480_v46 = vshll.u32 %v3441_v10, 16  ;;  %v7960_v42 = vld [vmem:[#allocation2 + $0x98] sm:$0xff] }
 0x1b4   : > { %6237 = vmatprep.mubr.bf16.mxu0 %v1770_v3  ;;  %6374 = vmatmul.mubr.bf16.gmra.mrb[4].mxu1 %v3084_v18  ;;  %v3108_v3 = vsel %vm1590_vm1, %v1765_v49, %v3107_v39  ;;  %v3126_v18 = vrot.slane %v3124_v60, 1  ;;  %v3443_v13 = vsel %vm781_vm9, %v7935_v21, 0  ;;  %v3445_v49 = vsel %vm781_vm9, %v7943_v30, 0  ;;  %v3414_v5 = vld [vmem:[#allocation2 + $0x78] sm:$0x80] }
 0x1b5   : > { %6377 = vmatprep.mubr.bf16.mxu1 %v3096_v0  ;;  %v3129_v0 = vshll.u32 %v2940_v26, 16  ;;  %v2186_v27 = vshrl.u32 %v2113_v58, 16  ;;  %v2171_v51 = vor.u32 %v2169_v1, %v2168_v48  ;;  %v3489_v39 = vshrl.u32 %v3443_v13, 16  ;;  %v2069_v48 = vld [vmem:[#allocation2 + $0xa8] sm:$0x80] }
 0x1b6   : > { %v7957_v43 = vor.u32 %v3126_v18, %v3122_v38  ;;  %v3475_v60 = vrot.slane %v3473_v2, 7  ;;  %v3482_v44 = vor.u32 %v3480_v46, %v3479_v62  ;;  %v3501_v41 = vshrl.u32 %v3445_v49, 16  ;;  %v3416_v18 = vld [vmem:[#allocation2 + $0x90] sm:$0x80] }
 0x1b7   : > { %v3131_v7 = vrot.slane %v3129_v0, 1  ;;  %v3485_v40 = vshrl.u32 %v3442_v52, 16  ;;  %v3497_v26 = vshrl.u32 %v3444_v32, 16  ;;  %v2180_v20 = vrot.slane %v2178_v34, 7 }
 0x1b8   : > { %v2176_v54 = vrot.slane %v2174_v35, 7  ;;  %v2116_v10 = vsel %vm781_vm9, %v7588_v36, 0  ;;  %v2172_v58 = vsel %vm814_vm10, %v2164_v14, %v2171_v51  ;;  %v3491_v52 = vrot.slane %v3489_v39, 7 }
 0x1b9   : > { %v3132_v2 = vsel %vm1590_vm1, %v7957_v43, %v3131_v7  ;;  %v2181_v0 = vshll.u32 %v2112_v6, 16  ;;  %v3503_v35 = vrot.slane %v3501_v41, 7  ;;  %v3447_v36 = vsel %vm781_vm9, %v7693_v8, 0 }
 0x1ba   : > { %v3492_v14 = vshll.u32 %v3443_v13, 16  ;;  %v3449_v6 = vsel %vm781_vm9, %v7960_v42, 0  ;;  %v2202_v38 = vshrl.u32 %v2116_v10, 16  ;;  %v3504_v32 = vshll.u32 %v3445_v49, 16  ;;  %v6941_v49 = vld [vmem:[%s8421_s3 + $0x1c8] sm:$0xff]  }
 0x1bb   : > { %6238 = vmatmul.mubr.bf16.gmra.mrb[60].mxu0 %v1782_v55  ;;  %v2160_v55 = vsel %vm814_vm10, %v2152_v25, %v2159_v28  ;;  %v3483_v25 = vsel %vm814_vm10, %v3475_v60, %v3482_v44  ;;  %v2183_v1 = vor.u32 %v2181_v0, %v2180_v20  ;;  %v2117_v28 = vsel %vm780_vm8, %v2069_v48, 0 }
 0x1bc   : > { %6257 = vmatprep.mubr.bf16.mxu0 %v2148_v17  ;;  %6378 = vmatmul.mubr.bf16.gmra.mrb[8].mxu1 %v3108_v3  ;;  %v2188_v17 = vrot.slane %v2186_v27, 7  ;;  %v2067_v3 = vld [vmem:[#allocation2 + $0x90] sm:$0x80]  ;;  %v3494_v34 = vor.u32 %v3492_v14, %v3491_v52  ;;  %v3446_v8 = vsel %vm780_vm8, %v3414_v5, 0  ;;  %v3513_v46 = vshrl.u32 %v3447_v36, 16 }
 0x1bd   : > { %6381 = vmatprep.mubr.bf16.mxu1 %v3120_v61  ;;  %v3487_v61 = vrot.slane %v3485_v40, 7  ;;  %v2115_v62 = vsel %vm780_vm8, %v2067_v3, 0  ;;  %v3448_v13 = vsel %vm780_vm8, %v3416_v18, 0  ;;  %v3499_v27 = vrot.slane %v3497_v26, 7 }
 0x1be   : > { %v3506_v51 = vor.u32 %v3504_v32, %v3503_v35  ;;  %v3525_v7 = vshrl.u32 %v3449_v6, 16  ;;  %v2198_v39 = vshrl.u32 %v2115_v62, 16  ;;  %v2210_v60 = vshrl.u32 %v2117_v28, 16  ;;  %v3418_v35 = vld [vmem:[#allocation2 + $0xa8] sm:$0x80] }
 0x1bf   : > { %v2204_v44 = vrot.slane %v2202_v38, 7  ;;  %v2184_v41 = vsel %vm814_vm10, %v2176_v54, %v2183_v1  ;;  %v3509_v40 = vshrl.u32 %v3446_v8, 16  ;;  %v3521_v20 = vshrl.u32 %v3448_v13, 16  ;;  %v2071_v54 = vld [vmem:[#allocation2 + $0xc0] sm:$0x80] }
 0x1c0   : > { %v2120_v3 = vsel %vm781_vm9, %v7613_v15, 0  ;;  %v2196_v26 = vsel %vm814_vm10, %v2188_v17, %v7545_v16  ;;  %v2205_v52 = vshll.u32 %v2116_v10, 16  ;;  %v3507_v48 = vsel %vm814_vm10, %v3499_v27, %v3506_v51  ;;  %v6943_v51 = vld [vmem:[%s8421_s3 + $0x1d8] sm:$0xff]  }
 0x1c1   : > { %v3527_v18 = vrot.slane %v3525_v7, 7  ;;  %v3451_v0 = vsel %vm781_vm9, %v7721_v50, 0  ;;  %v2200_v15 = vrot.slane %v2198_v39, 7  ;;  %v2212_v16 = vrot.slane %v2210_v60, 7  ;;  %v6942_v50 = vld [vmem:[%s8421_s3 + $0x1d0] sm:$0xff]  }
 0x1c2   : > { %v3516_v17 = vshll.u32 %v3447_v36, 16  ;;  %v2207_v5 = vor.u32 %v2205_v52, %v2204_v44  ;;  %v3511_v14 = vrot.slane %v3509_v40, 7  ;;  %v3528_v62 = vshll.u32 %v3449_v6, 16  ;;  %v3424_v52 = vld [vmem:[#allocation2 + $0xf0] sm:$0x80] }
 0x1c3   : > { %6258 = vmatmul.mubr.bf16.vlgmr.msra.gmra.mrb[32].mxu0 %v2160_v55  ;;  %v7987_v55 = vld [vmem:[#allocation2 + $0xc8] sm:$0xff]  ;;  %v3537_v38 = vshrl.u32 %v3451_v0, 16  ;;  %v3523_v32 = vrot.slane %v3521_v20, 7  ;;  %v2220_v7 = vsel %vm814_vm10, %v2212_v16, %v7570_v29  ;;  %v3455_v20 = vsel %vm781_vm9, %v7763_v37, 0 }
 0x1c4   : > { %6261 = vmatprep.mubr.bf16.mxu0 %v2172_v58  ;;  %6382 = vmatmul.mubr.bf16.gmra.mrb[12].mxu1 %v3132_v2  ;;  %v3495_v58 = vsel %vm814_vm10, %v3487_v61, %v3494_v34  ;;  %v3515_v2 = vrot.slane %v3513_v46, 7  ;;  %v3453_v10 = vsel %vm781_vm9, %v7987_v55, 0  ;;  %v2226_v61 = vshrl.u32 %v2120_v3, 16 }
 0x1c5   : > { %6401 = vmatprep.mubr.bf16.mxu1 %v3483_v25  ;;  %v3420_v25 = vld [vmem:[#allocation2 + $0xc0] sm:$0x80]  ;;  %v3530_v28 = vor.u32 %v3528_v62, %v3527_v18  ;;  %v3450_v34 = vsel %vm780_vm8, %v3418_v35, 0  ;;  %v3549_v8 = vshrl.u32 %v3453_v10, 16  ;;  %v2208_v46 = vsel %vm814_vm10, %v2200_v15, %v2207_v5 }
 0x1c6   : > { %v3518_v1 = vor.u32 %v3516_v17, %v3515_v2  ;;  %v3452_v36 = vsel %vm780_vm8, %v3420_v25, 0  ;;  %v2228_v6 = vrot.slane %v2226_v61, 7  ;;  %v3533_v60 = vshrl.u32 %v3450_v34, 16  ;;  %v6945_v61 = vld [vmem:[%s8421_s3 + $0x1e8] sm:$0xff]  }
 0x1c7   : > { %v3545_v27 = vshrl.u32 %v3452_v36, 16  ;;  %v3539_v44 = vrot.slane %v3537_v38, 7  ;;  %v3551_v40 = vrot.slane %v3549_v8, 7  ;;  %v3457_v29 = vsel %vm781_vm9, %v7765_v57, 0 }
 0x1c8   : > { %v3519_v39 = vsel %vm814_vm10, %v3511_v14, %v3518_v1  ;;  %v3535_v18 = vrot.slane %v3533_v60, 7  ;;  %v3561_v15 = vshrl.u32 %v3455_v20, 16  ;;  %v3573_v35 = vshrl.u32 %v3457_v29, 16 }
 0x1c9   : > { %v3547_v16 = vrot.slane %v3545_v27, 7  ;;  %v3456_v5 = vsel %vm780_vm8, %v3424_v52, 0  ;;  %v3459_v36 = vsel %vm781_vm9, %v7809_v24, 0  ;;  %v3461_v34 = vsel %vm781_vm9, %v7811_v59, 0  ;;  %v3430_v52 = vld [vmem:[#allocation2 + $0x138] sm:$0x80] }
 0x1ca   : > { %v3575_v38 = vrot.slane %v3573_v35, 7  ;;  %v3576_v8 = vshll.u32 %v3457_v29, 16 }
 0x1cb   : > { %6262 = vmatmul.mubr.bf16.gmra.mrb[36].mxu0 %v2184_v41  ;;  %v2229_v41 = vshll.u32 %v2120_v3, 16  ;;  %v3552_v3 = vshll.u32 %v3453_v10, 16 }
 0x1cc   : > { %6265 = vmatprep.mubr.bf16.mxu0 %v2196_v26  ;;  %6402 = vmatmul.mubr.bf16.vlgmr.msra.gmra.mrb[16].mxu1 %v3495_v58  ;;  %v3540_v26 = vshll.u32 %v3451_v0, 16  ;;  %v3422_v58 = vld [vmem:[#allocation2 + $0xd8] sm:$0x80] }
 0x1cd   : > { %6434 = vmatpush3.bf16.msra.mxu1 %v7873_v63  ;;  %6405 = vmatprep.mubr.bf16.mxu1 %v3507_v48  ;;  %v2119_v63 = vsel %vm780_vm8, %v2071_v54, 0  ;;  %v2231_v2 = vor.u32 %v2229_v41, %v2228_v6  ;;  %v6944_v48 = vld [vmem:[%s8421_s3 + $0x1e0] sm:$0xff]   ;;  %v3554_v0 = vor.u32 %v3552_v3, %v3551_v40  ;;  %v3454_v17 = vsel %vm780_vm8, %v3422_v58, 0 }
 0x1ce   : > { %6435 = vmatprep.subr.bf16.mxu1 %v6941_v49  ;;  %v2222_v13 = vshrl.u32 %v2119_v63, 16  ;;  %v3542_v25 = vor.u32 %v3540_v26, %v3539_v44  ;;  %v3557_v62 = vshrl.u32 %v3454_v17, 16  ;;  %v3569_v63 = vshrl.u32 %v3456_v5, 16  ;;  %v3428_v6 = vld [vmem:[#allocation2 + $0x120] sm:$0x80] }
 0x1cf   : > { %v3555_v1 = vsel %vm814_vm10, %v3547_v16, %v3554_v0  ;;  %v3597_v44 = vshrl.u32 %v3461_v34, 16  ;;  %v3460_v41 = vsel %vm780_vm8, %v3428_v6, 0  ;;  %v3588_v3 = vshll.u32 %v3459_v36, 16 }
 0x1d0   : > { %v2224_v54 = vrot.slane %v2222_v13, 7  ;;  %v3543_v14 = vsel %vm814_vm10, %v3535_v18, %v3542_v25  ;;  %v3559_v13 = vrot.slane %v3557_v62, 7  ;;  %v3593_v29 = vshrl.u32 %v3460_v41, 16  ;;  %v3432_v25 = vld [vmem:[#allocation2 + $0x150] sm:$0x80] }
 0x1d1   : > { %6436 = vmatpush3.bf16.msra.mxu1 %v6941_v49  ;;  %v3531_v49 = vsel %vm814_vm10, %v3523_v32, %v3530_v28  ;;  %v3564_v32 = vshll.u32 %v3455_v20, 16  ;;  %v3426_v28 = vld [vmem:[#allocation2 + $0x108] sm:$0x80]  ;;  %v3600_v18 = vshll.u32 %v3461_v34, 16 }
 0x1d2   : > { %6437 = vmatprep.subr.bf16.mxu1 %v6942_v50  ;;  %v2232_v10 = vsel %vm814_vm10, %v2224_v54, %v2231_v2  ;;  %v3458_v60 = vsel %vm780_vm8, %v3426_v28, 0  ;;  %v3599_v2 = vrot.slane %v3597_v44, 7  ;;  %v3463_v54 = vsel %vm781_vm9, %v7849_v33, 0  ;;  %v3434_v34 = vld [vmem:[#allocation2 + $0x168] sm:$0x80] }
 0x1d3   : > { %6266 = vmatmul.mubr.bf16.gmra.mrb[40].mxu0 %v2208_v46  ;;  %v6946_v46 = vld [vmem:[%s8421_s3 + $0x1f0] sm:$0xff]   ;;  %v3581_v20 = vshrl.u32 %v3458_v60, 16  ;;  %v3609_v17 = vshrl.u32 %v3463_v54, 16  ;;  %v3595_v35 = vrot.slane %v3593_v29, 7  ;;  %v3612_v28 = vshll.u32 %v3463_v54, 16 }
 0x1d4   : > { %6269 = vmatprep.mubr.bf16.mxu0 %v2220_v7  ;;  %6406 = vmatmul.mubr.bf16.gmra.mrb[20].mxu1 %v3519_v39  ;;  %v3571_v7 = vrot.slane %v3569_v63, 7  ;;  %v3578_v39 = vor.u32 %v3576_v8, %v3575_v38  ;;  %v3602_v5 = vor.u32 %v3600_v18, %v3599_v2  ;;  %v3469_v8 = vsel %vm781_vm9, %v7904_v56, 0 }
 0x1d5   : > { %6409 = vmatprep.mubr.bf16.mxu1 %v3531_v49  ;;  %6438 = vmatpush3.bf16.msra.mxu1 %v6942_v50  ;;  %v3563_v50 = vrot.slane %v3561_v15, 7  ;;  %v6947_v49 = vld [vmem:[%s8421_s3 + $0x1f8] sm:$0xff]   ;;  %v8066_v15 = vld [vmem:[%s8421_s3 + $0x200] sm:$0xff]   ;;  %v3583_v16 = vrot.slane %v3581_v20, 7  ;;  %v3466_v44 = vsel %vm780_vm8, %v3434_v34, 0  ;;  %v3645_v41 = vshrl.u32 %v3469_v8, 16 }
 0x1d6   : > { %6439 = vmatprep.subr.bf16.mxu1 %v6943_v51  ;;  %v3579_v58 = vsel %vm814_vm10, %v3571_v7, %v3578_v39  ;;  %v3603_v63 = vsel %vm814_vm10, %v3595_v35, %v3602_v5  ;;  %v8081_v7 = vld [vmem:[#allocation2 + $0x1a0] sm:$0xff]  ;;  %v3629_v20 = vshrl.u32 %v3466_v44, 16 }
 0x1d7   : > { %v3566_v27 = vor.u32 %v3564_v32, %v3563_v50  ;;  %v3467_v32 = vsel %vm781_vm9, %v7879_v12, 0  ;;  %v3471_v9 = vsel %vm779_vm11, %v8081_v7, 0  ;;  %v3647_v54 = vrot.slane %v3645_v41, 7  ;;  %v6956_v34 = vld [vmem:[%s8423_s5] sm:$0xff]  }
 0x1d8   : > { %v3631_v18 = vrot.slane %v3629_v20, 7  ;;  %v3660_v35 = vshll.u32 %v3471_v9, 16  ;;  %6529 = vmatprep.subr.bf16.mxu0 %v6956_v34  ;;  %v8431_v20 = vmov 0   ;;  %v4274_v4 = vsel %vm1554_vm13, %v8081_v7, 0 }
 0x1d9   : > { %6440 = vmatpush3.bf16.msra.mxu1 %v6943_v51  ;;  %v3585_v51 = vshrl.u32 %v3459_v36, 16  ;;  %v3567_v40 = vsel %vm814_vm10, %v3559_v13, %v3566_v27  ;;  %6530 = vmatpush3.bf16.msra.mxu0 %v6956_v34 }
 0x1da   : > { %6441 = vmatprep.subr.bf16.mxu1 %v6944_v48 }
 0x1db   : > { %6270 = vmatmul.mubr.bf16.gmra.mrb[44].mxu0 %v2232_v10  ;;  %v3587_v26 = vrot.slane %v3585_v51, 7  ;;  %v3462_v10 = vsel %vm780_vm8, %v3430_v52, 0  ;;  %v3633_v51 = vshrl.u32 %v3467_v32, 16  ;;  %v3657_v52 = vshrl.u32 %v3471_v9, 16  ;;  %v4218_v9 = vld [vmem:[#allocation2 + $0x80] sm:$0xff] }
 0x1dc   : > { %6410 = vmatmul.mubr.bf16.gmra.mrb[24].mxu1 %v3543_v14  ;;  %v3464_v14 = vsel %vm780_vm8, %v3432_v25, 0  ;;  %v3605_v50 = vshrl.u32 %v3462_v10, 16 }
 0x1dd   : > { %6413 = vmatprep.mubr.bf16.mxu1 %v3555_v1  ;;  %6442 = vmatpush3.bf16.msra.mxu1 %v6944_v48  ;;  %v3465_v48 = vsel %vm781_vm9, %v7851_v31, 0  ;;  %v3590_v0 = vor.u32 %v3588_v3, %v3587_v26  ;;  %v3611_v1 = vrot.slane %v3609_v17, 7  ;;  %v3617_v38 = vshrl.u32 %v3464_v14, 16 }
 0x1de   : > { %6443 = vmatprep.subr.bf16.mxu1 %v6945_v61  ;;  %v3624_v6 = vshll.u32 %v3465_v48, 16  ;;  %v3607_v13 = vrot.slane %v3605_v50, 7  ;;  %v3635_v26 = vrot.slane %v3633_v51, 7  ;;  %v3636_v3 = vshll.u32 %v3467_v32, 16  ;;  %v6950_v50 = vld [vmem:[%s8421_s3 + $0x210] sm:$0xff]   ;;  %v6960_v51 = vld [vmem:[%s8423_s5 + $0x20] sm:$0xff]  }
 0x1df   : > { %v3591_v62 = vsel %vm814_vm10, %v3583_v16, %v3590_v0  ;;  %v3614_v27 = vor.u32 %v3612_v28, %v3611_v1  ;;  %v3619_v39 = vrot.slane %v3617_v38, 7  ;;  %v3659_v17 = vrot.slane %v3657_v52, 7  ;;  %v6951_v1 = vld [vmem:[%s8421_s3 + $0x218] sm:$0xff]   ;;  %v6953_v38 = vld [vmem:[%s8421_s3 + $0x228] sm:$0xff]   ;;  %v6954_v32 = vld [vmem:[%s8421_s3 + $0x230] sm:$0xff]  }
 0x1e0   : > { %v3638_v47 = vor.u32 %v3636_v3, %v3635_v26  ;;  %v6955_v28 = vld [vmem:[%s8421_s3 + $0x238] sm:$0xff]   ;;  %v4219_v3 = vld [vmem:[#allocation2 + $0x88] sm:$0x1]  ;;  %v4252_v52 = vsel %vm1556_vm15, %v7960_v42, 0 }
 0x1e1   : > { %6444 = vmatpush3.bf16.msra.mxu1 %v6945_v61  ;;  %v3621_v61 = vshrl.u32 %v3465_v48, 16  ;;  %v3648_v48 = vshll.u32 %v3469_v8, 16  ;;  %v3662_v14 = vor.u32 %v3660_v35, %v3659_v17  ;;  %v6957_v8 = vld [vmem:[%s8423_s5 + $0x8] sm:$0xff]   ;;  %v4251_v17 = vsel %vm1557_vm0, %v4219_v3, 0 }
 0x1e2   : > { %6445 = vmatprep.subr.bf16.mxu1 %v6946_v46  ;;  %v3639_v5 = vsel %vm814_vm10, %v3631_v18, %v3638_v47  ;;  %6531 = vmatprep.subr.bf16.mxu0 %v6957_v8  ;;  %v4327_v35 = vshll.u32 %v4252_v52, 16 }
 0x1e3   : > { %v3623_v36 = vrot.slane %v3621_v61, 7  ;;  %v3650_v16 = vor.u32 %v3648_v48, %v3647_v54  ;;  %6532 = vmatpush3.bf16.msra.mxu0 %v6957_v8 }
 0x1e4   : > { %6414 = vmatmul.mubr.bf16.gmra.mrb[28].mxu1 %v3567_v40  ;;  %v3615_v40 = vsel %vm814_vm10, %v3607_v13, %v3614_v27  ;;  %v4215_v13 = vld [vmem:[#allocation2 + $0x58] sm:$0x1]  ;;  %v4248_v27 = vsel %vm1556_vm15, %v7943_v30, 0 }
 0x1e5   : > { %6417 = vmatprep.mubr.bf16.mxu1 %v3579_v58  ;;  %6446 = vmatpush3.bf16.msra.mxu1 %v6946_v46  ;;  %v3436_v46 = vld [vmem:[#allocation2 + $0x180] sm:$0x80]  ;;  %v3626_v60 = vor.u32 %v3624_v6, %v3623_v36  ;;  %v3438_v58 = vld [vmem:[#allocation2 + $0x198] sm:$0x80]  ;;  %v6989_v36 = vld [vmem:[#allocation2 + $0xb0] sm:$0xff]  ;;  %v4301_v48 = vshrl.u32 %v4248_v27, 16 }
 0x1e6   : > { %6447 = vmatprep.subr.bf16.mxu1 %v6947_v49  ;;  %v3470_v45 = vsel %vm778_vm12, %v3438_v58, 0 }
 0x1e7   : > { %v3627_v29 = vsel %vm814_vm10, %v3619_v39, %v3626_v60  ;;  %v3653_v0 = vshrl.u32 %v3470_v45, 16  ;;  %v4217_v39 = vld [vmem:[#allocation2 + $0x70] sm:$0x1]  ;;  %v4221_v45 = vld [vmem:[#allocation2 + $0xa0] sm:$0x1] }
 0x1e9   : > { %6448 = vmatpush3.bf16.msra.mxu1 %v6947_v49  ;;  %v3468_v49 = vsel %vm780_vm8, %v3436_v46, 0  ;;  %v3655_v61 = vrot.slane %v3653_v0, 7  ;;  %v4246_v46 = vsel %vm1556_vm15, %v7935_v21, 0 }
 0x1ea   : > { %6481 = vmatprep.subr.bf16.mxu1 %v8066_v15  ;;  %v3641_v2 = vshrl.u32 %v3468_v49, 16  ;;  %v4291_v60 = vshll.u32 %v4246_v46, 16  ;;  %v4303_v49 = vshll.u32 %v4248_v27, 16  ;;  %v4289_v54 = vshrl.u32 %v4246_v46, 16 }
 0x1ec   : > { %6418 = vmatmul.mubr.bf16.gmra.mrb[0].mxu1 %v3591_v62  ;;  %v3643_v25 = vrot.slane %v3641_v2, 7  ;;  %v3663_v62 = vsel %vm814_vm10, %v3655_v61, %v3662_v14  ;;  %v4305_v58 = vrot.slane %v4303_v49, 1  ;;  %v4250_v2 = vsel %vm1556_vm15, %v4218_v9, 0 }
 0x1ed   : > { %6421 = vmatprep.mubr.bf16.mxu1 %v3603_v63  ;;  %v6988_v63 = vld [vmem:[#allocation2 + $0x80] sm:$0xff] }
 0x1ee   : > { %v3651_v10 = vsel %vm814_vm10, %v3643_v25, %v3650_v16  ;;  %v4315_v25 = vshll.u32 %v4250_v2, 16  ;;  %v4306_v16 = vor.u32 %v4305_v58, %v4301_v48 }
 0x1f0   : > { %v4317_v14 = vrot.slane %v4315_v25, 1 }
 0x1f4   : > { %6422 = vmatmul.mubr.bf16.gmra.mrb[4].mxu1 %v3615_v40 }
 0x1f5   : > { %6425 = vmatprep.mubr.bf16.mxu1 %v3627_v29 }
 0x1fc   : > { %6426 = vmatmul.mubr.bf16.gmra.mrb[8].mxu1 %v3639_v5  ;;  %v4253_v5 = vsel %vm1557_vm0, %v4221_v45, 0 }
 0x1fd   : > { %6429 = vmatprep.mubr.bf16.mxu1 %v3651_v10  ;;  %v4222_v10 = vld [vmem:[#allocation2 + $0xb0] sm:$0xff] }
 0x204   : > { %6430 = vmatmul.mubr.bf16.gmra.mrb[12].mxu1 %v3663_v62  ;;  %v4320_v62 = vshll.u32 %v4251_v17, 16 }
 0x205   : > { %6449 = vmatprep.mubr.bf16.mxu1 %v7911_v11 }
 0x206   : > { %v4322_v34 = vrot.slane %v4320_v62, 1 }
 0x20c   : > { %6450 = vmatmul.mubr.bf16.vlgmr.msra.gmra.mrb[16].mxu1 %v7935_v21  ;;  %v4247_v21 = vsel %vm1557_vm0, %v4215_v13, 0 }
 0x20d   : > { %6482 = vmatpush3.bf16.msra.mxu1 %v8066_v15  ;;  %6453 = vmatprep.mubr.bf16.mxu1 %v7943_v30  ;;  %v6952_v15 = vld [vmem:[%s8421_s3 + $0x220] sm:$0xff]   ;;  %v4293_v30 = vrot.slane %v4291_v60, 1  ;;  %v4296_v40 = vshll.u32 %v4247_v21, 16  ;;  %v4227_v60 = vld [vmem:[#allocation2 + $0xe8] sm:$0x1] }
 0x20e   : > { %6483 = vmatprep.subr.bf16.mxu1 %v6949_v23  ;;  %v4229_v21 = vld [vmem:[#allocation2 + $0x100] sm:$0x1] }
 0x20f   : > { %v4294_v18 = vor.u32 %v4293_v30, %v4289_v54  ;;  %v4298_v47 = vrot.slane %v4296_v40, 1  ;;  %v4261_v58 = vsel %vm1557_vm0, %v4229_v21, 0 }
 0x211   : > { %6484 = vmatpush3.bf16.msra.mxu1 %v6949_v23  ;;  %v4299_v61 = vsel %vm1590_vm1, %v4294_v18, %v4298_v47  ;;  %v4329_v23 = vrot.slane %v4327_v35, 1  ;;  %v4380_v18 = vshll.u32 %v4261_v58, 16  ;;  %v4233_v35 = vld [vmem:[#allocation2 + $0x130] sm:$0x1] }
 0x212   : > { %6485 = vmatprep.subr.bf16.mxu1 %v6950_v50 }
 0x213   : > { %v4382_v62 = vrot.slane %v4380_v18, 1 }
 0x214   : > { %6454 = vmatmul.mubr.bf16.gmra.mrb[20].mxu1 %v6988_v63  ;;  %v4313_v63 = vshrl.u32 %v4250_v2, 16  ;;  %v4232_v2 = vld [vmem:[#allocation2 + $0x128] sm:$0xff] }
 0x215   : > { %6457 = vmatprep.mubr.bf16.mxu1 %v7960_v42  ;;  %6486 = vmatpush3.bf16.msra.mxu1 %v6950_v50  ;;  %v4332_v50 = vshll.u32 %v4253_v5, 16 }
 0x216   : > { %6487 = vmatprep.subr.bf16.mxu1 %v6951_v1 }
 0x219   : > { %6488 = vmatpush3.bf16.msra.mxu1 %v6951_v1  ;;  %v4254_v1 = vsel %vm1556_vm15, %v4222_v10, 0 }
 0x21a   : > { %6489 = vmatprep.subr.bf16.mxu1 %v6952_v15  ;;  %v4339_v8 = vshll.u32 %v4254_v1, 16 }
 0x21c   : > { %6458 = vmatmul.mubr.bf16.gmra.mrb[24].mxu1 %v6989_v36  ;;  %v4325_v36 = vshrl.u32 %v4252_v52, 16  ;;  %v4341_v46 = vrot.slane %v4339_v8, 1 }
 0x21d   : > { %6461 = vmatprep.mubr.bf16.mxu1 %v7987_v55  ;;  %6490 = vmatpush3.bf16.msra.mxu1 %v6952_v15  ;;  %v4223_v15 = vld [vmem:[#allocation2 + $0xb8] sm:$0x1] }
 0x21e   : > { %6491 = vmatprep.subr.bf16.mxu1 %v6953_v38 }
 0x221   : > { %6492 = vmatpush3.bf16.msra.mxu1 %v6953_v38  ;;  %v4256_v38 = vsel %vm1556_vm15, %v7987_v55, 0 }
 0x222   : > { %6493 = vmatprep.subr.bf16.mxu1 %v6954_v32 }
 0x224   : > { %6462 = vmatmul.mubr.bf16.gmra.mrb[28].mxu1 %v7763_v37  ;;  %v4244_v37 = vsel %vm1556_vm15, %v7911_v11, 0 }
 0x225   : > { %6465 = vmatprep.mubr.bf16.mxu1 %v7765_v57  ;;  %6494 = vmatpush3.bf16.msra.mxu1 %v6954_v32  ;;  %v6958_v57 = vld [vmem:[%s8423_s5 + $0x10] sm:$0xff]  }
 0x226   : > { %6495 = vmatprep.subr.bf16.mxu1 %v6955_v28  ;;  %6533 = vmatprep.subr.bf16.mxu0 %v6958_v57  ;;  %v4225_v32 = vld [vmem:[#allocation2 + $0xd0] sm:$0x1] }
 0x227   : > { %6534 = vmatpush3.bf16.msra.mxu0 %v6958_v57  ;;  %v4334_v57 = vrot.slane %v4332_v50, 1  ;;  %v4265_v50 = vsel %vm1557_vm0, %v4233_v35, 0 }
 0x229   : > { %6496 = vmatpush3.bf16.msra.mxu1 %v6955_v28  ;;  %v4318_v28 = vor.u32 %v4317_v14, %v4313_v63  ;;  %v4236_v63 = vld [vmem:[#allocation2 + $0x158] sm:$0xff] }
 0x22c   : > { %6466 = vmatmul.mubr.bf16.gmra.mrb[0].mxu1 %v7809_v24  ;;  %v4213_v24 = vld [vmem:[#allocation2 + $0x40] sm:$0x1] }
 0x22d   : > { %6469 = vmatprep.mubr.bf16.mxu1 %v7811_v59  ;;  %v4279_v59 = vshll.u32 %v4244_v37, 16  ;;  %v4245_v6 = vsel %vm1557_vm0, %v4213_v24, 0  ;;  %v4255_v24 = vsel %vm1557_vm0, %v4223_v15, 0 }
 0x22e   : > { %v4284_v11 = vshll.u32 %v4245_v6, 16  ;;  %v4257_v6 = vsel %vm1557_vm0, %v4225_v32, 0  ;;  %v4344_v55 = vshll.u32 %v4255_v24, 16  ;;  %v4268_v24 = vsel %vm1556_vm15, %v4236_v63, 0 }
 0x230   : > { %v4286_v41 = vrot.slane %v4284_v11, 1  ;;  %v4323_v11 = vsel %vm1590_vm1, %v4318_v28, %v4322_v34  ;;  %v4404_v34 = vshll.u32 %v4265_v50, 16 }
 0x234   : > { %6470 = vmatmul.mubr.bf16.gmra.mrb[4].mxu1 %v7849_v33  ;;  %v6959_v33 = vld [vmem:[%s8423_s5 + $0x18] sm:$0xff]  }
 0x235   : > { %6473 = vmatprep.mubr.bf16.mxu1 %v7851_v31  ;;  %v4281_v31 = vrot.slane %v4279_v59, 1  ;;  %6535 = vmatprep.subr.bf16.mxu0 %v6959_v33  ;;  %v4351_v59 = vshll.u32 %v4256_v38, 16 }
 0x236   : > { %6536 = vmatpush3.bf16.msra.mxu0 %v6959_v33  ;;  %v4226_v33 = vld [vmem:[#allocation2 + $0xe0] sm:$0xff] }
 0x237   : > { %6537 = vmatprep.subr.bf16.mxu0 %v6960_v51  ;;  %v4353_v27 = vrot.slane %v4351_v59, 1 }
 0x23a   : > { %6538 = vmatpush3.bf16.msra.mxu0 %v6960_v51  ;;  %v4356_v51 = vshll.u32 %v4257_v6, 16  ;;  %v4237_v6 = vld [vmem:[#allocation2 + $0x160] sm:$0x1] }
 0x23c   : > { %6474 = vmatmul.mubr.bf16.gmra.mrb[8].mxu1 %v7879_v12  ;;  %v4277_v12 = vshrl.u32 %v4244_v37, 16  ;;  %v4330_v37 = vor.u32 %v4329_v23, %v4325_v36  ;;  %v4358_v40 = vrot.slane %v4356_v51, 1  ;;  %v4269_v51 = vsel %vm1557_vm0, %v4237_v6, 0 }
 0x23d   : > { %6477 = vmatprep.mubr.bf16.mxu1 %v7904_v56  ;;  %v4249_v56 = vsel %vm1557_vm0, %v4217_v39, 0  ;;  %v4337_v39 = vshrl.u32 %v4254_v1, 16  ;;  %v4234_v1 = vld [vmem:[#allocation2 + $0x140] sm:$0xff] }
 0x23e   : > { %v4282_v44 = vor.u32 %v4281_v31, %v4277_v12  ;;  %v4308_v29 = vshll.u32 %v4249_v56, 16  ;;  %v4228_v31 = vld [vmem:[#allocation2 + $0xf8] sm:$0xff]  ;;  %v4335_v13 = vsel %vm1590_vm1, %v4330_v37, %v4334_v57  ;;  %v4258_v12 = vsel %vm1556_vm15, %v4226_v33, 0  ;;  %v4235_v57 = vld [vmem:[#allocation2 + $0x148] sm:$0x1] }
 0x23f   : > { %v4342_v49 = vor.u32 %v4341_v46, %v4337_v39  ;;  %v4346_v56 = vrot.slane %v4344_v55, 1  ;;  %v4363_v9 = vshll.u32 %v4258_v12, 16  ;;  %v4361_v25 = vshrl.u32 %v4258_v12, 16  ;;  %v4238_v12 = vld [vmem:[#allocation2 + $0x170] sm:$0xff] }
 0x240   : > { %v4287_v26 = vsel %vm1590_vm1, %v4282_v44, %v4286_v41  ;;  %v4310_v0 = vrot.slane %v4308_v29, 1  ;;  %v4260_v44 = vsel %vm1556_vm15, %v4228_v31, 0  ;;  %v4349_v41 = vshrl.u32 %v4256_v38, 16  ;;  %v4230_v29 = vld [vmem:[#allocation2 + $0x110] sm:$0xff] }
 0x241   : > { %v4347_v54 = vsel %vm1590_vm1, %v4342_v49, %v4346_v56  ;;  %v4365_v3 = vrot.slane %v4363_v9, 1  ;;  %v4262_v47 = vsel %vm1556_vm15, %v4230_v29, 0  ;;  %v4373_v17 = vshrl.u32 %v4260_v44, 16 }
 0x242   : > { %v4311_v42 = vsel %vm1590_vm1, %v4306_v16, %v4310_v0  ;;  %v4354_v30 = vor.u32 %v4353_v27, %v4349_v41  ;;  %v4231_v16 = vld [vmem:[#allocation2 + $0x118] sm:$0x1]  ;;  %v4264_v0 = vsel %vm1556_vm15, %v4232_v2, 0  ;;  %v4266_v8 = vsel %vm1556_vm15, %v4234_v1, 0 }
 0x243   : > { %v4366_v5 = vor.u32 %v4365_v3, %v4361_v25  ;;  %v4399_v23 = vshll.u32 %v4264_v0, 16  ;;  %v4385_v37 = vshrl.u32 %v4262_v47, 16  ;;  %v4397_v59 = vshrl.u32 %v4264_v0, 16 }
 0x244   : > { %6478 = vmatmul.mubr.bf16.gmra.mrb[12].mxu1 %v8431_v20  ;;  %v4259_v20 = vsel %vm1557_vm0, %v4227_v60, 0  ;;  %v4359_v48 = vsel %vm1590_vm1, %v4354_v30, %v4358_v40  ;;  %v4406_v55 = vrot.slane %v4404_v34, 1  ;;  %v4423_v27 = vshll.u32 %v4268_v24, 16  ;;  %v4239_v30 = vld [vmem:[#allocation2 + $0x178] sm:$0x1] }
 0x245   : > { %6497 = vmatprep.mubr.bf16.mxu1 %v4287_v26  ;;  %v4375_v26 = vshll.u32 %v4260_v44, 16  ;;  %v4368_v52 = vshll.u32 %v4259_v20, 16  ;;  %v4401_v28 = vrot.slane %v4399_v23, 1  ;;  %v4428_v49 = vshll.u32 %v4269_v51, 16  ;;  %v4241_v20 = vld [vmem:[#allocation2 + $0x190] sm:$0x1] }
 0x246   : > { %v4425_v21 = vrot.slane %v4423_v27, 1  ;;  %v4270_v56 = vsel %vm1556_vm15, %v4238_v12, 0  ;;  %v4409_v9 = vshrl.u32 %v4266_v8, 16  ;;  %v4421_v40 = vshrl.u32 %v4268_v24, 16  ;;  %v6961_v12 = vld [vmem:[%s8423_s5 + $0x28] sm:$0xff]  }
 0x247   : > { %v4377_v45 = vrot.slane %v4375_v26, 1  ;;  %v4370_v10 = vrot.slane %v4368_v52, 1  ;;  %v4402_v46 = vor.u32 %v4401_v28, %v4397_v59  ;;  %v4435_v29 = vshll.u32 %v4270_v56, 16  ;;  %6539 = vmatprep.subr.bf16.mxu0 %v6961_v12 }
 0x248   : > { %v4426_v2 = vor.u32 %v4425_v21, %v4421_v40  ;;  %v4271_v3 = vsel %vm1557_vm0, %v4239_v30, 0  ;;  %v4273_v52 = vsel %vm1557_vm0, %v4241_v20, 0  ;;  %v4433_v0 = vshrl.u32 %v4270_v56, 16  ;;  %6540 = vmatpush3.bf16.msra.mxu0 %v6961_v12 }
 0x249   : > { %v4378_v14 = vor.u32 %v4377_v45, %v4373_v17  ;;  %v4371_v15 = vsel %vm1590_vm1, %v4366_v5, %v4370_v10  ;;  %v4407_v41 = vsel %vm1590_vm1, %v4402_v46, %v4406_v55  ;;  %v4437_v45 = vrot.slane %v4435_v29, 1 }
 0x24a   : > { %v4440_v18 = vshll.u32 %v4271_v3, 16  ;;  %v4459_v17 = vshll.u32 %v4274_v4, 16 }
 0x24b   : > { %v4383_v32 = vsel %vm1590_vm1, %v4378_v14, %v4382_v62  ;;  %v4438_v19 = vor.u32 %v4437_v45, %v4433_v0  ;;  %v4457_v62 = vshrl.u32 %v4274_v4, 16 }
 0x24c   : > { %6498 = vmatmul.mubr.bf16.vlgmr.msra.gmra.mrb[16].mxu1 %v4299_v61  ;;  %v4387_v61 = vshll.u32 %v4262_v47, 16  ;;  %v4243_v47 = vld [vmem:[#allocation2 + $0x1a8] sm:$0x1]  ;;  %v4442_v7 = vrot.slane %v4440_v18, 1 }
 0x24d   : > { %6501 = vmatprep.mubr.bf16.mxu1 %v4311_v42  ;;  %v4263_v42 = vsel %vm1557_vm0, %v4231_v16, 0  ;;  %v4452_v16 = vshll.u32 %v4273_v52, 16  ;;  %v4275_v22 = vsel %vm1555_vm14, %v4243_v47, 0 }
 0x24e   : > { %v4389_v38 = vrot.slane %v4387_v61, 1  ;;  %v4392_v36 = vshll.u32 %v4263_v42, 16  ;;  %v4461_v42 = vrot.slane %v4459_v17, 1  ;;  %v4464_v23 = vshll.u32 %v4275_v22, 16 }
 0x24f   : > { %v4454_v61 = vrot.slane %v4452_v16, 1  ;;  %v4443_v50 = vsel %vm1590_vm1, %v4438_v19, %v4442_v7 }
 0x250   : > { %v4390_v33 = vor.u32 %v4389_v38, %v4385_v37  ;;  %v4394_v31 = vrot.slane %v4392_v36, 1  ;;  %v4462_v53 = vor.u32 %v4461_v42, %v4457_v62  ;;  %v4466_v63 = vrot.slane %v4464_v23, 1 }
 0x251   : > { %v4455_v1 = vsel %vm1590_vm1, %v7957_v43, %v4454_v61 }
 0x252   : > { %v4395_v39 = vsel %vm1590_vm1, %v4390_v33, %v4394_v31  ;;  %v4467_v28 = vsel %vm1590_vm1, %v4462_v53, %v4466_v63 }
 0x254   : > { %6502 = vmatmul.mubr.bf16.gmra.mrb[20].mxu1 %v4323_v11  ;;  %v4411_v11 = vshll.u32 %v4266_v8, 16 }
 0x255   : > { %6505 = vmatprep.mubr.bf16.mxu1 %v4335_v13  ;;  %v4267_v13 = vsel %vm1557_vm0, %v4235_v57, 0 }
 0x256   : > { %v4413_v60 = vrot.slane %v4411_v11, 1  ;;  %v4416_v44 = vshll.u32 %v4267_v13, 16 }
 0x258   : > { %v4414_v26 = vor.u32 %v4413_v60, %v4409_v9  ;;  %v4418_v58 = vrot.slane %v4416_v44, 1 }
 0x25c   : > { %6506 = vmatmul.mubr.bf16.gmra.mrb[24].mxu1 %v4347_v54  ;;  %v4430_v54 = vrot.slane %v4428_v49, 1  ;;  %v6963_v49 = vld [vmem:[%s8423_s5 + $0x38] sm:$0xff]  }
 0x25d   : > { %6509 = vmatprep.mubr.bf16.mxu1 %v4359_v48  ;;  %v4419_v48 = vsel %vm1590_vm1, %v4414_v26, %v4418_v58  ;;  %v8285_v26 = vld [vmem:[%s8422_s4] ss:$0 sm:$0xff] }
 0x25e   : > { %v4431_v25 = vsel %vm1590_vm1, %v4426_v2, %v4430_v54 }
 0x264   : > { %6510 = vmatmul.mubr.bf16.gmra.mrb[28].mxu1 %v4371_v15 }
 0x265   : > { %6513 = vmatprep.mubr.bf16.mxu1 %v4383_v32 }
 0x26c   : > { %6514 = vmatmul.mubr.bf16.gmra.mrb[0].mxu1 %v4395_v39 }
 0x26d   : > { %6517 = vmatprep.mubr.bf16.mxu1 %v4407_v41  ;;  %v6962_v41 = vld [vmem:[%s8423_s5 + $0x30] sm:$0xff]  }
 0x26e   : > { %6541 = vmatprep.subr.bf16.mxu0 %v6962_v41 }
 0x26f   : > { %6542 = vmatpush3.bf16.msra.mxu0 %v6962_v41 }
 0x270   : > { %6543 = vmatprep.subr.bf16.mxu0 %v6963_v49 }
 0x273   : > { %6544 = vmatpush3.bf16.msra.mxu0 %v6963_v49 }
 0x274   : > { %6518 = vmatmul.mubr.bf16.gmra.mrb[4].mxu1 %v4419_v48 }
 0x275   : > { %6521 = vmatprep.mubr.bf16.mxu1 %v4431_v25 }
 0x276   : > { %v8227_v35 = vpop.f32.mrb[48].mxu0 }
 0x277   : > { %v8231_v5 = vpop.f32.mrb[49].mxu0 }
 0x278   : > { %v8233_v10 = vpop.f32.mrb[50].mxu0 }
 0x279   : > { %v8235_v14 = vpop.f32.mrb[51].mxu0 }
 0x27c   : > { %6522 = vmatmul.mubr.bf16.gmra.mrb[8].mxu1 %v4443_v50 }
 0x27d   : > { %6525 = vmatprep.mubr.bf16.mxu1 %v4455_v1 }
 0x27e   : > { %v8240_v15 = vpop.f32.mrb[52].mxu0 }
 0x27f   : > { %v8242_v38 = vpop.f32.mrb[53].mxu0 }
 0x280   : > { %v8244_v36 = vpop.f32.mrb[54].mxu0 }
 0x281   : > { %v8246_v32 = vpop.f32.mrb[55].mxu0 }
 0x284   : > { %6526 = vmatmul.mubr.bf16.gmra.mrb[12].mxu1 %v4467_v28 }
 0x286   : > { %v8249_v34 = vpop.f32.mrb[56].mxu0 }
 0x287   : > { %v8251_v8 = vpop.f32.mrb[57].mxu0 }
 0x288   : > { %v8253_v37 = vpop.f32.mrb[58].mxu0 }
 0x289   : > { %v8255_v43 = vpop.f32.mrb[59].mxu0 }
 0x28e   : > { %v8257_v57 = vpop.f32.mrb[60].mxu0 }
 0x28f   : > { %v8259_v24 = vpop.f32.mrb[61].mxu0 }
 0x290   : > { %v8261_v59 = vpop.f32.mrb[62].mxu0 }
 0x291   : > { %v8263_v6 = vpop.f32.mrb[63].mxu0 }
 0x296   : > { %v6259_v33 = vpop.f32.mrb[32].mxu0 }
 0x297   : > { %v2444_v31 = vpop.f32.mrb[33].mxu0 }
 0x298   : > { %v6260_v11 = vpop.f32.mrb[34].mxu0 }
 0x299   : > { %v2447_v46 = vpop.f32.mrb[35].mxu0 }
 0x29e   : > { %v6263_v55 = vpop.f32.mrb[36].mxu0 }
 0x29f   : > { %v2460_v13 = vpop.f32.mrb[37].mxu0 }
 0x2a0   : > { %v6264_v27 = vpop.f32.mrb[38].mxu0 }
 0x2a1   : > { %v2463_v51 = vpop.f32.mrb[39].mxu0 }
 0x2a6   : > { %v6267_v39 = vpop.f32.mrb[40].mxu0 }
 0x2a7   : > { %v2476_v60 = vpop.f32.mrb[41].mxu0 }
 0x2a8   : > { %v6268_v44 = vpop.f32.mrb[42].mxu0 }
 0x2a9   : > { %v2479_v21 = vpop.f32.mrb[43].mxu0 }
 0x2ae   : > { %v8274_v56 = vpop.f32.mrb[44].mxu0 }
 0x2af   : > { %v8276_v9 = vpop.f32.mrb[45].mxu0 }
 0x2b0   : > { %v8278_v30 = vpop.f32.mrb[46].mxu0 }
 0x2b1   : > { %v8280_v40 = vpop.f32.mrb[47].mxu0 }
 0x31f   : > { %v6499_v20 = vpop.f32.mrb[16].mxu1 }
 0x320   : > { %v6593_v58 = vadd.f32 %v6499_v20, %v6259_v33  ;;  %v4583_v29 = vpop.f32.mrb[17].mxu1 }
 0x321   : > { %v6594_v2 = vadd.f32 %v4583_v29, %v2444_v31  ;;  %v6500_v54 = vpop.f32.mrb[18].mxu1 }
 0x322   : > { %v4751_v3 = vadd.f32 %v6593_v58, %v8285_v26  ;;  %v6595_v52 = vadd.f32 %v6500_v54, %v6260_v11  ;;  %v4586_v4 = vpop.f32.mrb[19].mxu1 }
 0x323   : > { %v4749_v48 = vadd.f32 %v6594_v2, %v8285_v26  ;;  %v6596_v45 = vadd.f32 %v4586_v4, %v2447_v46 }
 0x324   : > { %v4752_v18 = vadd.f32 %v6595_v52, %v8285_v26  ;;  %v4783_v25 = vmax.f32 %v4751_v3, 0.0 }
 0x325   : > { %v4750_v47 = vadd.f32 %v6596_v45, %v8285_v26  ;;  %v4781_v0 = vmax.f32 %v4749_v48, 0.0 }
 0x326   : > { %v4784_v16 = vmax.f32 %v4752_v18, 0.0 }
 0x327   : > { %v4782_v17 = vmax.f32 %v4750_v47, 0.0  ;;  %v6503_v22 = vpop.f32.mrb[20].mxu1 }
 0x328   : > { %v4814_v19 = vpack.c.bf16 %v4784_v16, %v4783_v25  ;;  %v6597_v7 = vadd.f32 %v6503_v22, %v6263_v55  ;;  %v4599_v61 = vpop.f32.mrb[21].mxu1 }
 0x329   : > { %v6598_v62 = vadd.f32 %v4599_v61, %v2460_v13  ;;  %v6504_v42 = vpop.f32.mrb[22].mxu1  ;;  %v4813_v23 = vpack.c.bf16 %v4782_v17, %v4781_v0 }
 0x32a   : > { %v4755_v50 = vadd.f32 %v6597_v7, %v8285_v26  ;;  %v6599_v1 = vadd.f32 %v6504_v42, %v6264_v27  ;;  %v4602_v53 = vpop.f32.mrb[23].mxu1 }
 0x32b   : > { %v4753_v63 = vadd.f32 %v6598_v62, %v8285_v26  ;;  %v6600_v28 = vadd.f32 %v4602_v53, %v2463_v51  ;;  %6545 = vmatprep.mubr.bf16.mxu0 %v4813_v23 }
 0x32c   : > { %v4756_v33 = vadd.f32 %v6599_v1, %v8285_v26  ;;  %6546 = vmatmul.mubr.bf16.vlgmr.msra.gmra.mrb[64].mxu0 %v4814_v19  ;;  %v4787_v11 = vmax.f32 %v4755_v50, 0.0 }
 0x32d   : > { %v4754_v31 = vadd.f32 %v6600_v28, %v8285_v26  ;;  %v4785_v55 = vmax.f32 %v4753_v63, 0.0 }
 0x32e   : > { %v4788_v46 = vmax.f32 %v4756_v33, 0.0 }
 0x32f   : > { %v4786_v12 = vmax.f32 %v4754_v31, 0.0  ;;  %v6507_v13 = vpop.f32.mrb[24].mxu1 }
 0x330   : > { %v6601_v41 = vadd.f32 %v6507_v13, %v6267_v39  ;;  %v4615_v49 = vpop.f32.mrb[25].mxu1  ;;  %v4816_v20 = vpack.c.bf16 %v4788_v46, %v4787_v11 }
 0x331   : > { %v6602_v58 = vadd.f32 %v4615_v49, %v2476_v60  ;;  %v6508_v27 = vpop.f32.mrb[26].mxu1  ;;  %v4815_v29 = vpack.c.bf16 %v4786_v12, %v4785_v55 }
 0x332   : > { %v4759_v2 = vadd.f32 %v6601_v41, %v8285_v26  ;;  %v6603_v51 = vadd.f32 %v6508_v27, %v6268_v44  ;;  %v4618_v54 = vpop.f32.mrb[27].mxu1 }
 0x333   : > { %v4757_v3 = vadd.f32 %v6602_v58, %v8285_v26  ;;  %v6604_v52 = vadd.f32 %v4618_v54, %v2479_v21  ;;  %6549 = vmatprep.mubr.bf16.mxu0 %v4815_v29 }
 0x334   : > { %v4760_v4 = vadd.f32 %v6603_v51, %v8285_v26  ;;  %6550 = vmatmul.mubr.bf16.gmra.mrb[68].mxu0 %v4816_v20  ;;  %v4791_v45 = vmax.f32 %v4759_v2, 0.0 }
 0x335   : > { %v4758_v48 = vadd.f32 %v6604_v52, %v8285_v26  ;;  %v4789_v18 = vmax.f32 %v4757_v3, 0.0 }
 0x336   : > { %v4792_v39 = vmax.f32 %v4760_v4, 0.0 }
 0x337   : > { %v4790_v47 = vmax.f32 %v4758_v48, 0.0  ;;  %v6511_v60 = vpop.f32.mrb[28].mxu1 }
 0x338   : > { %v6605_v25 = vadd.f32 %v6511_v60, %v8274_v56  ;;  %v4631_v16 = vpop.f32.mrb[29].mxu1  ;;  %v4818_v0 = vpack.c.bf16 %v4792_v39, %v4791_v45 }
 0x339   : > { %v6606_v44 = vadd.f32 %v4631_v16, %v8276_v9  ;;  %v6512_v17 = vpop.f32.mrb[30].mxu1  ;;  %v4817_v22 = vpack.c.bf16 %v4790_v47, %v4789_v18 }
 0x33a   : > { %v4763_v21 = vadd.f32 %v6605_v25, %v8285_v26  ;;  %v6607_v19 = vadd.f32 %v6512_v17, %v8278_v30  ;;  %v4634_v7 = vpop.f32.mrb[31].mxu1 }
 0x33b   : > { %v4761_v61 = vadd.f32 %v6606_v44, %v8285_v26  ;;  %v6608_v62 = vadd.f32 %v4634_v7, %v8280_v40  ;;  %6553 = vmatprep.mubr.bf16.mxu0 %v4817_v22 }
 0x33c   : > { %v4764_v42 = vadd.f32 %v6607_v19, %v8285_v26  ;;  %6554 = vmatmul.mubr.bf16.gmra.mrb[72].mxu0 %v4818_v0  ;;  %v4795_v23 = vmax.f32 %v4763_v21, 0.0 }
 0x33d   : > { %v4762_v56 = vadd.f32 %v6608_v62, %v8285_v26  ;;  %v4793_v9 = vmax.f32 %v4761_v61, 0.0 }
 0x33e   : > { %v4796_v50 = vmax.f32 %v4764_v42, 0.0 }
 0x33f   : > { %v4794_v1 = vmax.f32 %v4762_v56, 0.0  ;;  %v6515_v53 = vpop.f32.mrb[0].mxu1 }
 0x340   : > { %v6609_v63 = vadd.f32 %v6515_v53, %v8227_v35  ;;  %v4647_v28 = vpop.f32.mrb[1].mxu1  ;;  %v4820_v30 = vpack.c.bf16 %v4796_v50, %v4795_v23 }
 0x341   : > { %v6610_v33 = vadd.f32 %v4647_v28, %v8231_v5  ;;  %v6516_v31 = vpop.f32.mrb[2].mxu1  ;;  %v4819_v11 = vpack.c.bf16 %v4794_v1, %v4793_v9 }
 0x342   : > { %v4767_v40 = vadd.f32 %v6609_v63, %v8285_v26  ;;  %v6611_v46 = vadd.f32 %v6516_v31, %v8233_v10  ;;  %v4650_v55 = vpop.f32.mrb[3].mxu1 }
 0x343   : > { %v4765_v12 = vadd.f32 %v6610_v33, %v8285_v26  ;;  %v6612_v13 = vadd.f32 %v4650_v55, %v8235_v14  ;;  %6557 = vmatprep.mubr.bf16.mxu0 %v4819_v11 }
 0x344   : > { %v4768_v41 = vadd.f32 %v6611_v46, %v8285_v26  ;;  %6558 = vmatmul.mubr.bf16.gmra.mrb[76].mxu0 %v4820_v30  ;;  %v4799_v49 = vmax.f32 %v4767_v40, 0.0 }
 0x345   : > { %v4766_v35 = vadd.f32 %v6612_v13, %v8285_v26  ;;  %v4797_v5 = vmax.f32 %v4765_v12, 0.0 }
 0x346   : > { %v4800_v20 = vmax.f32 %v4768_v41, 0.0 }
 0x347   : > { %v4798_v58 = vmax.f32 %v4766_v35, 0.0  ;;  %v6519_v27 = vpop.f32.mrb[4].mxu1 }
 0x348   : > { %v6613_v29 = vadd.f32 %v6519_v27, %v8240_v15  ;;  %v4663_v2 = vpop.f32.mrb[5].mxu1  ;;  %v4822_v10 = vpack.c.bf16 %v4800_v20, %v4799_v49  ;;  %v6991_v49 = vld [vmem:[%s7082_s12] sm:$0xff]  }
 0x349   : > { %v6614_v51 = vadd.f32 %v4663_v2, %v8242_v38  ;;  %v6520_v54 = vpop.f32.mrb[6].mxu1  ;;  %v4821_v3 = vpack.c.bf16 %v4798_v58, %v4797_v5  ;;  %v5061_v20 = vunpack.c.l.bf16 %v6991_v49 }
 0x34a   : > { %v4771_v14 = vadd.f32 %v6613_v29, %v8285_v26  ;;  %v6615_v52 = vadd.f32 %v6520_v54, %v8244_v36  ;;  %v4666_v4 = vpop.f32.mrb[7].mxu1  ;;  %v5062_v29 = vunpack.c.h.bf16 %v6991_v49 }
 0x34b   : > { %v4769_v48 = vadd.f32 %v6614_v51, %v8285_v26  ;;  %v6616_v45 = vadd.f32 %v4666_v4, %v8246_v32  ;;  %6561 = vmatprep.mubr.bf16.mxu0 %v4821_v3 }
 0x34c   : > { %v4772_v39 = vadd.f32 %v6615_v52, %v8285_v26  ;;  %6562 = vmatmul.mubr.bf16.gmra.mrb[80].mxu0 %v4822_v10  ;;  %v4803_v18 = vmax.f32 %v4771_v14, 0.0 }
 0x34d   : > { %v4770_v15 = vadd.f32 %v6616_v45, %v8285_v26  ;;  %v4801_v38 = vmax.f32 %v4769_v48, 0.0 }
 0x34e   : > { %v4804_v47 = vmax.f32 %v4772_v39, 0.0 }
 0x34f   : > { %v4802_v60 = vmax.f32 %v4770_v15, 0.0  ;;  %v6523_v25 = vpop.f32.mrb[8].mxu1  ;;  %v6992_v15 = vld [vmem:[%s7082_s12 + $0x18] sm:$0xff]  }
 0x350   : > { %v6617_v16 = vadd.f32 %v6523_v25, %v8249_v34  ;;  %v4679_v0 = vpop.f32.mrb[9].mxu1  ;;  %v4824_v36 = vpack.c.bf16 %v4804_v47, %v4803_v18  ;;  %v5067_v18 = vunpack.c.l.bf16 %v6992_v15  ;;  %v6993_v25 = vld [vmem:[%s7082_s12 + $0x10] sm:$0xff]  }
 0x351   : > { %v6618_v44 = vadd.f32 %v4679_v0, %v8251_v8  ;;  %v6524_v17 = vpop.f32.mrb[10].mxu1  ;;  %v4823_v22 = vpack.c.bf16 %v4802_v60, %v4801_v38 }
 0x352   : > { %v4775_v32 = vadd.f32 %v6617_v16, %v8285_v26  ;;  %v6619_v21 = vadd.f32 %v6524_v17, %v8253_v37  ;;  %v4682_v19 = vpop.f32.mrb[11].mxu1  ;;  %v5065_v16 = vunpack.c.l.bf16 %v6993_v25  ;;  %v5068_v17 = vunpack.c.h.bf16 %v6992_v15 }
 0x353   : > { %v4773_v7 = vadd.f32 %v6618_v44, %v8285_v26  ;;  %v6620_v61 = vadd.f32 %v4682_v19, %v8255_v43  ;;  %6565 = vmatprep.mubr.bf16.mxu0 %v4823_v22  ;;  %v5066_v19 = vunpack.c.h.bf16 %v6993_v25 }
 0x354   : > { %v4776_v62 = vadd.f32 %v6619_v21, %v8285_v26  ;;  %6566 = vmatmul.mubr.bf16.gmra.mrb[84].mxu0 %v4824_v36  ;;  %v4807_v42 = vmax.f32 %v4775_v32, 0.0 }
 0x355   : > { %v4774_v34 = vadd.f32 %v6620_v61, %v8285_v26  ;;  %v4805_v8 = vmax.f32 %v4773_v7, 0.0 }
 0x356   : > { %v4808_v56 = vmax.f32 %v4776_v62, 0.0 }
 0x357   : > { %v4806_v23 = vmax.f32 %v4774_v34, 0.0  ;;  %v6527_v50 = vpop.f32.mrb[12].mxu1 }
 0x358   : > { %v6621_v9 = vadd.f32 %v6527_v50, %v8257_v57  ;;  %v4695_v1 = vpop.f32.mrb[13].mxu1  ;;  %v4826_v37 = vpack.c.bf16 %v4808_v56, %v4807_v42 }
 0x359   : > { %v6622_v53 = vadd.f32 %v4695_v1, %v8259_v24  ;;  %v6528_v63 = vpop.f32.mrb[14].mxu1  ;;  %v4825_v28 = vpack.c.bf16 %v4806_v23, %v4805_v8 }
 0x35a   : > { %v4779_v43 = vadd.f32 %v6621_v9, %v8285_v26  ;;  %v6623_v30 = vadd.f32 %v6528_v63, %v8261_v59  ;;  %v4698_v33 = vpop.f32.mrb[15].mxu1  ;;  %v8342_v59 = vld [vmem:[%s8424_s6] ss:$0 sm:$0xff]  ;;  %v6994_v9 = vld [vmem:[%s7082_s12 + $0x28] sm:$0xff]  }
 0x35b   : > { %v4777_v31 = vadd.f32 %v6622_v53, %v8285_v26  ;;  %v6624_v11 = vadd.f32 %v4698_v33, %v8263_v6  ;;  %6569 = vmatprep.mubr.bf16.mxu0 %v4825_v28  ;;  %v6990_v6 = vld [vmem:[%s7082_s12 + $0x8] sm:$0xff]   ;;  %v5071_v1 = vunpack.c.l.bf16 %v6994_v9  ;;  %v6995_v28 = vld [vmem:[%s7082_s12 + $0x20] sm:$0xff]  }
 0x35c   : > { %v4780_v57 = vadd.f32 %v6623_v30, %v8285_v26  ;;  %6570 = vmatmul.mubr.bf16.gmra.mrb[88].mxu0 %v4826_v37  ;;  %v4811_v24 = vmax.f32 %v4779_v43, 0.0  ;;  %v5063_v35 = vunpack.c.l.bf16 %v6990_v6  ;;  %v5064_v27 = vunpack.c.h.bf16 %v6990_v6 }
 0x35d   : > { %v4778_v40 = vadd.f32 %v6624_v11, %v8285_v26  ;;  %v4809_v55 = vmax.f32 %v4777_v31, 0.0  ;;  %v5069_v43 = vunpack.c.l.bf16 %v6995_v28  ;;  %v5072_v11 = vunpack.c.h.bf16 %v6994_v9 }
 0x35e   : > { %v4812_v46 = vmax.f32 %v4780_v57, 0.0 }
 0x35f   : > { %v4810_v12 = vmax.f32 %v4778_v40, 0.0 }
 0x360   : > { %v4828_v13 = vpack.c.bf16 %v4812_v46, %v4811_v24  ;;  %v5070_v46 = vunpack.c.h.bf16 %v6995_v28 }
 0x361   : > { %v4827_v41 = vpack.c.bf16 %v4810_v12, %v4809_v55 }
 0x363   : > { %6573 = vmatprep.mubr.bf16.mxu0 %v4827_v41 }
 0x364   : > { %6574 = vmatmul.mubr.bf16.gmra.mrb[92].mxu0 %v4828_v13 }
 0x3ff   : > { %v6547_v5 = vpop.f32.mrb[64].mxu0 }
 0x400   : > { %v4943_v26 = vadd.f32 %v6547_v5, %v8342_v59  ;;  %v4934_v58 = vpop.f32.mrb[65].mxu0 }
 0x401   : > { %v4935_v2 = vadd.f32 %v8342_v59, %v4934_v58  ;;  %v6548_v10 = vpop.f32.mrb[66].mxu0 }
 0x402   : > { %v5095_v51 = vadd.f32 %v5063_v35, %v4943_v26  ;;  %v4946_v54 = vadd.f32 %v6548_v10, %v8342_v59  ;;  %v4937_v3 = vpop.f32.mrb[67].mxu0  ;;  %v6996_v26 = vld [vmem:[%s7082_s12 + $0x38] sm:$0xff]   ;;  %v6997_v10 = vld [vmem:[%s7082_s12 + $0x30] sm:$0xff]  }
 0x403   : > { %v5093_v14 = vadd.f32 %v5061_v20, %v4935_v2  ;;  %v4938_v52 = vadd.f32 %v8342_v59, %v4937_v3  ;;  %v5075_v58 = vunpack.c.l.bf16 %v6996_v26 }
 0x404   : > { %v5096_v4 = vadd.f32 %v5064_v27, %v4946_v54  ;;  %v5127_v45 = vmax.f32 %v5095_v51, 0.0  ;;  %v5073_v51 = vunpack.c.l.bf16 %v6997_v10 }
 0x405   : > { %v5094_v48 = vadd.f32 %v5062_v29, %v4938_v52  ;;  %v5125_v47 = vmax.f32 %v5093_v14, 0.0  ;;  %v5076_v52 = vunpack.c.h.bf16 %v6996_v26 }
 0x406   : > { %v5128_v39 = vmax.f32 %v5096_v4, 0.0 }
 0x407   : > { %v5126_v38 = vmax.f32 %v5094_v48, 0.0  ;;  %v6551_v60 = vpop.f32.mrb[68].mxu0 }
 0x408   : > { %v5698_v0 = vpack.c.bf16 %v5128_v39, %v5127_v45  ;;  %v4959_v36 = vadd.f32 %v6551_v60, %v8342_v59  ;;  %v4950_v44 = vpop.f32.mrb[69].mxu0  ;;  %v5074_v39 = vunpack.c.h.bf16 %v6997_v10 }
 0x409   : > { %v5693_v22 = vpack.c.bf16 %v5126_v38, %v5125_v47  ;;  %v4951_v32 = vadd.f32 %v8342_v59, %v4950_v44  ;;  %v6552_v21 = vpop.f32.mrb[70].mxu0  ;;  %v6998_v44 = vld [vmem:[%s7082_s12 + $0x48] sm:$0xff]  }
 0x40a   : > { %5770 = vst [vmem:[%s8356_s17 + $0x8] sm:$0xff] %v5698_v0   ;;  %v5099_v7 = vadd.f32 %v5067_v18, %v4959_v36  ;;  %v4962_v61 = vadd.f32 %v6552_v21, %v8342_v59  ;;  %v4953_v62 = vpop.f32.mrb[71].mxu0 }
 0x40b   : > { %5694 = vst [vmem:[%s8356_s17] sm:$0xff] %v5693_v22   ;;  %v5097_v34 = vadd.f32 %v5065_v16, %v4951_v32  ;;  %v4954_v42 = vadd.f32 %v8342_v59, %v4953_v62 }
 0x40c   : > { %v5100_v56 = vadd.f32 %v5068_v17, %v4962_v61  ;;  %v5131_v23 = vmax.f32 %v5099_v7, 0.0  ;;  %v5079_v17 = vunpack.c.l.bf16 %v6998_v44 }
 0x40d   : > { %v5098_v8 = vadd.f32 %v5066_v19, %v4954_v42  ;;  %v5129_v37 = vmax.f32 %v5097_v34, 0.0  ;;  %v6999_v19 = vld [vmem:[%s7082_s12 + $0x40] sm:$0xff]   ;;  %v5080_v42 = vunpack.c.h.bf16 %v6998_v44 }
 0x40e   : > { %v5132_v50 = vmax.f32 %v5100_v56, 0.0  ;;  %v5077_v7 = vunpack.c.l.bf16 %v6999_v19 }
 0x40f   : > { %v5130_v53 = vmax.f32 %v5098_v8, 0.0  ;;  %v6555_v63 = vpop.f32.mrb[72].mxu0 }
 0x410   : > { %v5708_v30 = vpack.c.bf16 %v5132_v50, %v5131_v23  ;;  %v4975_v33 = vadd.f32 %v6555_v63, %v8342_v59  ;;  %v4966_v31 = vpop.f32.mrb[73].mxu0  ;;  %v5078_v50 = vunpack.c.h.bf16 %v6999_v19 }
 0x411   : > { %v5703_v57 = vpack.c.bf16 %v5130_v53, %v5129_v37  ;;  %v4967_v40 = vadd.f32 %v8342_v59, %v4966_v31  ;;  %v6556_v24 = vpop.f32.mrb[74].mxu0  ;;  %v7000_v31 = vld [vmem:[%s7082_s12 + $0x58] sm:$0xff]  }
 0x412   : > { %5772 = vst [vmem:[%s8356_s17 + $0x18] sm:$0xff] %v5708_v30   ;;  %v5103_v55 = vadd.f32 %v5071_v1, %v4975_v33  ;;  %v4978_v12 = vadd.f32 %v6556_v24, %v8342_v59  ;;  %v4969_v13 = vpop.f32.mrb[75].mxu0 }
 0x413   : > { %5771 = vst [vmem:[%s8356_s17 + $0x10] sm:$0xff] %v5703_v57   ;;  %v5101_v41 = vadd.f32 %v5069_v43, %v4967_v40  ;;  %v4970_v6 = vadd.f32 %v8342_v59, %v4969_v13 }
 0x414   : > { %v5104_v35 = vadd.f32 %v5072_v11, %v4978_v12  ;;  %v5135_v20 = vmax.f32 %v5103_v55, 0.0  ;;  %v5083_v11 = vunpack.c.l.bf16 %v7000_v31 }
 0x415   : > { %v5102_v49 = vadd.f32 %v5070_v46, %v4970_v6  ;;  %v5133_v27 = vmax.f32 %v5101_v41, 0.0  ;;  %v7001_v46 = vld [vmem:[%s7082_s12 + $0x50] sm:$0xff]   ;;  %v5084_v6 = vunpack.c.h.bf16 %v7000_v31 }
 0x416   : > { %v5136_v5 = vmax.f32 %v5104_v35, 0.0  ;;  %v5081_v55 = vunpack.c.l.bf16 %v7001_v46 }
 0x417   : > { %v5134_v29 = vmax.f32 %v5102_v49, 0.0  ;;  %v6559_v2 = vpop.f32.mrb[76].mxu0 }
 0x418   : > { %v5718_v54 = vpack.c.bf16 %v5136_v5, %v5135_v20  ;;  %v4991_v3 = vadd.f32 %v6559_v2, %v8342_v59  ;;  %v4982_v14 = vpop.f32.mrb[77].mxu0  ;;  %v5082_v5 = vunpack.c.h.bf16 %v7001_v46 }
 0x419   : > { %v5713_v4 = vpack.c.bf16 %v5134_v29, %v5133_v27  ;;  %v4983_v48 = vadd.f32 %v8342_v59, %v4982_v14  ;;  %v6560_v45 = vpop.f32.mrb[78].mxu0  ;;  %v7002_v14 = vld [vmem:[%s7082_s12 + $0x68] sm:$0xff]  }
 0x41a   : > { %5774 = vst [vmem:[%s8356_s17 + $0x28] sm:$0xff] %v5718_v54   ;;  %v5107_v15 = vadd.f32 %v5075_v58, %v4991_v3  ;;  %v4994_v18 = vadd.f32 %v6560_v45, %v8342_v59  ;;  %v4985_v47 = vpop.f32.mrb[79].mxu0 }
 0x41b   : > { %5773 = vst [vmem:[%s8356_s17 + $0x20] sm:$0xff] %v5713_v4   ;;  %v5105_v38 = vadd.f32 %v5073_v51, %v4983_v48  ;;  %v4986_v60 = vadd.f32 %v8342_v59, %v4985_v47 }
 0x41c   : > { %v5108_v25 = vadd.f32 %v5076_v52, %v4994_v18  ;;  %v5139_v0 = vmax.f32 %v5107_v15, 0.0  ;;  %v5087_v52 = vunpack.c.l.bf16 %v7002_v14 }
 0x41d   : > { %v5106_v16 = vadd.f32 %v5074_v39, %v4986_v60  ;;  %v5137_v22 = vmax.f32 %v5105_v38, 0.0  ;;  %v7003_v39 = vld [vmem:[%s7082_s12 + $0x60] sm:$0xff]   ;;  %v5088_v60 = vunpack.c.h.bf16 %v7002_v14 }
 0x41e   : > { %v5140_v36 = vmax.f32 %v5108_v25, 0.0  ;;  %v5085_v15 = vunpack.c.l.bf16 %v7003_v39 }
 0x41f   : > { %v5138_v32 = vmax.f32 %v5106_v16, 0.0  ;;  %v6563_v21 = vpop.f32.mrb[80].mxu0 }
 0x420   : > { %v5728_v61 = vpack.c.bf16 %v5140_v36, %v5139_v0  ;;  %v5007_v62 = vadd.f32 %v6563_v21, %v8342_v59  ;;  %v4998_v34 = vpop.f32.mrb[81].mxu0  ;;  %v5086_v36 = vunpack.c.h.bf16 %v7003_v39 }
 0x421   : > { %v5723_v56 = vpack.c.bf16 %v5138_v32, %v5137_v22  ;;  %v4999_v8 = vadd.f32 %v8342_v59, %v4998_v34  ;;  %v6564_v23 = vpop.f32.mrb[82].mxu0  ;;  %v7004_v34 = vld [vmem:[%s7082_s12 + $0x78] sm:$0xff]  }
 0x422   : > { %5776 = vst [vmem:[%s8356_s17 + $0x38] sm:$0xff] %v5728_v61   ;;  %v5111_v9 = vadd.f32 %v5079_v17, %v5007_v62  ;;  %v5010_v1 = vadd.f32 %v6564_v23, %v8342_v59  ;;  %v5001_v37 = vpop.f32.mrb[83].mxu0 }
 0x423   : > { %5775 = vst [vmem:[%s8356_s17 + $0x30] sm:$0xff] %v5723_v56   ;;  %v5109_v53 = vadd.f32 %v5077_v7, %v4999_v8  ;;  %v5002_v63 = vadd.f32 %v8342_v59, %v5001_v37 }
 0x424   : > { %v5112_v28 = vadd.f32 %v5080_v42, %v5010_v1  ;;  %v5143_v30 = vmax.f32 %v5111_v9, 0.0  ;;  %v5091_v42 = vunpack.c.l.bf16 %v7004_v34 }
 0x425   : > { %v5110_v43 = vadd.f32 %v5078_v50, %v5002_v63  ;;  %v5141_v57 = vmax.f32 %v5109_v53, 0.0  ;;  %v7005_v50 = vld [vmem:[%s7082_s12 + $0x70] sm:$0xff]   ;;  %v5092_v63 = vunpack.c.h.bf16 %v7004_v34 }
 0x426   : > { %v5144_v33 = vmax.f32 %v5112_v28, 0.0  ;;  %v5089_v9 = vunpack.c.l.bf16 %v7005_v50 }
 0x427   : > { %v5142_v40 = vmax.f32 %v5110_v43, 0.0  ;;  %v6567_v24 = vpop.f32.mrb[84].mxu0 }
 0x428   : > { %v5738_v12 = vpack.c.bf16 %v5144_v33, %v5143_v30  ;;  %v5023_v13 = vadd.f32 %v6567_v24, %v8342_v59  ;;  %v5014_v41 = vpop.f32.mrb[85].mxu0  ;;  %v5090_v33 = vunpack.c.h.bf16 %v7005_v50 }
 0x429   : > { %v5733_v35 = vpack.c.bf16 %v5142_v40, %v5141_v57  ;;  %v5015_v49 = vadd.f32 %v8342_v59, %v5014_v41  ;;  %v6568_v20 = vpop.f32.mrb[86].mxu0 }
 0x42a   : > { %5778 = vst [vmem:[%s8356_s17 + $0x48] sm:$0xff] %v5738_v12   ;;  %v5115_v26 = vadd.f32 %v5083_v11, %v5023_v13  ;;  %v5026_v58 = vadd.f32 %v6568_v20, %v8342_v59  ;;  %v5017_v27 = vpop.f32.mrb[87].mxu0 }
 0x42b   : > { %5777 = vst [vmem:[%s8356_s17 + $0x40] sm:$0xff] %v5733_v35   ;;  %v5113_v29 = vadd.f32 %v5081_v55, %v5015_v49  ;;  %v5018_v2 = vadd.f32 %v8342_v59, %v5017_v27 }
 0x42c   : > { %v5116_v10 = vadd.f32 %v5084_v6, %v5026_v58  ;;  %v5147_v54 = vmax.f32 %v5115_v26, 0.0 }
 0x42d   : > { %v5114_v51 = vadd.f32 %v5082_v5, %v5018_v2  ;;  %v5145_v4 = vmax.f32 %v5113_v29, 0.0 }
 0x42e   : > { %v5148_v3 = vmax.f32 %v5116_v10, 0.0 }
 0x42f   : > { %v5146_v48 = vmax.f32 %v5114_v51, 0.0  ;;  %v6571_v45 = vpop.f32.mrb[88].mxu0 }
 0x430   : > { %v5748_v18 = vpack.c.bf16 %v5148_v3, %v5147_v54  ;;  %v5039_v47 = vadd.f32 %v6571_v45, %v8342_v59  ;;  %v5030_v38 = vpop.f32.mrb[89].mxu0 }
 0x431   : > { %v5743_v25 = vpack.c.bf16 %v5146_v48, %v5145_v4  ;;  %v5031_v16 = vadd.f32 %v8342_v59, %v5030_v38  ;;  %v6572_v0 = vpop.f32.mrb[90].mxu0 }
 0x432   : > { %5780 = vst [vmem:[%s8356_s17 + $0x58] sm:$0xff] %v5748_v18   ;;  %v5119_v44 = vadd.f32 %v5087_v52, %v5039_v47  ;;  %v5042_v17 = vadd.f32 %v6572_v0, %v8342_v59  ;;  %v5033_v22 = vpop.f32.mrb[91].mxu0 }
 0x433   : > { %5779 = vst [vmem:[%s8356_s17 + $0x50] sm:$0xff] %v5743_v25   ;;  %v5117_v32 = vadd.f32 %v5085_v15, %v5031_v16  ;;  %v5034_v21 = vadd.f32 %v8342_v59, %v5033_v22 }
 0x434   : > { %v5120_v19 = vadd.f32 %v5088_v60, %v5042_v17  ;;  %v5151_v61 = vmax.f32 %v5119_v44, 0.0 }
 0x435   : > { %v5118_v7 = vadd.f32 %v5086_v36, %v5034_v21  ;;  %v5149_v56 = vmax.f32 %v5117_v32, 0.0 }
 0x436   : > { %v5152_v62 = vmax.f32 %v5120_v19, 0.0 }
 0x437   : > { %v5150_v8 = vmax.f32 %v5118_v7, 0.0  ;;  %v6575_v23 = vpop.f32.mrb[92].mxu0 }
 0x438   : > { %v5758_v1 = vpack.c.bf16 %v5152_v62, %v5151_v61  ;;  %v5055_v37 = vadd.f32 %v6575_v23, %v8342_v59  ;;  %v5046_v53 = vpop.f32.mrb[93].mxu0 }
 0x439   : > { %v5753_v28 = vpack.c.bf16 %v5150_v8, %v5149_v56  ;;  %v5047_v43 = vadd.f32 %v8342_v59, %v5046_v53  ;;  %v6576_v30 = vpop.f32.mrb[94].mxu0 }
 0x43a   : > { %5782 = vst [vmem:[%s8356_s17 + $0x68] sm:$0xff] %v5758_v1   ;;  %v5123_v31 = vadd.f32 %v5091_v42, %v5055_v37  ;;  %v5058_v11 = vadd.f32 %v6576_v30, %v8342_v59  ;;  %v5049_v57 = vpop.f32.mrb[95].mxu0 }
 0x43b   : > { %5781 = vst [vmem:[%s8356_s17 + $0x60] sm:$0xff] %v5753_v28   ;;  %v5121_v40 = vadd.f32 %v5089_v9, %v5047_v43  ;;  %v5050_v24 = vadd.f32 %v8342_v59, %v5049_v57 }
 0x43c   : > { %v5124_v46 = vadd.f32 %v5092_v63, %v5058_v11  ;;  %v5155_v12 = vmax.f32 %v5123_v31, 0.0 }
 0x43d   : > { %v5122_v55 = vadd.f32 %v5090_v33, %v5050_v24  ;;  %v5153_v41 = vmax.f32 %v5121_v40, 0.0 }
 0x43e   : > { %v5156_v13 = vmax.f32 %v5124_v46, 0.0 }
 0x43f   : > { %v5154_v6 = vmax.f32 %v5122_v55, 0.0 }
 0x440   : > { %v5768_v35 = vpack.c.bf16 %v5156_v13, %v5155_v12 }
 0x441   : > { %v5763_v49 = vpack.c.bf16 %v5154_v6, %v5153_v41 }
 0x442   : > { %5784 = vst [vmem:[%s8356_s17 + $0x78] sm:$0xff] %v5768_v35  }
 0x443   : > { %5783 = vst [vmem:[%s8356_s17 + $0x70] sm:$0xff] %v5763_v49  }
 0x444 PF: > { %s17_s24 = sadd.s32 1, %s7012_s24  }
 0x445   : > { %p14_p4 = scmp.ge.s32.totalorder %s17_s24, 4  }
 0x447   :  { %16 = sbr.rel (!%p14_p4) target bundleno = 1 (0x1), region = 88 }

</bundles_post_ra>
